<compile_context>
chip_gen: v7x
topology: tpu7x:2x2x1
jax: 0.10.0
libtpu: 0.0.40
codegen_flags: <defaults>
</compile_context>

<pallas_src>
import functools
import math

import jax
import jax.numpy as jnp
from jax import lax
from jax.experimental import pallas as pl
from jax.experimental.pallas import tpu as pltpu


def _layer_norm(x, gamma, beta, eps=1e-5):
    mean = jnp.mean(x, axis=-1, keepdims=True)
    var = jnp.mean(jnp.square(x - mean), axis=-1, keepdims=True)
    return (x - mean) * lax.rsqrt(var + eps) * gamma + beta


# ----------------------------------------------------------------------------
# Pallas kernel: one EncoderLayer for one (batch element, query tile).
# ----------------------------------------------------------------------------
def encoder_layer_kernel(
    xq_ref,      # (1, TQ, D) f32   query rows of x
    xkv_ref,     # (1, T,  D) f32   all rows of x (keys / values)
    bias_ref,    # (1, 1,  T) f32   additive key-mask bias (0 or -1e9)
    ptab_ref,    # (R, Dh)   bf16   clamped relative-position table (row r <-> k-q = r-T)
    wq_ref,      # (D, D)    bf16   W_q^T
    wkv_ref,     # (D, 2D)   bf16   [W_k^T | W_v^T]  (fused)
    wo_ref,      # (D, D)    bf16   W_o^T
    w1_ref,      # (D, 4D)   bf16   FFN w1 (PositionLinear: y = x @ w + b)
    b1_ref,      # (1, 4D)   f32
    w2_ref,      # (4D, D)   bf16
    b2_ref,      # (1, D)    f32
    g1_ref,      # (1, D)    f32   LayerNorm1 gamma
    be1_ref,     # (1, D)    f32   LayerNorm1 beta
    g2_ref,      # (1, D)    f32   LayerNorm2 gamma
    be2_ref,     # (1, D)    f32   LayerNorm2 beta
    o_ref,       # (1, TQ, D) f32
    *,
    heads: int,
    scale: float,
    q_block: int,
    num_q_blocks: int,
):
    f32 = jnp.float32
    bf16 = jnp.bfloat16
    nt = (((1,), (1,)), ((), ()))      # contract minor dim of both operands (A @ B^T)

    xq = xq_ref[0]                     # (TQ, D) f32 (kept fp32 for the residual)
    xkv = xkv_ref[0]                   # (T,  D) f32
    TQ, D = xq.shape
    T = xkv.shape[0]
    Dh = D // heads
    R = ptab_ref.shape[0]              # padded relative range (multiple of 128, >= 2T)

    # --- projections: bf16 MXU matmuls, fp32 accumulation ---
    Q = jnp.dot(xq.astype(bf16), wq_ref[...], preferred_element_type=f32)     # (TQ, D)
    KV = jnp.dot(xkv.astype(bf16), wkv_ref[...], preferred_element_type=f32)  # (T, 2D)
    Qb = Q.astype(bf16)
    Kb = KV[:, :D].astype(bf16)
    Vb = KV[:, D:].astype(bf16)

    ptab = ptab_ref[...]               # (R, Dh) bf16, hoisted out of the head loop
    wo = wo_ref[...]                   # (D, D)  bf16
    key_bias = bias_ref[0]             # (1, T)  f32 -> broadcasts over query rows
    inv_scale = 1.0 / scale

    attn_out = jnp.zeros((TQ, D), f32)
    for h in range(heads):             # static unroll over heads
        sl = slice(h * Dh, (h + 1) * Dh)
        q_h = Qb[:, sl]                # (TQ, Dh)
        k_h = Kb[:, sl]                # (T,  Dh)
        v_h = Vb[:, sl]                # (T,  Dh)

        # content logits: Q K^T (MXU)
        logits = lax.dot_general(q_h, k_h, nt, preferred_element_type=f32)    # (TQ, T)

        # relative-position logits: small MXU matmul + relative shift (XLU roll).
        # Row i (global query q = q_start + i) needs source column k + T - q of
        # pos_full; realize that as a per-row strided lane roll plus one uniform
        # roll by q_start, then keep the first T lanes (no wrap-around occurs).
        pos_full = lax.dot_general(q_h, ptab, nt, preferred_element_type=f32)  # (TQ, R)
        skew = pltpu.roll(pos_full, R - T, 1, stride=1, stride_axis=0)
        if num_q_blocks > 1:
            q_start = pl.program_id(1) * q_block
            skew = pltpu.roll(skew, q_start, 1)
        pos_logits = skew[:, :T]                                               # (TQ, T)

        # (content + position) / scale, then key mask (finite, no -inf -> NaN)
        logits = (logits + pos_logits) * inv_scale + key_bias

        # softmax: fp32 statistics; reciprocal on the EUP, folded into the
        # already-reduced (TQ, Dh) context instead of the (TQ, T) weights.
        m = jnp.max(logits, axis=-1, keepdims=True)
        p = jnp.exp(logits - m)
        denom = jnp.sum(p, axis=-1, keepdims=True)
        ctx = jnp.dot(p.astype(bf16), v_h, preferred_element_type=f32)         # (TQ, Dh)
        ctx = ctx * pl.reciprocal(denom, approx=True)

        # fold this head straight into the output projection (no concatenate)
        attn_out += jnp.dot(ctx.astype(bf16), wo[sl, :], preferred_element_type=f32)

    # residual + LayerNorm 1   (dropout_1 == identity in eval)
    h1 = _layer_norm(xq + attn_out, g1_ref[...], be1_ref[...])

    # Dense sublayer: ReLU(h1 @ w1 + b1) @ w2 + b2   (dropout == identity)
    ff = jnp.dot(h1.astype(bf16), w1_ref[...], preferred_element_type=f32) + b1_ref[...]
    ff = jnp.maximum(ff, 0.0)
    ff = jnp.dot(ff.astype(bf16), w2_ref[...], preferred_element_type=f32) + b2_ref[...]

    # residual + LayerNorm 2
    o_ref[0] = _layer_norm(h1 + ff, g2_ref[...], be2_ref[...])


# ----------------------------------------------------------------------------
# Wrappers.
# ----------------------------------------------------------------------------
def _prepare_layer_params(p, *, seq_len, max_pos_len):
    """Kernel-ready params: bf16 weights, fused KV, clamped+padded pos table."""
    T, L = seq_len, max_pos_len
    R = max(128, ((2 * T + 127) // 128) * 128)          # lane-dense relative range
    idx = jnp.clip(jnp.arange(R) - T, -L, L) + L        # row r <-> rel dist r - T
    bf = lambda a: a.astype(jnp.bfloat16)
    return {
        "pos_table": bf(p["pos_emb"][idx]),                               # (R, Dh)
        "wq_t": bf(p["wq_t"]),
        "wkv_t": bf(jnp.concatenate([p["wk_t"], p["wv_t"]], axis=1)),     # (D, 2D)
        "wo_t": bf(p["wo_t"]),
        "w1": bf(p["w1"]), "b1": p["b1"],
        "w2": bf(p["w2"]), "b2": p["b2"],
        "ln1_g": p["ln1_g"], "ln1_b": p["ln1_b"],
        "ln2_g": p["ln2_g"], "ln2_b": p["ln2_b"],
    }


def run_encoder_layer(x, key_bias, lp, *, heads, q_block):
    B, T, D = x.shape
    Dh = D // heads
    R = lp["pos_table"].shape[0]
    num_q_blocks = T // q_block
    scale = math.sqrt(D / heads)

    kernel = functools.partial(
        encoder_layer_kernel, heads=heads, scale=scale,
        q_block=q_block, num_q_blocks=num_q_blocks)

    const = lambda b, q: (0, 0)
    return pl.pallas_call(
        kernel,
        out_shape=jax.ShapeDtypeStruct((B, T, D), jnp.float32),
        grid=(B, num_q_blocks),
        in_specs=[
            pl.BlockSpec((1, q_block, D), lambda b, q: (b, q, 0)),   # x (query rows)
            pl.BlockSpec((1, T, D), lambda b, q: (b, 0, 0)),         # x (key/value rows)
            pl.BlockSpec((1, 1, T), lambda b, q: (b, 0, 0)),         # key mask bias
            pl.BlockSpec((R, Dh), const),                            # pos table (bf16)
            pl.BlockSpec((D, D), const),                             # Wq^T
            pl.BlockSpec((D, 2 * D), const),                         # [Wk^T | Wv^T]
            pl.BlockSpec((D, D), const),                             # Wo^T
            pl.BlockSpec((D, 4 * D), const),                         # FFN w1
            pl.BlockSpec((1, 4 * D), const),                         # FFN b1
            pl.BlockSpec((4 * D, D), const),                         # FFN w2
            pl.BlockSpec((1, D), const),                             # FFN b2
            pl.BlockSpec((1, D), const),                             # LN1 gamma
            pl.BlockSpec((1, D), const),                             # LN1 beta
            pl.BlockSpec((1, D), const),                             # LN2 gamma
            pl.BlockSpec((1, D), const),                             # LN2 beta
        ],
        out_specs=pl.BlockSpec((1, q_block, D), lambda b, q: (b, q, 0)),
        compiler_params=pltpu.CompilerParams(
            dimension_semantics=("parallel", "parallel"),
            # live set is ~2 MiB now that the (T,T,Dh) block is gone; this stays
            # comfortably inside v7x's 64 MiB physical VMEM.
            vmem_limit_bytes=32 * 1024 * 1024,
        ),
    )(
        x, x, key_bias,
        lp["pos_table"], lp["wq_t"], lp["wkv_t"], lp["wo_t"],
        lp["w1"], lp["b1"], lp["w2"], lp["b2"],
        lp["ln1_g"], lp["ln1_b"], lp["ln2_g"], lp["ln2_b"],
    )


@functools.partial(jax.jit, static_argnames=("heads", "max_pos_len", "q_block"))
def encoder_forward(x, mask, layer_params, *, heads, max_pos_len, q_block=128):
    """Encoder.forward: x * sqrt(D); dropout (identity); stacked EncoderLayers."""
    B, T, D = x.shape
    if T % q_block != 0 or q_block % 8 != 0:
        q_block = T                                          # single query tile fallback
    x = x * jnp.float32(math.sqrt(D))
    # mask: (B, 1, 1, T) bool, True = masked key -> large finite negative bias
    key_bias = jnp.where(mask.reshape(B, 1, T), -1e9, 0.0).astype(jnp.float32)
    for p in layer_params:
        lp = _prepare_layer_params(p, seq_len=T, max_pos_len=max_pos_len)
        x = run_encoder_layer(x, key_bias, lp, heads=heads, q_block=q_block)
    return x


# ----------------------------------------------------------------------------
# Pure-JAX reference (mirrors the PyTorch module; matmul inputs cast to bf16 to
# match the kernel's MXU precision so tolerances can stay tight).
# ----------------------------------------------------------------------------
def encoder_reference(x, mask, layer_params, *, heads, max_pos_len):
    B, T, D = x.shape
    Dh = D // heads
    scale = math.sqrt(D / heads)
    bf16 = jnp.bfloat16
    mm = lambda a, b: jnp.matmul(a.astype(bf16), b.astype(bf16),
                                 preferred_element_type=jnp.float32)

    x = x * jnp.float32(math.sqrt(D))
    rel = jnp.arange(T)[None, :] - jnp.arange(T)[:, None]
    rel = jnp.clip(rel, -max_pos_len, max_pos_len) + max_pos_len          # (T, T)
    bias = jnp.where(mask.reshape(B, 1, 1, T), -1e9, 0.0).astype(jnp.float32)

    def split_heads(y):
        return y.reshape(B, T, heads, Dh).transpose(0, 2, 1, 3)           # (B, H, T, Dh)

    for p in layer_params:
        pos = p["pos_emb"][rel]                                           # (T, T, Dh)
        Q = split_heads(mm(x, p["wq_t"]))
        K = split_heads(mm(x, p["wk_t"]))
        V = split_heads(mm(x, p["wv_t"]))
        logits = jnp.einsum("bhqd,bhkd->bhqk", Q.astype(bf16), K.astype(bf16),
                            preferred_element_type=jnp.float32)
        pos_logits = jnp.einsum("bhqd,qkd->bhqk", Q.astype(bf16), pos.astype(bf16),
                                preferred_element_type=jnp.float32)
        logits = (logits + pos_logits) / scale + bias
        attn = jax.nn.softmax(logits, axis=-1)
        ctx = jnp.einsum("bhqk,bhkd->bhqd", attn.astype(bf16), V.astype(bf16),
                         preferred_element_type=jnp.float32)
        ctx = ctx.transpose(0, 2, 1, 3).reshape(B, T, D)
        attn_out = mm(ctx, p["wo_t"])
        h1 = _layer_norm(x + attn_out, p["ln1_g"], p["ln1_b"])
        ff = jnp.maximum(mm(h1, p["w1"]) + p["b1"], 0.0)
        ff = mm(ff, p["w2"]) + p["b2"]
        x = _layer_norm(h1 + ff, p["ln2_g"], p["ln2_b"])
    return x


# ----------------------------------------------------------------------------
# Deterministic synthetic parameters (same shapes as the PyTorch module).
# ----------------------------------------------------------------------------
def init_layer_params(key, dimension, heads, max_pos_len):
    D = dimension
    Dh = D // heads
    ks = jax.random.split(key, 12)
    n = lambda k, shape, std: (std * jax.random.normal(k, shape)).astype(jnp.float32)
    return {
        # AttentionSublayer (linear weights stored pre-transposed: y = x @ W^T)
        "pos_emb": n(ks[0], (2 * max_pos_len + 1, Dh), 1.0),
        "wq_t": n(ks[1], (D, D), 0.03),
        "wk_t": n(ks[2], (D, D), 0.03),
        "wv_t": n(ks[3], (D, D), 0.03),
        "wo_t": n(ks[4], (D, D), 0.03),
        # DenseSublayer (PositionLinear: y = x @ w + b)
        "w1": n(ks[5], (D, 4 * D), 0.015),
        "b1": n(ks[6], (1, 4 * D), 0.01),
        "w2": n(ks[7], (4 * D, D), 0.015),
        "b2": n(ks[8], (1, D), 0.01),
        # LayerNorms
        "ln1_g": jnp.ones((1, D), jnp.float32) + n(ks[9], (1, D), 0.01),
        "ln1_b": n(ks[10], (1, D), 0.01),
        "ln2_g": jnp.ones((1, D), jnp.float32) + n(ks[11], (1, D), 0.01),
        "ln2_b": jnp.zeros((1, D), jnp.float32),
    }


if __name__ == "__main__":
    # Small but TPU-friendly shapes: D lane-dense (128), T a multiple of the
    # query tile, two query tiles so the (batch, q-tile) grid is exercised.
    B, T, D, H = 2, 32, 128, 4
    LAYERS, MAX_POS_LEN = 2, 8
    Q_BLOCK = 16

    key = jax.random.PRNGKey(0)
    k_x, k_p = jax.random.split(key)
    x = jax.random.normal(k_x, (B, T, D), dtype=jnp.float32)

    # mask: (B, 1, 1, T) bool, True = padded key position (batch 1 has 5 padded keys)
    valid_lens = jnp.array([T, T - 5])
    mask = (jnp.arange(T)[None, :] >= valid_lens[:, None]).reshape(B, 1, 1, T)

    layer_keys = jax.random.split(k_p, LAYERS)
    layer_params = [init_layer_params(k, D, H, MAX_POS_LEN) for k in layer_keys]

    out = encoder_forward(x, mask, layer_params, heads=H,
                          max_pos_len=MAX_POS_LEN, q_block=Q_BLOCK)
    out = jax.block_until_ready(out)

    assert out.shape == (B, T, D)
    assert bool(jnp.all(jnp.isfinite(out)))

    ref = encoder_reference(x, mask, layer_params, heads=H, max_pos_len=MAX_POS_LEN)
    max_err = float(jnp.max(jnp.abs(out - ref)))
    if not bool(jnp.allclose(out, ref, atol=3e-2, rtol=3e-2)):
        raise AssertionError(f"kernel vs reference mismatch, max abs err = {max_err:.3e}")

    print("KERNEL_OK")
</pallas_src>

<mosaic_0001>
module attributes {stable_mosaic.version = 11 : i64} {
  func.func @encoder_layer_kernel(%arg0: i32, %arg1: i32, %arg2: memref<1x16x128xf32, #tpu.memory_space<vmem>>, %arg3: memref<1x32x128xf32, #tpu.memory_space<vmem>>, %arg4: memref<1x1x32xf32, #tpu.memory_space<vmem>>, %arg5: memref<128x32xbf16, #tpu.memory_space<vmem>>, %arg6: memref<128x128xbf16, #tpu.memory_space<vmem>>, %arg7: memref<128x256xbf16, #tpu.memory_space<vmem>>, %arg8: memref<128x128xbf16, #tpu.memory_space<vmem>>, %arg9: memref<128x512xbf16, #tpu.memory_space<vmem>>, %arg10: memref<1x512xf32, #tpu.memory_space<vmem>>, %arg11: memref<512x128xbf16, #tpu.memory_space<vmem>>, %arg12: memref<1x128xf32, #tpu.memory_space<vmem>>, %arg13: memref<1x128xf32, #tpu.memory_space<vmem>>, %arg14: memref<1x128xf32, #tpu.memory_space<vmem>>, %arg15: memref<1x128xf32, #tpu.memory_space<vmem>>, %arg16: memref<1x128xf32, #tpu.memory_space<vmem>>, %arg17: memref<1x16x128xf32, #tpu.memory_space<vmem>>) attributes {dimension_semantics = [#tpu.dimension_semantics<parallel>, #tpu.dimension_semantics<parallel>], iteration_bounds = array<i64: 2, 2>, scalar_prefetch = 0 : i64, scratch_operands = 0 : i64, tpu.core_type = #tpu.core_type<tc>, window_params = [{transform_indices = @transform_0, window_bounds = array<i64: 1, 16, 128>}, {transform_indices = @transform_1, window_bounds = array<i64: 1, 32, 128>}, {transform_indices = @transform_2, window_bounds = array<i64: 1, 1, 32>}, {pipeline_mode = #tpu.pipeline_mode<synchronous>, transform_indices = @transform_3, window_bounds = array<i64: 128, 32>}, {pipeline_mode = #tpu.pipeline_mode<synchronous>, transform_indices = @transform_4, window_bounds = array<i64: 128, 128>}, {pipeline_mode = #tpu.pipeline_mode<synchronous>, transform_indices = @transform_5, window_bounds = array<i64: 128, 256>}, {pipeline_mode = #tpu.pipeline_mode<synchronous>, transform_indices = @transform_6, window_bounds = array<i64: 128, 128>}, {pipeline_mode = #tpu.pipeline_mode<synchronous>, transform_indices = @transform_7, window_bounds = array<i64: 128, 512>}, {pipeline_mode = #tpu.pipeline_mode<synchronous>, transform_indices = @transform_8, window_bounds = array<i64: 1, 512>}, {pipeline_mode = #tpu.pipeline_mode<synchronous>, transform_indices = @transform_9, window_bounds = array<i64: 512, 128>}, {pipeline_mode = #tpu.pipeline_mode<synchronous>, transform_indices = @transform_10, window_bounds = array<i64: 1, 128>}, {pipeline_mode = #tpu.pipeline_mode<synchronous>, transform_indices = @transform_11, window_bounds = array<i64: 1, 128>}, {pipeline_mode = #tpu.pipeline_mode<synchronous>, transform_indices = @transform_12, window_bounds = array<i64: 1, 128>}, {pipeline_mode = #tpu.pipeline_mode<synchronous>, transform_indices = @transform_13, window_bounds = array<i64: 1, 128>}, {pipeline_mode = #tpu.pipeline_mode<synchronous>, transform_indices = @transform_14, window_bounds = array<i64: 1, 128>}, {transform_indices = @transform_15, window_bounds = array<i64: 1, 16, 128>}]} {
    %c0 = arith.constant 0 : index
    %c0_0 = arith.constant 0 : index
    %c0_1 = arith.constant 0 : index
    %0 = vector.load %arg2[%c0, %c0_0, %c0_1] : memref<1x16x128xf32, #tpu.memory_space<vmem>>, vector<1x16x128xf32>
    %1 = vector.shape_cast %0 : vector<1x16x128xf32> to vector<16x128xf32>
    %c0_2 = arith.constant 0 : index
    %c0_3 = arith.constant 0 : index
    %c0_4 = arith.constant 0 : index
    %2 = vector.load %arg3[%c0_2, %c0_3, %c0_4] : memref<1x32x128xf32, #tpu.memory_space<vmem>>, vector<1x32x128xf32>
    %3 = vector.shape_cast %2 : vector<1x32x128xf32> to vector<32x128xf32>
    %4 = arith.truncf %1 : vector<16x128xf32> to vector<16x128xbf16>
    %c0_5 = arith.constant 0 : index
    %c0_6 = arith.constant 0 : index
    %5 = vector.load %arg6[%c0_5, %c0_6] : memref<128x128xbf16, #tpu.memory_space<vmem>>, vector<128x128xbf16>
    %cst = arith.constant dense<0.000000e+00> : vector<16x128xf32>
    %6 = tpu.matmul %4, %5, %cst {dimension_numbers = #tpu.dot_dimension_numbers<[1], [0], [0], [1], [0, 0, 1, 1], [], []>} : vector<16x128xbf16>, vector<128x128xbf16>, vector<16x128xf32> -> vector<16x128xf32>
    %7 = arith.truncf %3 : vector<32x128xf32> to vector<32x128xbf16>
    %c0_7 = arith.constant 0 : index
    %c0_8 = arith.constant 0 : index
    %8 = vector.load %arg7[%c0_7, %c0_8] : memref<128x256xbf16, #tpu.memory_space<vmem>>, vector<128x256xbf16>
    %cst_9 = arith.constant dense<0.000000e+00> : vector<32x256xf32>
    %9 = tpu.matmul %7, %8, %cst_9 {dimension_numbers = #tpu.dot_dimension_numbers<[1], [0], [0], [1], [0, 0, 1, 1], [], []>} : vector<32x128xbf16>, vector<128x256xbf16>, vector<32x256xf32> -> vector<32x256xf32>
    %10 = arith.truncf %6 : vector<16x128xf32> to vector<16x128xbf16>
    %11 = vector.extract_strided_slice %9 {offsets = [0, 0], sizes = [32, 128], strides = [1, 1]} : vector<32x256xf32> to vector<32x128xf32>
    %12 = arith.truncf %11 : vector<32x128xf32> to vector<32x128xbf16>
    %13 = vector.extract_strided_slice %9 {offsets = [0, 128], sizes = [32, 128], strides = [1, 1]} : vector<32x256xf32> to vector<32x128xf32>
    %14 = arith.truncf %13 : vector<32x128xf32> to vector<32x128xbf16>
    %c0_10 = arith.constant 0 : index
    %c0_11 = arith.constant 0 : index
    %15 = vector.load %arg5[%c0_10, %c0_11] : memref<128x32xbf16, #tpu.memory_space<vmem>>, vector<128x32xbf16>
    %c0_12 = arith.constant 0 : index
    %c0_13 = arith.constant 0 : index
    %16 = vector.load %arg8[%c0_12, %c0_13] : memref<128x128xbf16, #tpu.memory_space<vmem>>, vector<128x128xbf16>
    %c0_14 = arith.constant 0 : index
    %c0_15 = arith.constant 0 : index
    %c0_16 = arith.constant 0 : index
    %17 = vector.load %arg4[%c0_14, %c0_15, %c0_16] : memref<1x1x32xf32, #tpu.memory_space<vmem>>, vector<1x1x32xf32>
    %18 = vector.shape_cast %17 : vector<1x1x32xf32> to vector<1x32xf32>
    %cst_17 = arith.constant 0.000000e+00 : f32
    %19 = vector.broadcast %cst_17 : f32 to vector<16x128xf32>
    %20 = vector.extract_strided_slice %10 {offsets = [0, 0], sizes = [16, 32], strides = [1, 1]} : vector<16x128xbf16> to vector<16x32xbf16>
    %21 = vector.extract_strided_slice %12 {offsets = [0, 0], sizes = [32, 32], strides = [1, 1]} : vector<32x128xbf16> to vector<32x32xbf16>
    %22 = vector.extract_strided_slice %14 {offsets = [0, 0], sizes = [32, 32], strides = [1, 1]} : vector<32x128xbf16> to vector<32x32xbf16>
    %cst_18 = arith.constant dense<0.000000e+00> : vector<16x32xf32>
    %23 = tpu.matmul %20, %21, %cst_18 {dimension_numbers = #tpu.dot_dimension_numbers<[1], [1], [0], [0], [0, 0, 1, 0], [], []>} : vector<16x32xbf16>, vector<32x32xbf16>, vector<16x32xf32> -> vector<16x32xf32>
    %cst_19 = arith.constant dense<0.000000e+00> : vector<16x128xf32>
    %24 = tpu.matmul %20, %15, %cst_19 {dimension_numbers = #tpu.dot_dimension_numbers<[1], [1], [0], [0], [0, 0, 1, 0], [], []>} : vector<16x32xbf16>, vector<128x32xbf16>, vector<16x128xf32> -> vector<16x128xf32>
    %c96_i32 = arith.constant 96 : i32
    %25 = tpu.dynamic_rotate %24 by %c96_i32 dim 1 {stride = 1 : si32, stride_dimension = 0 : si32} : vector<16x128xf32>, i32 -> vector<16x128xf32>
    %c16_i32 = arith.constant 16 : i32
    %26 = arith.muli %arg1, %c16_i32 : i32
    %27 = tpu.dynamic_rotate %25 by %26 dim 1 : vector<16x128xf32>, i32 -> vector<16x128xf32>
    %28 = vector.extract_strided_slice %27 {offsets = [0, 0], sizes = [16, 32], strides = [1, 1]} : vector<16x128xf32> to vector<16x32xf32>
    %29 = arith.addf %23, %28 : vector<16x32xf32>
    %cst_20 = arith.constant 0.176776692 : f32
    %30 = vector.broadcast %cst_20 : f32 to vector<16x32xf32>
    %31 = arith.mulf %29, %30 : vector<16x32xf32>
    %32 = vector.broadcast %18 : vector<1x32xf32> to vector<16x32xf32>
    %33 = arith.addf %31, %32 : vector<16x32xf32>
    %cst_21 = arith.constant dense<0xFF800000> : vector<16xf32>
    %34 = vector.multi_reduction <maximumf>, %33, %cst_21 [1] : vector<16x32xf32> to vector<16xf32>
    %35 = vector.shape_cast %34 : vector<16xf32> to vector<16x1xf32>
    %36 = vector.broadcast %35 : vector<16x1xf32> to vector<16x32xf32>
    %37 = arith.subf %33, %36 : vector<16x32xf32>
    %38 = math.exp %37 : vector<16x32xf32>
    %cst_22 = arith.constant dense<0.000000e+00> : vector<16xf32>
    %39 = vector.multi_reduction <add>, %38, %cst_22 [1] : vector<16x32xf32> to vector<16xf32>
    %40 = vector.shape_cast %39 : vector<16xf32> to vector<16x1xf32>
    %41 = arith.truncf %38 : vector<16x32xf32> to vector<16x32xbf16>
    %cst_23 = arith.constant dense<0.000000e+00> : vector<16x32xf32>
    %42 = tpu.matmul %41, %22, %cst_23 {dimension_numbers = #tpu.dot_dimension_numbers<[1], [0], [0], [1], [0, 0, 1, 1], [], []>} : vector<16x32xbf16>, vector<32x32xbf16>, vector<16x32xf32> -> vector<16x32xf32>
    %43 = tpu.reciprocal %40 {approx = true} : vector<16x1xf32> -> vector<16x1xf32>
    %44 = vector.broadcast %43 : vector<16x1xf32> to vector<16x32xf32>
    %45 = arith.mulf %42, %44 : vector<16x32xf32>
    %46 = arith.truncf %45 : vector<16x32xf32> to vector<16x32xbf16>
    %47 = vector.extract_strided_slice %16 {offsets = [0, 0], sizes = [32, 128], strides = [1, 1]} : vector<128x128xbf16> to vector<32x128xbf16>
    %cst_24 = arith.constant dense<0.000000e+00> : vector<16x128xf32>
    %48 = tpu.matmul %46, %47, %cst_24 {dimension_numbers = #tpu.dot_dimension_numbers<[1], [0], [0], [1], [0, 0, 1, 1], [], []>} : vector<16x32xbf16>, vector<32x128xbf16>, vector<16x128xf32> -> vector<16x128xf32>
    %49 = arith.addf %19, %48 : vector<16x128xf32>
    %50 = vector.extract_strided_slice %10 {offsets = [0, 32], sizes = [16, 32], strides = [1, 1]} : vector<16x128xbf16> to vector<16x32xbf16>
    %51 = vector.extract_strided_slice %12 {offsets = [0, 32], sizes = [32, 32], strides = [1, 1]} : vector<32x128xbf16> to vector<32x32xbf16>
    %52 = vector.extract_strided_slice %14 {offsets = [0, 32], sizes = [32, 32], strides = [1, 1]} : vector<32x128xbf16> to vector<32x32xbf16>
    %cst_25 = arith.constant dense<0.000000e+00> : vector<16x32xf32>
    %53 = tpu.matmul %50, %51, %cst_25 {dimension_numbers = #tpu.dot_dimension_numbers<[1], [1], [0], [0], [0, 0, 1, 0], [], []>} : vector<16x32xbf16>, vector<32x32xbf16>, vector<16x32xf32> -> vector<16x32xf32>
    %cst_26 = arith.constant dense<0.000000e+00> : vector<16x128xf32>
    %54 = tpu.matmul %50, %15, %cst_26 {dimension_numbers = #tpu.dot_dimension_numbers<[1], [1], [0], [0], [0, 0, 1, 0], [], []>} : vector<16x32xbf16>, vector<128x32xbf16>, vector<16x128xf32> -> vector<16x128xf32>
    %c96_i32_27 = arith.constant 96 : i32
    %55 = tpu.dynamic_rotate %54 by %c96_i32_27 dim 1 {stride = 1 : si32, stride_dimension = 0 : si32} : vector<16x128xf32>, i32 -> vector<16x128xf32>
    %c16_i32_28 = arith.constant 16 : i32
    %56 = arith.muli %arg1, %c16_i32_28 : i32
    %57 = tpu.dynamic_rotate %55 by %56 dim 1 : vector<16x128xf32>, i32 -> vector<16x128xf32>
    %58 = vector.extract_strided_slice %57 {offsets = [0, 0], sizes = [16, 32], strides = [1, 1]} : vector<16x128xf32> to vector<16x32xf32>
    %59 = arith.addf %53, %58 : vector<16x32xf32>
    %cst_29 = arith.constant 0.176776692 : f32
    %60 = vector.broadcast %cst_29 : f32 to vector<16x32xf32>
    %61 = arith.mulf %59, %60 : vector<16x32xf32>
    %62 = vector.broadcast %18 : vector<1x32xf32> to vector<16x32xf32>
    %63 = arith.addf %61, %62 : vector<16x32xf32>
    %cst_30 = arith.constant dense<0xFF800000> : vector<16xf32>
    %64 = vector.multi_reduction <maximumf>, %63, %cst_30 [1] : vector<16x32xf32> to vector<16xf32>
    %65 = vector.shape_cast %64 : vector<16xf32> to vector<16x1xf32>
    %66 = vector.broadcast %65 : vector<16x1xf32> to vector<16x32xf32>
    %67 = arith.subf %63, %66 : vector<16x32xf32>
    %68 = math.exp %67 : vector<16x32xf32>
    %cst_31 = arith.constant dense<0.000000e+00> : vector<16xf32>
    %69 = vector.multi_reduction <add>, %68, %cst_31 [1] : vector<16x32xf32> to vector<16xf32>
    %70 = vector.shape_cast %69 : vector<16xf32> to vector<16x1xf32>
    %71 = arith.truncf %68 : vector<16x32xf32> to vector<16x32xbf16>
    %cst_32 = arith.constant dense<0.000000e+00> : vector<16x32xf32>
    %72 = tpu.matmul %71, %52, %cst_32 {dimension_numbers = #tpu.dot_dimension_numbers<[1], [0], [0], [1], [0, 0, 1, 1], [], []>} : vector<16x32xbf16>, vector<32x32xbf16>, vector<16x32xf32> -> vector<16x32xf32>
    %73 = tpu.reciprocal %70 {approx = true} : vector<16x1xf32> -> vector<16x1xf32>
    %74 = vector.broadcast %73 : vector<16x1xf32> to vector<16x32xf32>
    %75 = arith.mulf %72, %74 : vector<16x32xf32>
    %76 = arith.truncf %75 : vector<16x32xf32> to vector<16x32xbf16>
    %77 = vector.extract_strided_slice %16 {offsets = [32, 0], sizes = [32, 128], strides = [1, 1]} : vector<128x128xbf16> to vector<32x128xbf16>
    %cst_33 = arith.constant dense<0.000000e+00> : vector<16x128xf32>
    %78 = tpu.matmul %76, %77, %cst_33 {dimension_numbers = #tpu.dot_dimension_numbers<[1], [0], [0], [1], [0, 0, 1, 1], [], []>} : vector<16x32xbf16>, vector<32x128xbf16>, vector<16x128xf32> -> vector<16x128xf32>
    %79 = arith.addf %49, %78 : vector<16x128xf32>
    %80 = vector.extract_strided_slice %10 {offsets = [0, 64], sizes = [16, 32], strides = [1, 1]} : vector<16x128xbf16> to vector<16x32xbf16>
    %81 = vector.extract_strided_slice %12 {offsets = [0, 64], sizes = [32, 32], strides = [1, 1]} : vector<32x128xbf16> to vector<32x32xbf16>
    %82 = vector.extract_strided_slice %14 {offsets = [0, 64], sizes = [32, 32], strides = [1, 1]} : vector<32x128xbf16> to vector<32x32xbf16>
    %cst_34 = arith.constant dense<0.000000e+00> : vector<16x32xf32>
    %83 = tpu.matmul %80, %81, %cst_34 {dimension_numbers = #tpu.dot_dimension_numbers<[1], [1], [0], [0], [0, 0, 1, 0], [], []>} : vector<16x32xbf16>, vector<32x32xbf16>, vector<16x32xf32> -> vector<16x32xf32>
    %cst_35 = arith.constant dense<0.000000e+00> : vector<16x128xf32>
    %84 = tpu.matmul %80, %15, %cst_35 {dimension_numbers = #tpu.dot_dimension_numbers<[1], [1], [0], [0], [0, 0, 1, 0], [], []>} : vector<16x32xbf16>, vector<128x32xbf16>, vector<16x128xf32> -> vector<16x128xf32>
    %c96_i32_36 = arith.constant 96 : i32
    %85 = tpu.dynamic_rotate %84 by %c96_i32_36 dim 1 {stride = 1 : si32, stride_dimension = 0 : si32} : vector<16x128xf32>, i32 -> vector<16x128xf32>
    %c16_i32_37 = arith.constant 16 : i32
    %86 = arith.muli %arg1, %c16_i32_37 : i32
    %87 = tpu.dynamic_rotate %85 by %86 dim 1 : vector<16x128xf32>, i32 -> vector<16x128xf32>
    %88 = vector.extract_strided_slice %87 {offsets = [0, 0], sizes = [16, 32], strides = [1, 1]} : vector<16x128xf32> to vector<16x32xf32>
    %89 = arith.addf %83, %88 : vector<16x32xf32>
    %cst_38 = arith.constant 0.176776692 : f32
    %90 = vector.broadcast %cst_38 : f32 to vector<16x32xf32>
    %91 = arith.mulf %89, %90 : vector<16x32xf32>
    %92 = vector.broadcast %18 : vector<1x32xf32> to vector<16x32xf32>
    %93 = arith.addf %91, %92 : vector<16x32xf32>
    %cst_39 = arith.constant dense<0xFF800000> : vector<16xf32>
    %94 = vector.multi_reduction <maximumf>, %93, %cst_39 [1] : vector<16x32xf32> to vector<16xf32>
    %95 = vector.shape_cast %94 : vector<16xf32> to vector<16x1xf32>
    %96 = vector.broadcast %95 : vector<16x1xf32> to vector<16x32xf32>
    %97 = arith.subf %93, %96 : vector<16x32xf32>
    %98 = math.exp %97 : vector<16x32xf32>
    %cst_40 = arith.constant dense<0.000000e+00> : vector<16xf32>
    %99 = vector.multi_reduction <add>, %98, %cst_40 [1] : vector<16x32xf32> to vector<16xf32>
    %100 = vector.shape_cast %99 : vector<16xf32> to vector<16x1xf32>
    %101 = arith.truncf %98 : vector<16x32xf32> to vector<16x32xbf16>
    %cst_41 = arith.constant dense<0.000000e+00> : vector<16x32xf32>
    %102 = tpu.matmul %101, %82, %cst_41 {dimension_numbers = #tpu.dot_dimension_numbers<[1], [0], [0], [1], [0, 0, 1, 1], [], []>} : vector<16x32xbf16>, vector<32x32xbf16>, vector<16x32xf32> -> vector<16x32xf32>
    %103 = tpu.reciprocal %100 {approx = true} : vector<16x1xf32> -> vector<16x1xf32>
    %104 = vector.broadcast %103 : vector<16x1xf32> to vector<16x32xf32>
    %105 = arith.mulf %102, %104 : vector<16x32xf32>
    %106 = arith.truncf %105 : vector<16x32xf32> to vector<16x32xbf16>
    %107 = vector.extract_strided_slice %16 {offsets = [64, 0], sizes = [32, 128], strides = [1, 1]} : vector<128x128xbf16> to vector<32x128xbf16>
    %cst_42 = arith.constant dense<0.000000e+00> : vector<16x128xf32>
    %108 = tpu.matmul %106, %107, %cst_42 {dimension_numbers = #tpu.dot_dimension_numbers<[1], [0], [0], [1], [0, 0, 1, 1], [], []>} : vector<16x32xbf16>, vector<32x128xbf16>, vector<16x128xf32> -> vector<16x128xf32>
    %109 = arith.addf %79, %108 : vector<16x128xf32>
    %110 = vector.extract_strided_slice %10 {offsets = [0, 96], sizes = [16, 32], strides = [1, 1]} : vector<16x128xbf16> to vector<16x32xbf16>
    %111 = vector.extract_strided_slice %12 {offsets = [0, 96], sizes = [32, 32], strides = [1, 1]} : vector<32x128xbf16> to vector<32x32xbf16>
    %112 = vector.extract_strided_slice %14 {offsets = [0, 96], sizes = [32, 32], strides = [1, 1]} : vector<32x128xbf16> to vector<32x32xbf16>
    %cst_43 = arith.constant dense<0.000000e+00> : vector<16x32xf32>
    %113 = tpu.matmul %110, %111, %cst_43 {dimension_numbers = #tpu.dot_dimension_numbers<[1], [1], [0], [0], [0, 0, 1, 0], [], []>} : vector<16x32xbf16>, vector<32x32xbf16>, vector<16x32xf32> -> vector<16x32xf32>
    %cst_44 = arith.constant dense<0.000000e+00> : vector<16x128xf32>
    %114 = tpu.matmul %110, %15, %cst_44 {dimension_numbers = #tpu.dot_dimension_numbers<[1], [1], [0], [0], [0, 0, 1, 0], [], []>} : vector<16x32xbf16>, vector<128x32xbf16>, vector<16x128xf32> -> vector<16x128xf32>
    %c96_i32_45 = arith.constant 96 : i32
    %115 = tpu.dynamic_rotate %114 by %c96_i32_45 dim 1 {stride = 1 : si32, stride_dimension = 0 : si32} : vector<16x128xf32>, i32 -> vector<16x128xf32>
    %c16_i32_46 = arith.constant 16 : i32
    %116 = arith.muli %arg1, %c16_i32_46 : i32
    %117 = tpu.dynamic_rotate %115 by %116 dim 1 : vector<16x128xf32>, i32 -> vector<16x128xf32>
    %118 = vector.extract_strided_slice %117 {offsets = [0, 0], sizes = [16, 32], strides = [1, 1]} : vector<16x128xf32> to vector<16x32xf32>
    %119 = arith.addf %113, %118 : vector<16x32xf32>
    %cst_47 = arith.constant 0.176776692 : f32
    %120 = vector.broadcast %cst_47 : f32 to vector<16x32xf32>
    %121 = arith.mulf %119, %120 : vector<16x32xf32>
    %122 = vector.broadcast %18 : vector<1x32xf32> to vector<16x32xf32>
    %123 = arith.addf %121, %122 : vector<16x32xf32>
    %cst_48 = arith.constant dense<0xFF800000> : vector<16xf32>
    %124 = vector.multi_reduction <maximumf>, %123, %cst_48 [1] : vector<16x32xf32> to vector<16xf32>
    %125 = vector.shape_cast %124 : vector<16xf32> to vector<16x1xf32>
    %126 = vector.broadcast %125 : vector<16x1xf32> to vector<16x32xf32>
    %127 = arith.subf %123, %126 : vector<16x32xf32>
    %128 = math.exp %127 : vector<16x32xf32>
    %cst_49 = arith.constant dense<0.000000e+00> : vector<16xf32>
    %129 = vector.multi_reduction <add>, %128, %cst_49 [1] : vector<16x32xf32> to vector<16xf32>
    %130 = vector.shape_cast %129 : vector<16xf32> to vector<16x1xf32>
    %131 = arith.truncf %128 : vector<16x32xf32> to vector<16x32xbf16>
    %cst_50 = arith.constant dense<0.000000e+00> : vector<16x32xf32>
    %132 = tpu.matmul %131, %112, %cst_50 {dimension_numbers = #tpu.dot_dimension_numbers<[1], [0], [0], [1], [0, 0, 1, 1], [], []>} : vector<16x32xbf16>, vector<32x32xbf16>, vector<16x32xf32> -> vector<16x32xf32>
    %133 = tpu.reciprocal %130 {approx = true} : vector<16x1xf32> -> vector<16x1xf32>
    %134 = vector.broadcast %133 : vector<16x1xf32> to vector<16x32xf32>
    %135 = arith.mulf %132, %134 : vector<16x32xf32>
    %136 = arith.truncf %135 : vector<16x32xf32> to vector<16x32xbf16>
    %137 = vector.extract_strided_slice %16 {offsets = [96, 0], sizes = [32, 128], strides = [1, 1]} : vector<128x128xbf16> to vector<32x128xbf16>
    %cst_51 = arith.constant dense<0.000000e+00> : vector<16x128xf32>
    %138 = tpu.matmul %136, %137, %cst_51 {dimension_numbers = #tpu.dot_dimension_numbers<[1], [0], [0], [1], [0, 0, 1, 1], [], []>} : vector<16x32xbf16>, vector<32x128xbf16>, vector<16x128xf32> -> vector<16x128xf32>
    %139 = arith.addf %109, %138 : vector<16x128xf32>
    %140 = arith.addf %1, %139 : vector<16x128xf32>
    %c0_52 = arith.constant 0 : index
    %c0_53 = arith.constant 0 : index
    %141 = vector.load %arg13[%c0_52, %c0_53] : memref<1x128xf32, #tpu.memory_space<vmem>>, vector<1x128xf32>
    %c0_54 = arith.constant 0 : index
    %c0_55 = arith.constant 0 : index
    %142 = vector.load %arg14[%c0_54, %c0_55] : memref<1x128xf32, #tpu.memory_space<vmem>>, vector<1x128xf32>
    %cst_56 = arith.constant dense<0.000000e+00> : vector<16xf32>
    %143 = vector.multi_reduction <add>, %140, %cst_56 [1] : vector<16x128xf32> to vector<16xf32>
    %144 = vector.shape_cast %143 : vector<16xf32> to vector<16x1xf32>
    %cst_57 = arith.constant 1.280000e+02 : f32
    %145 = vector.broadcast %cst_57 : f32 to vector<16x1xf32>
    %146 = arith.divf %144, %145 : vector<16x1xf32>
    %147 = vector.broadcast %146 : vector<16x1xf32> to vector<16x128xf32>
    %148 = arith.subf %140, %147 : vector<16x128xf32>
    %149 = arith.mulf %148, %148 : vector<16x128xf32>
    %cst_58 = arith.constant dense<0.000000e+00> : vector<16xf32>
    %150 = vector.multi_reduction <add>, %149, %cst_58 [1] : vector<16x128xf32> to vector<16xf32>
    %151 = vector.shape_cast %150 : vector<16xf32> to vector<16x1xf32>
    %cst_59 = arith.constant 1.280000e+02 : f32
    %152 = vector.broadcast %cst_59 : f32 to vector<16x1xf32>
    %153 = arith.divf %151, %152 : vector<16x1xf32>
    %154 = vector.broadcast %146 : vector<16x1xf32> to vector<16x128xf32>
    %155 = arith.subf %140, %154 : vector<16x128xf32>
    %cst_60 = arith.constant 9.99999974E-6 : f32
    %156 = vector.broadcast %cst_60 : f32 to vector<16x1xf32>
    %157 = arith.addf %153, %156 : vector<16x1xf32>
    %158 = math.rsqrt %157 : vector<16x1xf32>
    %159 = vector.broadcast %158 : vector<16x1xf32> to vector<16x128xf32>
    %160 = arith.mulf %155, %159 : vector<16x128xf32>
    %161 = vector.broadcast %141 : vector<1x128xf32> to vector<16x128xf32>
    %162 = arith.mulf %160, %161 : vector<16x128xf32>
    %163 = vector.broadcast %142 : vector<1x128xf32> to vector<16x128xf32>
    %164 = arith.addf %162, %163 : vector<16x128xf32>
    %165 = arith.truncf %164 : vector<16x128xf32> to vector<16x128xbf16>
    %c0_61 = arith.constant 0 : index
    %c0_62 = arith.constant 0 : index
    %166 = vector.load %arg9[%c0_61, %c0_62] : memref<128x512xbf16, #tpu.memory_space<vmem>>, vector<128x512xbf16>
    %cst_63 = arith.constant dense<0.000000e+00> : vector<16x512xf32>
    %167 = tpu.matmul %165, %166, %cst_63 {dimension_numbers = #tpu.dot_dimension_numbers<[1], [0], [0], [1], [0, 0, 1, 1], [], []>} : vector<16x128xbf16>, vector<128x512xbf16>, vector<16x512xf32> -> vector<16x512xf32>
    %c0_64 = arith.constant 0 : index
    %c0_65 = arith.constant 0 : index
    %168 = vector.load %arg10[%c0_64, %c0_65] : memref<1x512xf32, #tpu.memory_space<vmem>>, vector<1x512xf32>
    %169 = vector.broadcast %168 : vector<1x512xf32> to vector<16x512xf32>
    %170 = arith.addf %167, %169 : vector<16x512xf32>
    %cst_66 = arith.constant 0.000000e+00 : f32
    %171 = vector.broadcast %cst_66 : f32 to vector<16x512xf32>
    %172 = arith.maximumf %170, %171 : vector<16x512xf32>
    %173 = arith.truncf %172 : vector<16x512xf32> to vector<16x512xbf16>
    %c0_67 = arith.constant 0 : index
    %c0_68 = arith.constant 0 : index
    %174 = vector.load %arg11[%c0_67, %c0_68] : memref<512x128xbf16, #tpu.memory_space<vmem>>, vector<512x128xbf16>
    %cst_69 = arith.constant dense<0.000000e+00> : vector<16x128xf32>
    %175 = tpu.matmul %173, %174, %cst_69 {dimension_numbers = #tpu.dot_dimension_numbers<[1], [0], [0], [1], [0, 0, 1, 1], [], []>} : vector<16x512xbf16>, vector<512x128xbf16>, vector<16x128xf32> -> vector<16x128xf32>
    %c0_70 = arith.constant 0 : index
    %c0_71 = arith.constant 0 : index
    %176 = vector.load %arg12[%c0_70, %c0_71] : memref<1x128xf32, #tpu.memory_space<vmem>>, vector<1x128xf32>
    %177 = vector.broadcast %176 : vector<1x128xf32> to vector<16x128xf32>
    %178 = arith.addf %175, %177 : vector<16x128xf32>
    %179 = arith.addf %164, %178 : vector<16x128xf32>
    %c0_72 = arith.constant 0 : index
    %c0_73 = arith.constant 0 : index
    %180 = vector.load %arg15[%c0_72, %c0_73] : memref<1x128xf32, #tpu.memory_space<vmem>>, vector<1x128xf32>
    %c0_74 = arith.constant 0 : index
    %c0_75 = arith.constant 0 : index
    %181 = vector.load %arg16[%c0_74, %c0_75] : memref<1x128xf32, #tpu.memory_space<vmem>>, vector<1x128xf32>
    %cst_76 = arith.constant dense<0.000000e+00> : vector<16xf32>
    %182 = vector.multi_reduction <add>, %179, %cst_76 [1] : vector<16x128xf32> to vector<16xf32>
    %183 = vector.shape_cast %182 : vector<16xf32> to vector<16x1xf32>
    %cst_77 = arith.constant 1.280000e+02 : f32
    %184 = vector.broadcast %cst_77 : f32 to vector<16x1xf32>
    %185 = arith.divf %183, %184 : vector<16x1xf32>
    %186 = vector.broadcast %185 : vector<16x1xf32> to vector<16x128xf32>
    %187 = arith.subf %179, %186 : vector<16x128xf32>
    %188 = arith.mulf %187, %187 : vector<16x128xf32>
    %cst_78 = arith.constant dense<0.000000e+00> : vector<16xf32>
    %189 = vector.multi_reduction <add>, %188, %cst_78 [1] : vector<16x128xf32> to vector<16xf32>
    %190 = vector.shape_cast %189 : vector<16xf32> to vector<16x1xf32>
    %cst_79 = arith.constant 1.280000e+02 : f32
    %191 = vector.broadcast %cst_79 : f32 to vector<16x1xf32>
    %192 = arith.divf %190, %191 : vector<16x1xf32>
    %193 = vector.broadcast %185 : vector<16x1xf32> to vector<16x128xf32>
    %194 = arith.subf %179, %193 : vector<16x128xf32>
    %cst_80 = arith.constant 9.99999974E-6 : f32
    %195 = vector.broadcast %cst_80 : f32 to vector<16x1xf32>
    %196 = arith.addf %192, %195 : vector<16x1xf32>
    %197 = math.rsqrt %196 : vector<16x1xf32>
    %198 = vector.broadcast %197 : vector<16x1xf32> to vector<16x128xf32>
    %199 = arith.mulf %194, %198 : vector<16x128xf32>
    %200 = vector.broadcast %180 : vector<1x128xf32> to vector<16x128xf32>
    %201 = arith.mulf %199, %200 : vector<16x128xf32>
    %202 = vector.broadcast %181 : vector<1x128xf32> to vector<16x128xf32>
    %203 = arith.addf %201, %202 : vector<16x128xf32>
    %c0_81 = arith.constant 0 : index
    %c0_82 = arith.constant 0 : index
    %c0_83 = arith.constant 0 : index
    %204 = vector.load %arg17[%c0_81, %c0_82, %c0_83] : memref<1x16x128xf32, #tpu.memory_space<vmem>>, vector<1x16x128xf32>
    %205 = vector.shape_cast %204 : vector<1x16x128xf32> to vector<16x128xf32>
    %206 = vector.shape_cast %203 : vector<16x128xf32> to vector<1x16x128xf32>
    tpu.vector_store %arg17[%c0_81, %c0_82, %c0_83], %206 {strides = array<i32>} : memref<1x16x128xf32, #tpu.memory_space<vmem>>, vector<1x16x128xf32>,
    return
  }
  func.func @transform_0(%arg0: i32, %arg1: i32) -> (i32, i32, i32) {
    %c0_i32 = arith.constant 0 : i32
    %c0_i32_0 = arith.constant 0 : i32
    return %arg0, %arg1, %c0_i32 : i32, i32, i32
  }
  func.func @transform_1(%arg0: i32, %arg1: i32) -> (i32, i32, i32) {
    %c0_i32 = arith.constant 0 : i32
    %c0_i32_0 = arith.constant 0 : i32
    %c0_i32_1 = arith.constant 0 : i32
    return %arg0, %c0_i32, %c0_i32_0 : i32, i32, i32
  }
  func.func @transform_2(%arg0: i32, %arg1: i32) -> (i32, i32, i32) {
    %c0_i32 = arith.constant 0 : i32
    %c0_i32_0 = arith.constant 0 : i32
    %c0_i32_1 = arith.constant 0 : i32
    return %arg0, %c0_i32, %c0_i32_0 : i32, i32, i32
  }
  func.func @transform_3(%arg0: i32, %arg1: i32) -> (i32, i32) {
    %c0_i32 = arith.constant 0 : i32
    %c0_i32_0 = arith.constant 0 : i32
    %c0_i32_1 = arith.constant 0 : i32
    return %c0_i32, %c0_i32_0 : i32, i32
  }
  func.func @transform_4(%arg0: i32, %arg1: i32) -> (i32, i32) {
    %c0_i32 = arith.constant 0 : i32
    %c0_i32_0 = arith.constant 0 : i32
    %c0_i32_1 = arith.constant 0 : i32
    return %c0_i32, %c0_i32_0 : i32, i32
  }
  func.func @transform_5(%arg0: i32, %arg1: i32) -> (i32, i32) {
    %c0_i32 = arith.constant 0 : i32
    %c0_i32_0 = arith.constant 0 : i32
    %c0_i32_1 = arith.constant 0 : i32
    return %c0_i32, %c0_i32_0 : i32, i32
  }
  func.func @transform_6(%arg0: i32, %arg1: i32) -> (i32, i32) {
    %c0_i32 = arith.constant 0 : i32
    %c0_i32_0 = arith.constant 0 : i32
    %c0_i32_1 = arith.constant 0 : i32
    return %c0_i32, %c0_i32_0 : i32, i32
  }
  func.func @transform_7(%arg0: i32, %arg1: i32) -> (i32, i32) {
    %c0_i32 = arith.constant 0 : i32
    %c0_i32_0 = arith.constant 0 : i32
    %c0_i32_1 = arith.constant 0 : i32
    return %c0_i32, %c0_i32_0 : i32, i32
  }
  func.func @transform_8(%arg0: i32, %arg1: i32) -> (i32, i32) {
    %c0_i32 = arith.constant 0 : i32
    %c0_i32_0 = arith.constant 0 : i32
    %c0_i32_1 = arith.constant 0 : i32
    return %c0_i32, %c0_i32_0 : i32, i32
  }
  func.func @transform_9(%arg0: i32, %arg1: i32) -> (i32, i32) {
    %c0_i32 = arith.constant 0 : i32
    %c0_i32_0 = arith.constant 0 : i32
    %c0_i32_1 = arith.constant 0 : i32
    return %c0_i32, %c0_i32_0 : i32, i32
  }
  func.func @transform_10(%arg0: i32, %arg1: i32) -> (i32, i32) {
    %c0_i32 = arith.constant 0 : i32
    %c0_i32_0 = arith.constant 0 : i32
    %c0_i32_1 = arith.constant 0 : i32
    return %c0_i32, %c0_i32_0 : i32, i32
  }
  func.func @transform_11(%arg0: i32, %arg1: i32) -> (i32, i32) {
    %c0_i32 = arith.constant 0 : i32
    %c0_i32_0 = arith.constant 0 : i32
    %c0_i32_1 = arith.constant 0 : i32
    return %c0_i32, %c0_i32_0 : i32, i32
  }
  func.func @transform_12(%arg0: i32, %arg1: i32) -> (i32, i32) {
    %c0_i32 = arith.constant 0 : i32
    %c0_i32_0 = arith.constant 0 : i32
    %c0_i32_1 = arith.constant 0 : i32
    return %c0_i32, %c0_i32_0 : i32, i32
  }
  func.func @transform_13(%arg0: i32, %arg1: i32) -> (i32, i32) {
    %c0_i32 = arith.constant 0 : i32
    %c0_i32_0 = arith.constant 0 : i32
    %c0_i32_1 = arith.constant 0 : i32
    return %c0_i32, %c0_i32_0 : i32, i32
  }
  func.func @transform_14(%arg0: i32, %arg1: i32) -> (i32, i32) {
    %c0_i32 = arith.constant 0 : i32
    %c0_i32_0 = arith.constant 0 : i32
    %c0_i32_1 = arith.constant 0 : i32
    return %c0_i32, %c0_i32_0 : i32, i32
  }
  func.func @transform_15(%arg0: i32, %arg1: i32) -> (i32, i32, i32) {
    %c0_i32 = arith.constant 0 : i32
    %c0_i32_0 = arith.constant 0 : i32
    return %arg0, %arg1, %c0_i32 : i32, i32, i32
  }
}

module attributes {stable_mosaic.version = 11 : i64} {
  func.func @encoder_layer_kernel(%arg0: i32, %arg1: i32, %arg2: memref<1x16x128xf32, #tpu.memory_space<vmem>>, %arg3: memref<1x32x128xf32, #tpu.memory_space<vmem>>, %arg4: memref<1x1x32xf32, #tpu.memory_space<vmem>>, %arg5: memref<128x32xbf16, #tpu.memory_space<vmem>>, %arg6: memref<128x128xbf16, #tpu.memory_space<vmem>>, %arg7: memref<128x256xbf16, #tpu.memory_space<vmem>>, %arg8: memref<128x128xbf16, #tpu.memory_space<vmem>>, %arg9: memref<128x512xbf16, #tpu.memory_space<vmem>>, %arg10: memref<1x512xf32, #tpu.memory_space<vmem>>, %arg11: memref<512x128xbf16, #tpu.memory_space<vmem>>, %arg12: memref<1x128xf32, #tpu.memory_space<vmem>>, %arg13: memref<1x128xf32, #tpu.memory_space<vmem>>, %arg14: memref<1x128xf32, #tpu.memory_space<vmem>>, %arg15: memref<1x128xf32, #tpu.memory_space<vmem>>, %arg16: memref<1x128xf32, #tpu.memory_space<vmem>>, %arg17: memref<1x16x128xf32, #tpu.memory_space<vmem>>) attributes {dimension_semantics = [#tpu.dimension_semantics<parallel>, #tpu.dimension_semantics<parallel>], iteration_bounds = array<i64: 2, 2>, scalar_prefetch = 0 : i64, scratch_operands = 0 : i64, tpu.core_type = #tpu.core_type<tc>, window_params = [{transform_indices = @transform_0, window_bounds = array<i64: 1, 16, 128>}, {transform_indices = @transform_1, window_bounds = array<i64: 1, 32, 128>}, {transform_indices = @transform_2, window_bounds = array<i64: 1, 1, 32>}, {pipeline_mode = #tpu.pipeline_mode<synchronous>, transform_indices = @transform_3, window_bounds = array<i64: 128, 32>}, {pipeline_mode = #tpu.pipeline_mode<synchronous>, transform_indices = @transform_4, window_bounds = array<i64: 128, 128>}, {pipeline_mode = #tpu.pipeline_mode<synchronous>, transform_indices = @transform_5, window_bounds = array<i64: 128, 256>}, {pipeline_mode = #tpu.pipeline_mode<synchronous>, transform_indices = @transform_6, window_bounds = array<i64: 128, 128>}, {pipeline_mode = #tpu.pipeline_mode<synchronous>, transform_indices = @transform_7, window_bounds = array<i64: 128, 512>}, {pipeline_mode = #tpu.pipeline_mode<synchronous>, transform_indices = @transform_8, window_bounds = array<i64: 1, 512>}, {pipeline_mode = #tpu.pipeline_mode<synchronous>, transform_indices = @transform_9, window_bounds = array<i64: 512, 128>}, {pipeline_mode = #tpu.pipeline_mode<synchronous>, transform_indices = @transform_10, window_bounds = array<i64: 1, 128>}, {pipeline_mode = #tpu.pipeline_mode<synchronous>, transform_indices = @transform_11, window_bounds = array<i64: 1, 128>}, {pipeline_mode = #tpu.pipeline_mode<synchronous>, transform_indices = @transform_12, window_bounds = array<i64: 1, 128>}, {pipeline_mode = #tpu.pipeline_mode<synchronous>, transform_indices = @transform_13, window_bounds = array<i64: 1, 128>}, {pipeline_mode = #tpu.pipeline_mode<synchronous>, transform_indices = @transform_14, window_bounds = array<i64: 1, 128>}, {transform_indices = @transform_15, window_bounds = array<i64: 1, 16, 128>}]} {
    %c0 = arith.constant 0 : index
    %c0_0 = arith.constant 0 : index
    %c0_1 = arith.constant 0 : index
    %0 = vector.load %arg2[%c0, %c0_0, %c0_1] : memref<1x16x128xf32, #tpu.memory_space<vmem>>, vector<1x16x128xf32>
    %1 = vector.shape_cast %0 : vector<1x16x128xf32> to vector<16x128xf32>
    %c0_2 = arith.constant 0 : index
    %c0_3 = arith.constant 0 : index
    %c0_4 = arith.constant 0 : index
    %2 = vector.load %arg3[%c0_2, %c0_3, %c0_4] : memref<1x32x128xf32, #tpu.memory_space<vmem>>, vector<1x32x128xf32>
    %3 = vector.shape_cast %2 : vector<1x32x128xf32> to vector<32x128xf32>
    %4 = arith.truncf %1 : vector<16x128xf32> to vector<16x128xbf16>
    %c0_5 = arith.constant 0 : index
    %c0_6 = arith.constant 0 : index
    %5 = vector.load %arg6[%c0_5, %c0_6] : memref<128x128xbf16, #tpu.memory_space<vmem>>, vector<128x128xbf16>
    %cst = arith.constant dense<0.000000e+00> : vector<16x128xf32>
    %6 = tpu.matmul %4, %5, %cst {dimension_numbers = #tpu.dot_dimension_numbers<[1], [0], [0], [1], [0, 0, 1, 1], [], []>} : vector<16x128xbf16>, vector<128x128xbf16>, vector<16x128xf32> -> vector<16x128xf32>
    %7 = arith.truncf %3 : vector<32x128xf32> to vector<32x128xbf16>
    %c0_7 = arith.constant 0 : index
    %c0_8 = arith.constant 0 : index
    %8 = vector.load %arg7[%c0_7, %c0_8] : memref<128x256xbf16, #tpu.memory_space<vmem>>, vector<128x256xbf16>
    %cst_9 = arith.constant dense<0.000000e+00> : vector<32x256xf32>
    %9 = tpu.matmul %7, %8, %cst_9 {dimension_numbers = #tpu.dot_dimension_numbers<[1], [0], [0], [1], [0, 0, 1, 1], [], []>} : vector<32x128xbf16>, vector<128x256xbf16>, vector<32x256xf32> -> vector<32x256xf32>
    %10 = arith.truncf %6 : vector<16x128xf32> to vector<16x128xbf16>
    %11 = vector.extract_strided_slice %9 {offsets = [0, 0], sizes = [32, 128], strides = [1, 1]} : vector<32x256xf32> to vector<32x128xf32>
    %12 = arith.truncf %11 : vector<32x128xf32> to vector<32x128xbf16>
    %13 = vector.extract_strided_slice %9 {offsets = [0, 128], sizes = [32, 128], strides = [1, 1]} : vector<32x256xf32> to vector<32x128xf32>
    %14 = arith.truncf %13 : vector<32x128xf32> to vector<32x128xbf16>
    %c0_10 = arith.constant 0 : index
    %c0_11 = arith.constant 0 : index
    %15 = vector.load %arg5[%c0_10, %c0_11] : memref<128x32xbf16, #tpu.memory_space<vmem>>, vector<128x32xbf16>
    %c0_12 = arith.constant 0 : index
    %c0_13 = arith.constant 0 : index
    %16 = vector.load %arg8[%c0_12, %c0_13] : memref<128x128xbf16, #tpu.memory_space<vmem>>, vector<128x128xbf16>
    %c0_14 = arith.constant 0 : index
    %c0_15 = arith.constant 0 : index
    %c0_16 = arith.constant 0 : index
    %17 = vector.load %arg4[%c0_14, %c0_15, %c0_16] : memref<1x1x32xf32, #tpu.memory_space<vmem>>, vector<1x1x32xf32>
    %18 = vector.shape_cast %17 : vector<1x1x32xf32> to vector<1x32xf32>
    %cst_17 = arith.constant 0.000000e+00 : f32
    %19 = vector.broadcast %cst_17 : f32 to vector<16x128xf32>
    %20 = vector.extract_strided_slice %10 {offsets = [0, 0], sizes = [16, 32], strides = [1, 1]} : vector<16x128xbf16> to vector<16x32xbf16>
    %21 = vector.extract_strided_slice %12 {offsets = [0, 0], sizes = [32, 32], strides = [1, 1]} : vector<32x128xbf16> to vector<32x32xbf16>
    %22 = vector.extract_strided_slice %14 {offsets = [0, 0], sizes = [32, 32], strides = [1, 1]} : vector<32x128xbf16> to vector<32x32xbf16>
    %cst_18 = arith.constant dense<0.000000e+00> : vector<16x32xf32>
    %23 = tpu.matmul %20, %21, %cst_18 {dimension_numbers = #tpu.dot_dimension_numbers<[1], [1], [0], [0], [0, 0, 1, 0], [], []>} : vector<16x32xbf16>, vector<32x32xbf16>, vector<16x32xf32> -> vector<16x32xf32>
    %cst_19 = arith.constant dense<0.000000e+00> : vector<16x128xf32>
    %24 = tpu.matmul %20, %15, %cst_19 {dimension_numbers = #tpu.dot_dimension_numbers<[1], [1], [0], [0], [0, 0, 1, 0], [], []>} : vector<16x32xbf16>, vector<128x32xbf16>, vector<16x128xf32> -> vector<16x128xf32>
    %c96_i32 = arith.constant 96 : i32
    %25 = tpu.dynamic_rotate %24 by %c96_i32 dim 1 {stride = 1 : si32, stride_dimension = 0 : si32} : vector<16x128xf32>, i32 -> vector<16x128xf32>
    %c16_i32 = arith.constant 16 : i32
    %26 = arith.muli %arg1, %c16_i32 : i32
    %27 = tpu.dynamic_rotate %25 by %26 dim 1 : vector<16x128xf32>, i32 -> vector<16x128xf32>
    %28 = vector.extract_strided_slice %27 {offsets = [0, 0], sizes = [16, 32], strides = [1, 1]} : vector<16x128xf32> to vector<16x32xf32>
    %29 = arith.addf %23, %28 : vector<16x32xf32>
    %cst_20 = arith.constant 0.176776692 : f32
    %30 = vector.broadcast %cst_20 : f32 to vector<16x32xf32>
    %31 = arith.mulf %29, %30 : vector<16x32xf32>
    %32 = vector.broadcast %18 : vector<1x32xf32> to vector<16x32xf32>
    %33 = arith.addf %31, %32 : vector<16x32xf32>
    %cst_21 = arith.constant dense<0xFF800000> : vector<16xf32>
    %34 = vector.multi_reduction <maximumf>, %33, %cst_21 [1] : vector<16x32xf32> to vector<16xf32>
    %35 = vector.shape_cast %34 : vector<16xf32> to vector<16x1xf32>
    %36 = vector.broadcast %35 : vector<16x1xf32> to vector<16x32xf32>
    %37 = arith.subf %33, %36 : vector<16x32xf32>
    %38 = math.exp %37 : vector<16x32xf32>
    %cst_22 = arith.constant dense<0.000000e+00> : vector<16xf32>
    %39 = vector.multi_reduction <add>, %38, %cst_22 [1] : vector<16x32xf32> to vector<16xf32>
    %40 = vector.shape_cast %39 : vector<16xf32> to vector<16x1xf32>
    %41 = arith.truncf %38 : vector<16x32xf32> to vector<16x32xbf16>
    %cst_23 = arith.constant dense<0.000000e+00> : vector<16x32xf32>
    %42 = tpu.matmul %41, %22, %cst_23 {dimension_numbers = #tpu.dot_dimension_numbers<[1], [0], [0], [1], [0, 0, 1, 1], [], []>} : vector<16x32xbf16>, vector<32x32xbf16>, vector<16x32xf32> -> vector<16x32xf32>
    %43 = tpu.reciprocal %40 {approx = true} : vector<16x1xf32> -> vector<16x1xf32>
    %44 = vector.broadcast %43 : vector<16x1xf32> to vector<16x32xf32>
    %45 = arith.mulf %42, %44 : vector<16x32xf32>
    %46 = arith.truncf %45 : vector<16x32xf32> to vector<16x32xbf16>
    %47 = vector.extract_strided_slice %16 {offsets = [0, 0], sizes = [32, 128], strides = [1, 1]} : vector<128x128xbf16> to vector<32x128xbf16>
    %cst_24 = arith.constant dense<0.000000e+00> : vector<16x128xf32>
    %48 = tpu.matmul %46, %47, %cst_24 {dimension_numbers = #tpu.dot_dimension_numbers<[1], [0], [0], [1], [0, 0, 1, 1], [], []>} : vector<16x32xbf16>, vector<32x128xbf16>, vector<16x128xf32> -> vector<16x128xf32>
    %49 = arith.addf %19, %48 : vector<16x128xf32>
    %50 = vector.extract_strided_slice %10 {offsets = [0, 32], sizes = [16, 32], strides = [1, 1]} : vector<16x128xbf16> to vector<16x32xbf16>
    %51 = vector.extract_strided_slice %12 {offsets = [0, 32], sizes = [32, 32], strides = [1, 1]} : vector<32x128xbf16> to vector<32x32xbf16>
    %52 = vector.extract_strided_slice %14 {offsets = [0, 32], sizes = [32, 32], strides = [1, 1]} : vector<32x128xbf16> to vector<32x32xbf16>
    %cst_25 = arith.constant dense<0.000000e+00> : vector<16x32xf32>
    %53 = tpu.matmul %50, %51, %cst_25 {dimension_numbers = #tpu.dot_dimension_numbers<[1], [1], [0], [0], [0, 0, 1, 0], [], []>} : vector<16x32xbf16>, vector<32x32xbf16>, vector<16x32xf32> -> vector<16x32xf32>
    %cst_26 = arith.constant dense<0.000000e+00> : vector<16x128xf32>
    %54 = tpu.matmul %50, %15, %cst_26 {dimension_numbers = #tpu.dot_dimension_numbers<[1], [1], [0], [0], [0, 0, 1, 0], [], []>} : vector<16x32xbf16>, vector<128x32xbf16>, vector<16x128xf32> -> vector<16x128xf32>
    %c96_i32_27 = arith.constant 96 : i32
    %55 = tpu.dynamic_rotate %54 by %c96_i32_27 dim 1 {stride = 1 : si32, stride_dimension = 0 : si32} : vector<16x128xf32>, i32 -> vector<16x128xf32>
    %c16_i32_28 = arith.constant 16 : i32
    %56 = arith.muli %arg1, %c16_i32_28 : i32
    %57 = tpu.dynamic_rotate %55 by %56 dim 1 : vector<16x128xf32>, i32 -> vector<16x128xf32>
    %58 = vector.extract_strided_slice %57 {offsets = [0, 0], sizes = [16, 32], strides = [1, 1]} : vector<16x128xf32> to vector<16x32xf32>
    %59 = arith.addf %53, %58 : vector<16x32xf32>
    %cst_29 = arith.constant 0.176776692 : f32
    %60 = vector.broadcast %cst_29 : f32 to vector<16x32xf32>
    %61 = arith.mulf %59, %60 : vector<16x32xf32>
    %62 = vector.broadcast %18 : vector<1x32xf32> to vector<16x32xf32>
    %63 = arith.addf %61, %62 : vector<16x32xf32>
    %cst_30 = arith.constant dense<0xFF800000> : vector<16xf32>
    %64 = vector.multi_reduction <maximumf>, %63, %cst_30 [1] : vector<16x32xf32> to vector<16xf32>
    %65 = vector.shape_cast %64 : vector<16xf32> to vector<16x1xf32>
    %66 = vector.broadcast %65 : vector<16x1xf32> to vector<16x32xf32>
    %67 = arith.subf %63, %66 : vector<16x32xf32>
    %68 = math.exp %67 : vector<16x32xf32>
    %cst_31 = arith.constant dense<0.000000e+00> : vector<16xf32>
    %69 = vector.multi_reduction <add>, %68, %cst_31 [1] : vector<16x32xf32> to vector<16xf32>
    %70 = vector.shape_cast %69 : vector<16xf32> to vector<16x1xf32>
    %71 = arith.truncf %68 : vector<16x32xf32> to vector<16x32xbf16>
    %cst_32 = arith.constant dense<0.000000e+00> : vector<16x32xf32>
    %72 = tpu.matmul %71, %52, %cst_32 {dimension_numbers = #tpu.dot_dimension_numbers<[1], [0], [0], [1], [0, 0, 1, 1], [], []>} : vector<16x32xbf16>, vector<32x32xbf16>, vector<16x32xf32> -> vector<16x32xf32>
    %73 = tpu.reciprocal %70 {approx = true} : vector<16x1xf32> -> vector<16x1xf32>
    %74 = vector.broadcast %73 : vector<16x1xf32> to vector<16x32xf32>
    %75 = arith.mulf %72, %74 : vector<16x32xf32>
    %76 = arith.truncf %75 : vector<16x32xf32> to vector<16x32xbf16>
    %77 = vector.extract_strided_slice %16 {offsets = [32, 0], sizes = [32, 128], strides = [1, 1]} : vector<128x128xbf16> to vector<32x128xbf16>
    %cst_33 = arith.constant dense<0.000000e+00> : vector<16x128xf32>
    %78 = tpu.matmul %76, %77, %cst_33 {dimension_numbers = #tpu.dot_dimension_numbers<[1], [0], [0], [1], [0, 0, 1, 1], [], []>} : vector<16x32xbf16>, vector<32x128xbf16>, vector<16x128xf32> -> vector<16x128xf32>
    %79 = arith.addf %49, %78 : vector<16x128xf32>
    %80 = vector.extract_strided_slice %10 {offsets = [0, 64], sizes = [16, 32], strides = [1, 1]} : vector<16x128xbf16> to vector<16x32xbf16>
    %81 = vector.extract_strided_slice %12 {offsets = [0, 64], sizes = [32, 32], strides = [1, 1]} : vector<32x128xbf16> to vector<32x32xbf16>
    %82 = vector.extract_strided_slice %14 {offsets = [0, 64], sizes = [32, 32], strides = [1, 1]} : vector<32x128xbf16> to vector<32x32xbf16>
    %cst_34 = arith.constant dense<0.000000e+00> : vector<16x32xf32>
    %83 = tpu.matmul %80, %81, %cst_34 {dimension_numbers = #tpu.dot_dimension_numbers<[1], [1], [0], [0], [0, 0, 1, 0], [], []>} : vector<16x32xbf16>, vector<32x32xbf16>, vector<16x32xf32> -> vector<16x32xf32>
    %cst_35 = arith.constant dense<0.000000e+00> : vector<16x128xf32>
    %84 = tpu.matmul %80, %15, %cst_35 {dimension_numbers = #tpu.dot_dimension_numbers<[1], [1], [0], [0], [0, 0, 1, 0], [], []>} : vector<16x32xbf16>, vector<128x32xbf16>, vector<16x128xf32> -> vector<16x128xf32>
    %c96_i32_36 = arith.constant 96 : i32
    %85 = tpu.dynamic_rotate %84 by %c96_i32_36 dim 1 {stride = 1 : si32, stride_dimension = 0 : si32} : vector<16x128xf32>, i32 -> vector<16x128xf32>
    %c16_i32_37 = arith.constant 16 : i32
    %86 = arith.muli %arg1, %c16_i32_37 : i32
    %87 = tpu.dynamic_rotate %85 by %86 dim 1 : vector<16x128xf32>, i32 -> vector<16x128xf32>
    %88 = vector.extract_strided_slice %87 {offsets = [0, 0], sizes = [16, 32], strides = [1, 1]} : vector<16x128xf32> to vector<16x32xf32>
    %89 = arith.addf %83, %88 : vector<16x32xf32>
    %cst_38 = arith.constant 0.176776692 : f32
    %90 = vector.broadcast %cst_38 : f32 to vector<16x32xf32>
    %91 = arith.mulf %89, %90 : vector<16x32xf32>
    %92 = vector.broadcast %18 : vector<1x32xf32> to vector<16x32xf32>
    %93 = arith.addf %91, %92 : vector<16x32xf32>
    %cst_39 = arith.constant dense<0xFF800000> : vector<16xf32>
    %94 = vector.multi_reduction <maximumf>, %93, %cst_39 [1] : vector<16x32xf32> to vector<16xf32>
    %95 = vector.shape_cast %94 : vector<16xf32> to vector<16x1xf32>
    %96 = vector.broadcast %95 : vector<16x1xf32> to vector<16x32xf32>
    %97 = arith.subf %93, %96 : vector<16x32xf32>
    %98 = math.exp %97 : vector<16x32xf32>
    %cst_40 = arith.constant dense<0.000000e+00> : vector<16xf32>
    %99 = vector.multi_reduction <add>, %98, %cst_40 [1] : vector<16x32xf32> to vector<16xf32>
    %100 = vector.shape_cast %99 : vector<16xf32> to vector<16x1xf32>
    %101 = arith.truncf %98 : vector<16x32xf32> to vector<16x32xbf16>
    %cst_41 = arith.constant dense<0.000000e+00> : vector<16x32xf32>
    %102 = tpu.matmul %101, %82, %cst_41 {dimension_numbers = #tpu.dot_dimension_numbers<[1], [0], [0], [1], [0, 0, 1, 1], [], []>} : vector<16x32xbf16>, vector<32x32xbf16>, vector<16x32xf32> -> vector<16x32xf32>
    %103 = tpu.reciprocal %100 {approx = true} : vector<16x1xf32> -> vector<16x1xf32>
    %104 = vector.broadcast %103 : vector<16x1xf32> to vector<16x32xf32>
    %105 = arith.mulf %102, %104 : vector<16x32xf32>
    %106 = arith.truncf %105 : vector<16x32xf32> to vector<16x32xbf16>
    %107 = vector.extract_strided_slice %16 {offsets = [64, 0], sizes = [32, 128], strides = [1, 1]} : vector<128x128xbf16> to vector<32x128xbf16>
    %cst_42 = arith.constant dense<0.000000e+00> : vector<16x128xf32>
    %108 = tpu.matmul %106, %107, %cst_42 {dimension_numbers = #tpu.dot_dimension_numbers<[1], [0], [0], [1], [0, 0, 1, 1], [], []>} : vector<16x32xbf16>, vector<32x128xbf16>, vector<16x128xf32> -> vector<16x128xf32>
    %109 = arith.addf %79, %108 : vector<16x128xf32>
    %110 = vector.extract_strided_slice %10 {offsets = [0, 96], sizes = [16, 32], strides = [1, 1]} : vector<16x128xbf16> to vector<16x32xbf16>
    %111 = vector.extract_strided_slice %12 {offsets = [0, 96], sizes = [32, 32], strides = [1, 1]} : vector<32x128xbf16> to vector<32x32xbf16>
    %112 = vector.extract_strided_slice %14 {offsets = [0, 96], sizes = [32, 32], strides = [1, 1]} : vector<32x128xbf16> to vector<32x32xbf16>
    %cst_43 = arith.constant dense<0.000000e+00> : vector<16x32xf32>
    %113 = tpu.matmul %110, %111, %cst_43 {dimension_numbers = #tpu.dot_dimension_numbers<[1], [1], [0], [0], [0, 0, 1, 0], [], []>} : vector<16x32xbf16>, vector<32x32xbf16>, vector<16x32xf32> -> vector<16x32xf32>
    %cst_44 = arith.constant dense<0.000000e+00> : vector<16x128xf32>
    %114 = tpu.matmul %110, %15, %cst_44 {dimension_numbers = #tpu.dot_dimension_numbers<[1], [1], [0], [0], [0, 0, 1, 0], [], []>} : vector<16x32xbf16>, vector<128x32xbf16>, vector<16x128xf32> -> vector<16x128xf32>
    %c96_i32_45 = arith.constant 96 : i32
    %115 = tpu.dynamic_rotate %114 by %c96_i32_45 dim 1 {stride = 1 : si32, stride_dimension = 0 : si32} : vector<16x128xf32>, i32 -> vector<16x128xf32>
    %c16_i32_46 = arith.constant 16 : i32
    %116 = arith.muli %arg1, %c16_i32_46 : i32
    %117 = tpu.dynamic_rotate %115 by %116 dim 1 : vector<16x128xf32>, i32 -> vector<16x128xf32>
    %118 = vector.extract_strided_slice %117 {offsets = [0, 0], sizes = [16, 32], strides = [1, 1]} : vector<16x128xf32> to vector<16x32xf32>
    %119 = arith.addf %113, %118 : vector<16x32xf32>
    %cst_47 = arith.constant 0.176776692 : f32
    %120 = vector.broadcast %cst_47 : f32 to vector<16x32xf32>
    %121 = arith.mulf %119, %120 : vector<16x32xf32>
    %122 = vector.broadcast %18 : vector<1x32xf32> to vector<16x32xf32>
    %123 = arith.addf %121, %122 : vector<16x32xf32>
    %cst_48 = arith.constant dense<0xFF800000> : vector<16xf32>
    %124 = vector.multi_reduction <maximumf>, %123, %cst_48 [1] : vector<16x32xf32> to vector<16xf32>
    %125 = vector.shape_cast %124 : vector<16xf32> to vector<16x1xf32>
    %126 = vector.broadcast %125 : vector<16x1xf32> to vector<16x32xf32>
    %127 = arith.subf %123, %126 : vector<16x32xf32>
    %128 = math.exp %127 : vector<16x32xf32>
    %cst_49 = arith.constant dense<0.000000e+00> : vector<16xf32>
    %129 = vector.multi_reduction <add>, %128, %cst_49 [1] : vector<16x32xf32> to vector<16xf32>
    %130 = vector.shape_cast %129 : vector<16xf32> to vector<16x1xf32>
    %131 = arith.truncf %128 : vector<16x32xf32> to vector<16x32xbf16>
    %cst_50 = arith.constant dense<0.000000e+00> : vector<16x32xf32>
    %132 = tpu.matmul %131, %112, %cst_50 {dimension_numbers = #tpu.dot_dimension_numbers<[1], [0], [0], [1], [0, 0, 1, 1], [], []>} : vector<16x32xbf16>, vector<32x32xbf16>, vector<16x32xf32> -> vector<16x32xf32>
    %133 = tpu.reciprocal %130 {approx = true} : vector<16x1xf32> -> vector<16x1xf32>
    %134 = vector.broadcast %133 : vector<16x1xf32> to vector<16x32xf32>
    %135 = arith.mulf %132, %134 : vector<16x32xf32>
    %136 = arith.truncf %135 : vector<16x32xf32> to vector<16x32xbf16>
    %137 = vector.extract_strided_slice %16 {offsets = [96, 0], sizes = [32, 128], strides = [1, 1]} : vector<128x128xbf16> to vector<32x128xbf16>
    %cst_51 = arith.constant dense<0.000000e+00> : vector<16x128xf32>
    %138 = tpu.matmul %136, %137, %cst_51 {dimension_numbers = #tpu.dot_dimension_numbers<[1], [0], [0], [1], [0, 0, 1, 1], [], []>} : vector<16x32xbf16>, vector<32x128xbf16>, vector<16x128xf32> -> vector<16x128xf32>
    %139 = arith.addf %109, %138 : vector<16x128xf32>
    %140 = arith.addf %1, %139 : vector<16x128xf32>
    %c0_52 = arith.constant 0 : index
    %c0_53 = arith.constant 0 : index
    %141 = vector.load %arg13[%c0_52, %c0_53] : memref<1x128xf32, #tpu.memory_space<vmem>>, vector<1x128xf32>
    %c0_54 = arith.constant 0 : index
    %c0_55 = arith.constant 0 : index
    %142 = vector.load %arg14[%c0_54, %c0_55] : memref<1x128xf32, #tpu.memory_space<vmem>>, vector<1x128xf32>
    %cst_56 = arith.constant dense<0.000000e+00> : vector<16xf32>
    %143 = vector.multi_reduction <add>, %140, %cst_56 [1] : vector<16x128xf32> to vector<16xf32>
    %144 = vector.shape_cast %143 : vector<16xf32> to vector<16x1xf32>
    %cst_57 = arith.constant 1.280000e+02 : f32
    %145 = vector.broadcast %cst_57 : f32 to vector<16x1xf32>
    %146 = arith.divf %144, %145 : vector<16x1xf32>
    %147 = vector.broadcast %146 : vector<16x1xf32> to vector<16x128xf32>
    %148 = arith.subf %140, %147 : vector<16x128xf32>
    %149 = arith.mulf %148, %148 : vector<16x128xf32>
    %cst_58 = arith.constant dense<0.000000e+00> : vector<16xf32>
    %150 = vector.multi_reduction <add>, %149, %cst_58 [1] : vector<16x128xf32> to vector<16xf32>
    %151 = vector.shape_cast %150 : vector<16xf32> to vector<16x1xf32>
    %cst_59 = arith.constant 1.280000e+02 : f32
    %152 = vector.broadcast %cst_59 : f32 to vector<16x1xf32>
    %153 = arith.divf %151, %152 : vector<16x1xf32>
    %154 = vector.broadcast %146 : vector<16x1xf32> to vector<16x128xf32>
    %155 = arith.subf %140, %154 : vector<16x128xf32>
    %cst_60 = arith.constant 9.99999974E-6 : f32
    %156 = vector.broadcast %cst_60 : f32 to vector<16x1xf32>
    %157 = arith.addf %153, %156 : vector<16x1xf32>
    %158 = math.rsqrt %157 : vector<16x1xf32>
    %159 = vector.broadcast %158 : vector<16x1xf32> to vector<16x128xf32>
    %160 = arith.mulf %155, %159 : vector<16x128xf32>
    %161 = vector.broadcast %141 : vector<1x128xf32> to vector<16x128xf32>
    %162 = arith.mulf %160, %161 : vector<16x128xf32>
    %163 = vector.broadcast %142 : vector<1x128xf32> to vector<16x128xf32>
    %164 = arith.addf %162, %163 : vector<16x128xf32>
    %165 = arith.truncf %164 : vector<16x128xf32> to vector<16x128xbf16>
    %c0_61 = arith.constant 0 : index
    %c0_62 = arith.constant 0 : index
    %166 = vector.load %arg9[%c0_61, %c0_62] : memref<128x512xbf16, #tpu.memory_space<vmem>>, vector<128x512xbf16>
    %cst_63 = arith.constant dense<0.000000e+00> : vector<16x512xf32>
    %167 = tpu.matmul %165, %166, %cst_63 {dimension_numbers = #tpu.dot_dimension_numbers<[1], [0], [0], [1], [0, 0, 1, 1], [], []>} : vector<16x128xbf16>, vector<128x512xbf16>, vector<16x512xf32> -> vector<16x512xf32>
    %c0_64 = arith.constant 0 : index
    %c0_65 = arith.constant 0 : index
    %168 = vector.load %arg10[%c0_64, %c0_65] : memref<1x512xf32, #tpu.memory_space<vmem>>, vector<1x512xf32>
    %169 = vector.broadcast %168 : vector<1x512xf32> to vector<16x512xf32>
    %170 = arith.addf %167, %169 : vector<16x512xf32>
    %cst_66 = arith.constant 0.000000e+00 : f32
    %171 = vector.broadcast %cst_66 : f32 to vector<16x512xf32>
    %172 = arith.maximumf %170, %171 : vector<16x512xf32>
    %173 = arith.truncf %172 : vector<16x512xf32> to vector<16x512xbf16>
    %c0_67 = arith.constant 0 : index
    %c0_68 = arith.constant 0 : index
    %174 = vector.load %arg11[%c0_67, %c0_68] : memref<512x128xbf16, #tpu.memory_space<vmem>>, vector<512x128xbf16>
    %cst_69 = arith.constant dense<0.000000e+00> : vector<16x128xf32>
    %175 = tpu.matmul %173, %174, %cst_69 {dimension_numbers = #tpu.dot_dimension_numbers<[1], [0], [0], [1], [0, 0, 1, 1], [], []>} : vector<16x512xbf16>, vector<512x128xbf16>, vector<16x128xf32> -> vector<16x128xf32>
    %c0_70 = arith.constant 0 : index
    %c0_71 = arith.constant 0 : index
    %176 = vector.load %arg12[%c0_70, %c0_71] : memref<1x128xf32, #tpu.memory_space<vmem>>, vector<1x128xf32>
    %177 = vector.broadcast %176 : vector<1x128xf32> to vector<16x128xf32>
    %178 = arith.addf %175, %177 : vector<16x128xf32>
    %179 = arith.addf %164, %178 : vector<16x128xf32>
    %c0_72 = arith.constant 0 : index
    %c0_73 = arith.constant 0 : index
    %180 = vector.load %arg15[%c0_72, %c0_73] : memref<1x128xf32, #tpu.memory_space<vmem>>, vector<1x128xf32>
    %c0_74 = arith.constant 0 : index
    %c0_75 = arith.constant 0 : index
    %181 = vector.load %arg16[%c0_74, %c0_75] : memref<1x128xf32, #tpu.memory_space<vmem>>, vector<1x128xf32>
    %cst_76 = arith.constant dense<0.000000e+00> : vector<16xf32>
    %182 = vector.multi_reduction <add>, %179, %cst_76 [1] : vector<16x128xf32> to vector<16xf32>
    %183 = vector.shape_cast %182 : vector<16xf32> to vector<16x1xf32>
    %cst_77 = arith.constant 1.280000e+02 : f32
    %184 = vector.broadcast %cst_77 : f32 to vector<16x1xf32>
    %185 = arith.divf %183, %184 : vector<16x1xf32>
    %186 = vector.broadcast %185 : vector<16x1xf32> to vector<16x128xf32>
    %187 = arith.subf %179, %186 : vector<16x128xf32>
    %188 = arith.mulf %187, %187 : vector<16x128xf32>
    %cst_78 = arith.constant dense<0.000000e+00> : vector<16xf32>
    %189 = vector.multi_reduction <add>, %188, %cst_78 [1] : vector<16x128xf32> to vector<16xf32>
    %190 = vector.shape_cast %189 : vector<16xf32> to vector<16x1xf32>
    %cst_79 = arith.constant 1.280000e+02 : f32
    %191 = vector.broadcast %cst_79 : f32 to vector<16x1xf32>
    %192 = arith.divf %190, %191 : vector<16x1xf32>
    %193 = vector.broadcast %185 : vector<16x1xf32> to vector<16x128xf32>
    %194 = arith.subf %179, %193 : vector<16x128xf32>
    %cst_80 = arith.constant 9.99999974E-6 : f32
    %195 = vector.broadcast %cst_80 : f32 to vector<16x1xf32>
    %196 = arith.addf %192, %195 : vector<16x1xf32>
    %197 = math.rsqrt %196 : vector<16x1xf32>
    %198 = vector.broadcast %197 : vector<16x1xf32> to vector<16x128xf32>
    %199 = arith.mulf %194, %198 : vector<16x128xf32>
    %200 = vector.broadcast %180 : vector<1x128xf32> to vector<16x128xf32>
    %201 = arith.mulf %199, %200 : vector<16x128xf32>
    %202 = vector.broadcast %181 : vector<1x128xf32> to vector<16x128xf32>
    %203 = arith.addf %201, %202 : vector<16x128xf32>
    %c0_81 = arith.constant 0 : index
    %c0_82 = arith.constant 0 : index
    %c0_83 = arith.constant 0 : index
    %204 = vector.load %arg17[%c0_81, %c0_82, %c0_83] : memref<1x16x128xf32, #tpu.memory_space<vmem>>, vector<1x16x128xf32>
    %205 = vector.shape_cast %204 : vector<1x16x128xf32> to vector<16x128xf32>
    %206 = vector.shape_cast %203 : vector<16x128xf32> to vector<1x16x128xf32>
    tpu.vector_store %arg17[%c0_81, %c0_82, %c0_83], %206 {strides = array<i32>} : memref<1x16x128xf32, #tpu.memory_space<vmem>>, vector<1x16x128xf32>,
    return
  }
  func.func @transform_0(%arg0: i32, %arg1: i32) -> (i32, i32, i32) {
    %c0_i32 = arith.constant 0 : i32
    %c0_i32_0 = arith.constant 0 : i32
    return %arg0, %arg1, %c0_i32 : i32, i32, i32
  }
  func.func @transform_1(%arg0: i32, %arg1: i32) -> (i32, i32, i32) {
    %c0_i32 = arith.constant 0 : i32
    %c0_i32_0 = arith.constant 0 : i32
    %c0_i32_1 = arith.constant 0 : i32
    return %arg0, %c0_i32, %c0_i32_0 : i32, i32, i32
  }
  func.func @transform_2(%arg0: i32, %arg1: i32) -> (i32, i32, i32) {
    %c0_i32 = arith.constant 0 : i32
    %c0_i32_0 = arith.constant 0 : i32
    %c0_i32_1 = arith.constant 0 : i32
    return %arg0, %c0_i32, %c0_i32_0 : i32, i32, i32
  }
  func.func @transform_3(%arg0: i32, %arg1: i32) -> (i32, i32) {
    %c0_i32 = arith.constant 0 : i32
    %c0_i32_0 = arith.constant 0 : i32
    %c0_i32_1 = arith.constant 0 : i32
    return %c0_i32, %c0_i32_0 : i32, i32
  }
  func.func @transform_4(%arg0: i32, %arg1: i32) -> (i32, i32) {
    %c0_i32 = arith.constant 0 : i32
    %c0_i32_0 = arith.constant 0 : i32
    %c0_i32_1 = arith.constant 0 : i32
    return %c0_i32, %c0_i32_0 : i32, i32
  }
  func.func @transform_5(%arg0: i32, %arg1: i32) -> (i32, i32) {
    %c0_i32 = arith.constant 0 : i32
    %c0_i32_0 = arith.constant 0 : i32
    %c0_i32_1 = arith.constant 0 : i32
    return %c0_i32, %c0_i32_0 : i32, i32
  }
  func.func @transform_6(%arg0: i32, %arg1: i32) -> (i32, i32) {
    %c0_i32 = arith.constant 0 : i32
    %c0_i32_0 = arith.constant 0 : i32
    %c0_i32_1 = arith.constant 0 : i32
    return %c0_i32, %c0_i32_0 : i32, i32
  }
  func.func @transform_7(%arg0: i32, %arg1: i32) -> (i32, i32) {
    %c0_i32 = arith.constant 0 : i32
    %c0_i32_0 = arith.constant 0 : i32
    %c0_i32_1 = arith.constant 0 : i32
    return %c0_i32, %c0_i32_0 : i32, i32
  }
  func.func @transform_8(%arg0: i32, %arg1: i32) -> (i32, i32) {
    %c0_i32 = arith.constant 0 : i32
    %c0_i32_0 = arith.constant 0 : i32
    %c0_i32_1 = arith.constant 0 : i32
    return %c0_i32, %c0_i32_0 : i32, i32
  }
  func.func @transform_9(%arg0: i32, %arg1: i32) -> (i32, i32) {
    %c0_i32 = arith.constant 0 : i32
    %c0_i32_0 = arith.constant 0 : i32
    %c0_i32_1 = arith.constant 0 : i32
    return %c0_i32, %c0_i32_0 : i32, i32
  }
  func.func @transform_10(%arg0: i32, %arg1: i32) -> (i32, i32) {
    %c0_i32 = arith.constant 0 : i32
    %c0_i32_0 = arith.constant 0 : i32
    %c0_i32_1 = arith.constant 0 : i32
    return %c0_i32, %c0_i32_0 : i32, i32
  }
  func.func @transform_11(%arg0: i32, %arg1: i32) -> (i32, i32) {
    %c0_i32 = arith.constant 0 : i32
    %c0_i32_0 = arith.constant 0 : i32
    %c0_i32_1 = arith.constant 0 : i32
    return %c0_i32, %c0_i32_0 : i32, i32
  }
  func.func @transform_12(%arg0: i32, %arg1: i32) -> (i32, i32) {
    %c0_i32 = arith.constant 0 : i32
    %c0_i32_0 = arith.constant 0 : i32
    %c0_i32_1 = arith.constant 0 : i32
    return %c0_i32, %c0_i32_0 : i32, i32
  }
  func.func @transform_13(%arg0: i32, %arg1: i32) -> (i32, i32) {
    %c0_i32 = arith.constant 0 : i32
    %c0_i32_0 = arith.constant 0 : i32
    %c0_i32_1 = arith.constant 0 : i32
    return %c0_i32, %c0_i32_0 : i32, i32
  }
  func.func @transform_14(%arg0: i32, %arg1: i32) -> (i32, i32) {
    %c0_i32 = arith.constant 0 : i32
    %c0_i32_0 = arith.constant 0 : i32
    %c0_i32_1 = arith.constant 0 : i32
    return %c0_i32, %c0_i32_0 : i32, i32
  }
  func.func @transform_15(%arg0: i32, %arg1: i32) -> (i32, i32, i32) {
    %c0_i32 = arith.constant 0 : i32
    %c0_i32_0 = arith.constant 0 : i32
    return %arg0, %arg1, %c0_i32 : i32, i32, i32
  }
}

</mosaic_0001>

<bundles_post_ra>
// kernel: encoder_forward.3
= control target key start
LH: loop header
LB: loop body
LE: loop exit
PB: predicated region body
PF: predicated region fallthrough
CT: control target
= control target key end

     0   :  { %s4480_s0 = inlined_call_operand.vmem [shape: f32[2,32,128], index: 0, kind: input, shape index: {}, may-alias: {0,1}]   ;;  %s4481_s1 = inlined_call_operand.vmem [shape: f32[2,32,128], index: 1, kind: input, shape index: {}, may-alias: {0,1}]   ;;  %s4482_s2 = inlined_call_operand.vmem [shape: f32[2,1,32], index: 2, kind: input, shape index: {}]   ;;  %s4483_s3 = inlined_call_operand.vmem [shape: bf16[128,32], index: 3, kind: input, shape index: {}]   ;;  %s4484_s4 = inlined_call_operand.vmem [shape: bf16[128,128], index: 4, kind: input, shape index: {}]   ;;  %s4485_s5 = inlined_call_operand.vmem [shape: bf16[128,256], index: 5, kind: input, shape index: {}]   ;;  %s4486_s6 = inlined_call_operand.vmem [shape: bf16[128,128], index: 6, kind: input, shape index: {}]   ;;  %s4487_s7 = inlined_call_operand.vmem [shape: bf16[128,512], index: 7, kind: input, shape index: {}]   ;;  %s4488_s8 = inlined_call_operand.vmem [shape: f32[1,512], index: 8, kind: input, shape index: {}]   ;;  %s4489_s9 = inlined_call_operand.vmem [shape: bf16[512,128], index: 9, kind: input, shape index: {}]   ;;  %s4490_s10 = inlined_call_operand.vmem [shape: f32[1,128], index: 10, kind: input, shape index: {}]   ;;  %s4491_s11 = inlined_call_operand.vmem [shape: f32[1,128], index: 11, kind: input, shape index: {}]   ;;  %s4492_s12 = inlined_call_operand.vmem [shape: f32[1,128], index: 12, kind: input, shape index: {}]   ;;  %s4493_s13 = inlined_call_operand.vmem [shape: f32[1,128], index: 13, kind: input, shape index: {}]   ;;  %s4494_s14 = inlined_call_operand.vmem [shape: f32[1,128], index: 14, kind: input, shape index: {}]   ;;  %s4495_s15 = inlined_call_operand.hbm [shape: f32[2,32,128], index: 15, kind: output, shape index: {}]  }
   0x1   :  { %4508 = sst [smem:[#allocation15_spill]] %s4480_s0 }
   0x2   :  { %4509 = sst [smem:[#allocation16_spill]] %s4494_s14 }
   0x3   :  { %4510 = sst [smem:[#allocation17_spill]] %s4495_s15 }
   0x4   :  { %20 = vsyncpa [#allocation3], 0 }
   0x5   :  { %22 = vsyncpa [#allocation3 + $0x1], 0  ;;  %s3671_s18 = smov 0   ;;  %s3673_s19 = smov 0  }
   0x6   :  { %s3675_s20 = smov 0   ;;  %s3677_s21 = smov 0  }
   0x7   :  { %s3679_s22 = smov 0   ;;  %s3681_s23 = smov 0  }
   0x8   :  { %s3683_s24 = smov 0   ;;  %s3685_s25 = smov 0  }
   0x9 LB: > { %4511 = sst [smem:[#allocation5_spill]] %s3550_s18  ;;  %s2767_s26 = sadd.s32 4294967295, %s3578_s25   ;;  %s3578_s25 = sphi %s3685_s25, %s28_s25   ;;  %s3574_s24 = sphi %s3683_s24, %s4535_s24   ;;  %s3570_s23 = sphi %s3681_s23, %s4534_s23   ;;  %s3566_s22 = sphi %s3679_s22, %s4533_s22   ;;  %s3562_s21 = sphi %s3677_s21, %s4532_s21   ;;  %s3558_s20 = sphi %s3675_s20, %s4531_s20   ;;  %s3554_s19 = sphi %s3673_s19, %s4537_s19   ;;  %s3550_s18 = sphi %s3671_s18, %s4536_s18  }
   0xa   : > { %4512 = sst [smem:[#allocation6_spill]] %s3558_s20  ;;  %s2768_s27 = sadd.s32 4294967294, %s3578_s25  }
   0xb   : > { %4513 = sst [smem:[#allocation7_spill]] %s3570_s23  ;;  %s37_s28 = sadd.s32 1, %s3570_s23 }
   0xc   : > { %4514 = sst [smem:[#allocation8_spill]] %s3574_s24  ;;  %p38_p0 = scmp.ge.s32.totalorder %s37_s28, 2 }
   0xd   : > { %4515 = sst [smem:[#allocation9_spill]] %s3578_s25  ;;  %s40_s29 = sadd.s32 1, %s3574_s24 }
   0xe   : > { %p391_p1 = scmp.ne.s32.totalorder %s3558_s20, %s3554_s19  ;;  %p392_p2 = scmp.eq.s32.totalorder %s2767_s26, 3 }
   0xf   : > { %s4539_s28 = smov (%p38_p0, %s37_s28), 0  ;;  %s4541_s29 = smov (!%p38_p0, %s40_s29), %s3574_s24 }
  0x10   : > { %4516 = sst [smem:[#allocation10_spill]] %s4539_s28  ;;  %s377_s30 = ssub.s32 %s3570_s23, %s4539_s28 }
  0x11   : > { %p3722_p3 = por %p392_p2, %p391_p1  ;;  %p42_p4 = scmp.ge.s32.totalorder %s4541_s29, 2 }
  0x12   : > { %p397_p5 = scmp.ne.s32.totalorder %s3554_s19, %s3550_s18  ;;  %p398_p6 = scmp.eq.s32.totalorder %s2768_s27, 3 }
  0x13   : > { %s4517_s16 = scalar_select %p3722_p3, 1, 0 }
  0x14   : > { %p2771_p7 = scmp.ge.s32.totalorder %s3578_s25, 1  ;;  %s4543_s29 = smov (%p42_p4, %s4541_s29), 0 }
  0x15   : > { %4518 = sst [smem:[#allocation11_spill]] %s4517_s16  ;;  %p3731_p8 = por %p398_p6, %p397_p5 }
  0x16   : > { %4519 = sst [smem:[#allocation12_spill]] %s4543_s29  ;;  %p479_p9 = scmp.lt.s32.totalorder %s3578_s25, 5 }
  0x17   : > { %s4520_s17 = scalar_select %p3731_p8, 1, 0 }
  0x18   : > { %s376_s26 = ssub.s32 %s3574_s24, %s4543_s29  ;;  %s381_s15 = sadd.s32 1, %s3558_s20 }
  0x19   : > { %4521 = sst [smem:[#allocation13_spill]] %s4520_s17  ;;  %s378_s14 = sor.u32 %s377_s30, %s376_s26 }
  0x1a   : > { %p480_p10 = pnand %p2771_p7, %p479_p9  ;;  %p379_p11 = scmp.eq.s32.totalorder %s378_s14, 0 }
  0x1b   : > { %v3314_v0 = vld [vmem:[%s4484_s4] sm:$0xff] (!%p480_p10)   ;;  %v3580_v1 = vmov (!%p480_p10), 0.0   ;;  %vm3581_vm0 = vmmov (!%p480_p10), 0   ;;  %v3318_v4 = vld [vmem:[%s4484_s4 + $0x8] sm:$0xff] (!%p480_p10)   ;;  %s3759_s18 = sshll.u32 (!%p480_p10), %s3562_s21, 1  ;;  %p540_p12 = scmp.lt.s32.totalorder (!%p480_p10), %s3566_s22, 1 }
  0x1c   : > { %s3740_s28 = scalar_select %p379_p11, %s3558_s20, %s381_s15  }
  0x1d   : > { %483 = sbr.rel (%p480_p10) target bundleno = 4867 (0x1303), region = 80  ;;  %3037 = vmatprep.subr.bf16.mxu0 (!%p480_p10), %v3580_v1  ;;  %v3315_v2 = vld [vmem:[%s4485_s5 + $0x4] ss:$8 sps:$4 sm:$0xff] (!%p480_p10)   ;;  %v3317_v3 = vld [vmem:[%s4485_s5] ss:$8 sps:$4 sm:$0xff] (!%p480_p10)   ;;  %3053 = vmatprep.mubr.msk.bf16.mxu0 (!%p480_p10), %vm3581_vm0, %v3580_v1  ;;  %v3582_v7 = vmov (!%p480_p10), 0  }
  0x1e   : > { %4522 = sst [smem:[#allocation14_spill]] %s3740_s28  ;;  %3038 = vmatpush3.bf16.msra.mxu0 (!%p480_p10), %v3314_v0  ;;  %769 = vmatprep.subr.bf16.mxu1 (!%p480_p10), %v3315_v2  ;;  %v3319_v5 = vld [vmem:[%s4485_s5 + $0x14] ss:$8 sps:$4 sm:$0xff] (!%p480_p10)   ;;  %v3321_v6 = vld [vmem:[%s4485_s5 + $0x10] ss:$8 sps:$4 sm:$0xff] (!%p480_p10)   ;;  %p542_p13 = scmp.lt.s32.totalorder (!%p480_p10), %s3759_s18, 3 }
  0x1f   : > { %3039 = vmatprep.subr.bf16.mxu0 (!%p480_p10), %v3580_v1  ;;  %770 = vmatpush1.bf16.msra.mxu1 (!%p480_p10), %v3317_v3  ;;  %v3322_v8 = vld [vmem:[%s4484_s4 + $0x10] sm:$0xff] (!%p480_p10)   ;;  %v3323_v9 = vld [vmem:[%s4485_s5 + $0x24] ss:$8 sps:$4 sm:$0xff] (!%p480_p10)   ;;  %v3325_v10 = vld [vmem:[%s4485_s5 + $0x20] ss:$8 sps:$4 sm:$0xff] (!%p480_p10)   ;;  %s4523_s0 = sld [smem:[#allocation15_spill]] (!%p480_p10) }
  0x20   : > { %801 = vmatprep.mubr.bf16.mxu1 (!%p480_p10), %v3582_v7  ;;  %771 = vmatprep.subr.bf16.mxu1 (!%p480_p10), %v3319_v5  ;;  %v3327_v11 = vld [vmem:[%s4485_s5 + $0x34] ss:$8 sps:$4 sm:$0xff] (!%p480_p10)   ;;  %v3329_v13 = vld [vmem:[%s4485_s5 + $0x30] ss:$8 sps:$4 sm:$0xff] (!%p480_p10)   ;;  %v3331_v14 = vld [vmem:[%s4485_s5 + $0x44] ss:$8 sps:$4 sm:$0xff] (!%p480_p10)  }
  0x21   : > { %v3326_v12 = vld [vmem:[%s4484_s4 + $0x18] sm:$0xff] (!%p480_p10)   ;;  %v3330_v15 = vld [vmem:[%s4484_s4 + $0x20] sm:$0xff] (!%p480_p10)   ;;  %v3334_v18 = vld [vmem:[%s4484_s4 + $0x28] sm:$0xff] (!%p480_p10)   ;;  %vm900_vm1 = vcmask (!%p480_p10), 261120   ;;  %s3583_s26 = smov (!%p480_p10), 352   ;;  %s3586_s16 = smov (!%p480_p10), 64  }
  0x22   : > { %3040 = vmatpush3.bf16.msra.mxu0 (!%p480_p10), %v3318_v4  ;;  %v3333_v16 = vld [vmem:[%s4485_s5 + $0x40] ss:$8 sps:$4 sm:$0xff] (!%p480_p10)   ;;  %v3335_v17 = vld [vmem:[%s4485_s5 + $0x54] ss:$8 sps:$4 sm:$0xff] (!%p480_p10)   ;;  %v3337_v19 = vld [vmem:[%s4485_s5 + $0x50] ss:$8 sps:$4 sm:$0xff] (!%p480_p10)  }
  0x23   : > { %3041 = vmatprep.subr.bf16.mxu0 (!%p480_p10), %v3580_v1  ;;  %772 = vmatpush1.bf16.msra.mxu1 (!%p480_p10), %v3321_v6  ;;  %v3339_v20 = vld [vmem:[%s4485_s5 + $0x64] ss:$8 sps:$4 sm:$0xff] (!%p480_p10)   ;;  %v3338_v21 = vld [vmem:[%s4484_s4 + $0x30] sm:$0xff] (!%p480_p10)   ;;  %v3341_v22 = vld [vmem:[%s4485_s5 + $0x60] ss:$8 sps:$4 sm:$0xff] (!%p480_p10)   ;;  %s2907_s14 = sshll.u32 (!%p480_p10), %s3566_s22, 2 }
  0x24   : > { %s3783_s27 = scalar_select %p540_p12, %s3566_s22, 1  ;;  %773 = vmatprep.subr.bf16.mxu1 %v3323_v9  ;;  %v3342_v23 = vld [vmem:[%s4484_s4 + $0x38] sm:$0xff]   ;;  %v3346_v31 = vld [vmem:[%s4483_s3] sm:$0xff]   ;;  %v3347_v36 = vld [vmem:[%s4483_s3 + $0x8] sm:$0xff]  }
  0x25   : > { %s543_s17 = scalar_select %p542_p13, %s3759_s18, 3  ;;  %v3343_v24 = vld [vmem:[%s4485_s5 + $0x74] ss:$8 sps:$4 sm:$0xff]   ;;  %v3345_v26 = vld [vmem:[%s4485_s5 + $0x70] ss:$8 sps:$4 sm:$0xff]   ;;  %v3857_v35 = vsel %vm900_vm1, %v3346_v31, 0 }
  0x26   : > { %3042 = vmatpush3.bf16.msra.mxu0 %v3322_v8  ;;  %s2774_s30 = sshll.u32 %s3783_s27, 2  ;;  %s2911_s29 = sshll.u32 %s3783_s27, 5  ;;  %v3348_v37 = vld [vmem:[%s4483_s3 + $0x10] sm:$0xff]   ;;  %v3349_v38 = vld [vmem:[%s4483_s3 + $0x18] sm:$0xff]   ;;  %v3871_v40 = vsel %vm900_vm1, %v3347_v36, 0  ;;  %v3350_v43 = vld [vmem:[%s4483_s3 + $0x20] sm:$0xff]  }
  0x27   : > { %3043 = vmatprep.subr.bf16.mxu0 %v3580_v1  ;;  %774 = vmatpush1.bf16.msra.mxu1 %v3325_v10  ;;  %s545_s15 = sadd.s32 %s2774_s30, %s543_s17  ;;  %s553_s23 = scalar_lea.vmem %s4481_s1, %s2911_s29  ;;  %v3874_v41 = vsel %vm900_vm1, %v3348_v37, 0  ;;  %v3877_v42 = vsel %vm900_vm1, %v3349_v38, 0  ;;  %v3891_v44 = vsel %vm900_vm1, %v3350_v43, 0  ;;  %v3351_v45 = vld [vmem:[%s4483_s3 + $0x28] sm:$0xff]   ;;  %v3352_v47 = vld [vmem:[%s4483_s3 + $0x30] sm:$0xff]   ;;  %v3353_v49 = vld [vmem:[%s4483_s3 + $0x38] sm:$0xff]  }
  0x28   : > { %775 = vmatprep.subr.bf16.mxu1 %v3327_v11  ;;  %s2775_s20 = sshll.u32 %s545_s15, 3  ;;  %v561_v28 = vld [vmem:[%s553_s23] sm:$0xff]  ;;  %v562_v29 = vld [vmem:[%s553_s23 + $0x8] sm:$0xff]  ;;  %v563_v33 = vld [vmem:[%s553_s23 + $0x10] sm:$0xff]  ;;  %v3899_v46 = vsel %vm900_vm1, %v3351_v45, 0  ;;  %v3907_v48 = vsel %vm900_vm1, %v3352_v47, 0 }
  0x29   : > { %s3827_s15 = scalar_lea.vmem %s4523_s0, %s2775_s20  ;;  %v671_v32 = vpack.c.bf16 %v562_v29, %v561_v28  ;;  %v564_v34 = vld [vmem:[%s553_s23 + $0x18] sm:$0xff]  ;;  %v3915_v50 = vsel %vm900_vm1, %v3353_v49, 0  ;;  %s3584_s17 = smov 360  }
  0x2a   : > { %3044 = vmatpush3.bf16.msra.mxu0 %v3326_v12  ;;  %v559_v25 = vld [vmem:[%s3827_s15] sm:$0xff]  ;;  %v560_v27 = vld [vmem:[%s3827_s15 + $0x8] sm:$0xff]  ;;  %v672_v39 = vpack.c.bf16 %v564_v34, %v563_v33  ;;  %s2811_s30 = sshll.u32 %s3562_s21, 4  ;;  %s556_s23 = scalar_lea.vmem %s4482_s2, %s3783_s27 }
  0x2b   : > { %3045 = vmatprep.subr.bf16.mxu0 %v3580_v1  ;;  %776 = vmatpush1.bf16.msra.mxu1 %v3329_v13  ;;  %v565_v30 = vpack.c.bf16 %v560_v27, %v559_v25  ;;  %s3950_s25 = sand.u32 127, %s2811_s30   ;;  %s3585_s21 = smov 96  }
  0x2c   : > { %777 = vmatprep.subr.bf16.mxu1 %v3331_v14  ;;  %s536_s29 = sand.u32 1, %s3554_s19   ;;  %s4526_s0 = sld [smem:[#allocation17_spill]] }
  0x2d   : > { %s2772_s30 = sshll.u32 %s536_s29, 4 }
  0x2e   : > { %3046 = vmatpush3.bf16.msra.mxu0 %v3330_v15 }
  0x2f   : > { %3047 = vmatprep.subr.bf16.mxu0 %v3580_v1  ;;  %778 = vmatpush1.bf16.msra.mxu1 %v3333_v16 }
  0x30   : > { %779 = vmatprep.subr.bf16.mxu1 %v3335_v17 }
  0x32   : > { %3048 = vmatpush3.bf16.msra.mxu0 %v3334_v18 }
  0x33   : > { %3049 = vmatprep.subr.bf16.mxu0 %v3580_v1  ;;  %780 = vmatpush1.bf16.msra.mxu1 %v3337_v19 }
  0x34   : > { %781 = vmatprep.subr.bf16.mxu1 %v3339_v20  ;;  %v3958_v20 = vld [vmem:[%s556_s23] ss:$0 sm:$0xff]  ;;  %s3587_s23 = smov 32  }
  0x36   : > { %3050 = vmatpush3.bf16.msra.mxu0 %v3338_v21 }
  0x37   : > { %3051 = vmatprep.subr.bf16.mxu0 %v3580_v1  ;;  %782 = vmatpush1.bf16.msra.mxu1 %v3341_v22 }
  0x38   : > { %783 = vmatprep.subr.bf16.mxu1 %v3343_v24 }
  0x3a   : > { %3052 = vmatpush3.bf16.msra.mxu0 %v3342_v23 }
  0x3b   : > { %3057 = vmatprep.subr.bf16.mxu0 %v3580_v1  ;;  %784 = vmatpush1.bf16.msra.mxu1 %v3345_v26 }
  0x3c   : > { %3077 = vmatprep.subr.bf16.mxu1 %v3580_v1 }
  0x3d   : > { %3054 = vmatmul.mubr.bf16.vlgmr.msra.gmra.mrb[0].mxu0 %v565_v30 }
  0x3e   : > { %3073 = vmatprep.mubr.msk.bf16.mxu0 %vm3581_vm0, %v3580_v1  ;;  %802 = vmatmul.mubr.bf16.vlgmr.msra.gmra.mrb[0].mxu1 %v671_v32 }
  0x3f   : > { %811 = vmatprep.mubr.bf16.mxu1 %v3582_v7 }
  0x43   : > { %3058 = vmatpush3.bf16.xpose.msra.mxu0 %v3857_v35 }
  0x44   : > { %3059 = vmatprep.subr.bf16.mxu0 %v3580_v1 }
  0x46   : > { %812 = vmatmul.mubr.bf16.gmra.mrb[4].mxu1 %v672_v39 }
  0x47   : > { %3081 = vmatprep.mubr.msk.bf16.mxu1 %vm3581_vm0, %v3580_v1 }
  0x4b   : > { %3060 = vmatpush3.bf16.xpose.msra.mxu0 %v3871_v40 }
  0x4c   : > { %3061 = vmatprep.subr.bf16.mxu0 %v3580_v1 }
  0x53   : > { %3062 = vmatpush3.bf16.xpose.msra.mxu0 %v3874_v41 }
  0x54   : > { %3063 = vmatprep.subr.bf16.mxu0 %v3580_v1 }
  0x5b   : > { %3064 = vmatpush3.bf16.xpose.msra.mxu0 %v3877_v42 }
  0x5c   : > { %3065 = vmatprep.subr.bf16.mxu0 %v3580_v1 }
  0x63   : > { %3066 = vmatpush3.bf16.xpose.msra.mxu0 %v3891_v44 }
  0x64   : > { %3067 = vmatprep.subr.bf16.mxu0 %v3580_v1 }
  0x6b   : > { %3068 = vmatpush3.bf16.xpose.msra.mxu0 %v3899_v46 }
  0x6c   : > { %3069 = vmatprep.subr.bf16.mxu0 %v3580_v1 }
  0x73   : > { %3070 = vmatpush3.bf16.xpose.msra.mxu0 %v3907_v48 }
  0x74   : > { %3071 = vmatprep.subr.bf16.mxu0 %v3580_v1 }
  0x7b   : > { %3072 = vmatpush3.bf16.xpose.msra.mxu0 %v3915_v50 }
  0x7c   : > { %3113 = vmatprep.subr.bf16.mxu0 %v3580_v1 }
 0x110   : > { %v664_v51 = vpop.f32.mrb[0].mxu0 }
 0x111   : > { %v3055_v52 = vpop.f32.mrb[1].mxu0  ;;  %v803_v53 = vpop.f32.mrb[0].mxu1 }
 0x112   : > { %v667_v54 = vpop.f32.mrb[2].mxu0  ;;  %v805_v56 = vpop.f32.mrb[1].mxu1 }
 0x113   : > { %v3919_v55 = vpack.c.bf16 %v667_v54, %v664_v51  ;;  %v3056_v57 = vpop.f32.mrb[3].mxu0  ;;  %v807_v58 = vpop.f32.mrb[2].mxu1 }
 0x114   : > { %v3921_v59 = vpack.c.bf16 %v807_v58, %v803_v53  ;;  %v809_v60 = vpop.f32.mrb[3].mxu1 }
 0x115   : > { %3074 = vmatmul.mubr.msk.bf16.vlgmr.msra.gmra.mrb[4].mxu0 %vm900_vm1, %v3919_v55  ;;  %v3925_v61 = vpack.c.bf16 %v809_v60, %v805_v56 }
 0x116   : > { %3117 = vmatprep.mubr.msk.bf16.mxu0 %vm3581_vm0, %v3580_v1  ;;  %v985_v62 = vsel %vm900_vm1, %v3921_v59, 0 }
 0x117   : > { %3078 = vmatpush3.bf16.xpose.msra.mxu1 %v985_v62 }
 0x118   : > { %3079 = vmatprep.subr.bf16.mxu1 %v3580_v1 }
 0x119   : > { %v813_v63 = vpop.f32.mrb[4].mxu1 }
 0x11a   : > { %v815_v0 = vpop.f32.mrb[5].mxu1 }
 0x11b   : > { %v817_v2 = vpop.f32.mrb[6].mxu1 }
 0x11c   : > { %v3932_v3 = vpack.c.bf16 %v817_v2, %v813_v63  ;;  %v819_v5 = vpop.f32.mrb[7].mxu1 }
 0x11d   : > { %v3943_v6 = vpack.c.bf16 %v819_v5, %v815_v0 }
 0x11e   : > { %v988_v4 = vsel %vm900_vm1, %v3932_v3, 0 }
 0x11f   : > { %3080 = vmatpush3.bf16.xpose.msra.mxu1 %v988_v4 }
 0x120   : > { %3085 = vmatprep.subr.bf16.mxu1 %v3580_v1 }
 0x126   : > { %3082 = vmatmul.mubr.msk.bf16.vlgmr.msra.gmra.mrb[8].mxu1 %vm900_vm1, %v3919_v55 }
 0x127   : > { %3086 = vmatpush3.bf16.msra.mxu1 %v3925_v61  ;;  %3089 = vmatprep.mubr.msk.bf16.mxu1 %vm3581_vm0, %v3580_v1 }
 0x128   : > { %3087 = vmatprep.subr.bf16.mxu1 %v3580_v1 }
 0x12b   : > { %3088 = vmatpush3.bf16.msra.mxu1 %v3943_v6 }
 0x12c   : > { %3093 = vmatprep.subr.bf16.mxu1 %v3580_v1 }
 0x1e8   : > { %v962_v8 = vpop.f32.mrb[4].mxu0 }
 0x1e9   : > { %971 = vrot.lane.b32.xlu0 %v962_v8, %s3583_s26  ;;  %v3075_v9 = vpop.f32.mrb[5].mxu0 }
 0x1ea   : > { %v965_v10 = vpop.f32.mrb[6].mxu0 }
 0x1eb   : > { %v3076_v11 = vpop.f32.mrb[7].mxu0 }
 0x1ed   : > { %975 = vrot.lane.b32.xlu0 %v965_v10, %s3584_s17 }
 0x1f9   : > { %v1024_v12 = vpop.f32.mrb[8].mxu1 }
 0x1fa   : > { %v3083_v13 = vpop.f32.mrb[9].mxu1 }
 0x1fb   : > { %v1027_v14 = vpop.f32.mrb[10].mxu1 }
 0x1fc   : > { %v3084_v15 = vpop.f32.mrb[11].mxu1 }
 0x25b   : > { %v972_v16 = vpop.permute.xlu0 %971 }
 0x25c   : > { %980 = vrot.lane.b32.xlu1 %v972_v16, %s3950_s25 }
 0x25f   : > { %v976_v17 = vpop.permute.xlu0 %975 }
 0x260   : > { %982 = vrot.lane.b32.xlu1 %v976_v17, %s3950_s25 }
 0x2ce   : > { %v981_v18 = vpop.permute.xlu1 %980 }
 0x2cf   : > { %v1025_v19 = vadd.f32 %v1024_v12, %v981_v18 }
 0x2d1   : > { %v1031_v21 = vmul.f32 0.17677669, %v1025_v19 }
 0x2d2   : > { %v983_v22 = vpop.permute.xlu1 %982 }
 0x2d3   : > { %v1028_v23 = vadd.f32 %v1027_v14, %v983_v22  ;;  %v1039_v24 = vadd.f32 %v3958_v20, %v1031_v21 }
 0x2d5   : > { %v1032_v25 = vmul.f32 0.17677669, %v1028_v23  ;;  %v1041_v26 = vsel %vm900_vm1, %v1039_v24, -inf }
 0x2d6   : > { %1042 = vmax.xlane.f32.xlu0 %v1041_v26 }
 0x2d7   : > { %v1040_v27 = vadd.f32 %v3958_v20, %v1032_v25 }
 0x2d9   : > { %v1044_v28 = vsel %vm900_vm1, %v1040_v27, -inf }
 0x2da   : > { %1045 = vmax.xlane.f32.xlu1 %v1044_v28 }
 0x2eb   : > { %1170 = vrot.lane.b32.xlu1 %v3921_v59, %s3585_s21 }
 0x2ec   : > { %1110 = vrot.lane.b32.xlu0 %v3919_v55, %s3585_s21 }
 0x2f0   : > { %1172 = vrot.lane.b32.xlu0 %v3932_v3, %s3585_s21 }
 0x363   : > { %v1043_v29 = vpop.xlane.xlu0 %1042 }
 0x364   : > { %v1047_v30 = vsub.f32 %v1039_v24, %v1043_v29 }
 0x366   : > { %v1049_v31 = vmul.f32 1.442695, %v1047_v30 }
 0x367   : > { %v1046_v32 = vpop.xlane.xlu1 %1045  ;;  %v1111_v36 = vpop.permute.xlu0 %1110 }
 0x368   : > { %v1048_v33 = vsub.f32 %v1040_v27, %v1046_v32  ;;  %3442 = vpow2.f32 %v1049_v31 }
 0x36a   : > { %v1051_v34 = vmul.f32 1.442695, %v1048_v33 }
 0x36b   : > { %v1171_v37 = vpop.permute.xlu1 %1170  ;;  %v1173_v39 = vpop.permute.xlu0 %1172 }
 0x36c   : > { %3444 = vpow2.f32 %v1051_v34  ;;  %v1175_v38 = vsel %vm900_vm1, %v1171_v37, 0  ;;  %v1178_v43 = vsel %vm900_vm1, %v1173_v39, 0  ;;  %v3354_v34 = vld [vmem:[%s4486_s6] sm:$0xff]   ;;  %v3356_v37 = vld [vmem:[%s4486_s6 + $0x10] sm:$0xff]  }
 0x36d   : > { %3114 = vmatpush3.bf16.xpose.msra.mxu0 %v1175_v38  ;;  %v3357_v38 = vld [vmem:[%s4486_s6 + $0x18] sm:$0xff]  }
 0x36e   : > { %3115 = vmatprep.subr.bf16.mxu0 %v3580_v1 }
 0x372   : > { %v3973_v45 = vpop.eup %3442 }
 0x373   : > { %v1053_v32 = vsel %vm900_vm1, %v3973_v45, 0.0 }
 0x375   : > { %3116 = vmatpush3.bf16.xpose.msra.mxu0 %v1178_v43 }
 0x376   : > { %v3975_v47 = vpop.eup %3444  ;;  %3121 = vmatprep.subr.bf16.mxu0 %v3580_v1 }
 0x377   : > { %v1059_v49 = vpack.c.bf16 %v3975_v47, %v3973_v45  ;;  %v1056_v33 = vsel %vm900_vm1, %v3975_v47, 0.0 }
 0x379   : > { %3090 = vmatmul.mubr.msk.bf16.vlgmr.msra.gmra.mrb[12].mxu1 %vm900_vm1, %v1059_v49 }
 0x37a   : > { %3094 = vmatpush3.bf16.xpose.msra.mxu1 %v3857_v35  ;;  %3109 = vmatprep.mubr.msk.bf16.mxu1 %vm3581_vm0, %v3580_v1 }
 0x37b   : > { %3095 = vmatprep.subr.bf16.mxu1 %v3580_v1 }
 0x37c   : > { %3118 = vmatmul.mubr.msk.bf16.vlgmr.msra.gmra.mrb[8].mxu0 %vm900_vm1, %v1111_v36 }
 0x37d   : > { %3125 = vmatprep.mubr.msk.bf16.mxu0 %vm3581_vm0, %v3580_v1 }
 0x382   : > { %3096 = vmatpush3.bf16.xpose.msra.mxu1 %v3871_v40 }
 0x383   : > { %3097 = vmatprep.subr.bf16.mxu1 %v3580_v1 }
 0x38a   : > { %3098 = vmatpush3.bf16.xpose.msra.mxu1 %v3874_v41 }
 0x38b   : > { %3099 = vmatprep.subr.bf16.mxu1 %v3580_v1 }
 0x392   : > { %3100 = vmatpush3.bf16.xpose.msra.mxu1 %v3877_v42 }
 0x393   : > { %3101 = vmatprep.subr.bf16.mxu1 %v3580_v1 }
 0x39a   : > { %3102 = vmatpush3.bf16.xpose.msra.mxu1 %v3891_v44 }
 0x39b   : > { %3103 = vmatprep.subr.bf16.mxu1 %v3580_v1 }
 0x3a2   : > { %3104 = vmatpush3.bf16.xpose.msra.mxu1 %v3899_v46 }
 0x3a3   : > { %3105 = vmatprep.subr.bf16.mxu1 %v3580_v1 }
 0x3aa   : > { %3106 = vmatpush3.bf16.xpose.msra.mxu1 %v3907_v48 }
 0x3ab   : > { %3107 = vmatprep.subr.bf16.mxu1 %v3580_v1 }
 0x3b2   : > { %3108 = vmatpush3.bf16.xpose.msra.mxu1 %v3915_v50 }
 0x3b3   : > { %3137 = vmatprep.subr.bf16.mxu1 %v3580_v1 }
 0x3b9   : > { %3110 = vmatmul.mubr.msk.bf16.vlgmr.msra.gmra.mrb[16].mxu1 %vm900_vm1, %v1111_v36  ;;  %v3355_v36 = vld [vmem:[%s4486_s6 + $0x8] sm:$0xff]  }
 0x3ba   : > { %3141 = vmatprep.mubr.msk.bf16.mxu1 %vm3581_vm0, %v3580_v1  ;;  %3138 = vmatpush3.bf16.msra.mxu1 %v3354_v34 }
 0x3bb   : > { %3139 = vmatprep.subr.bf16.mxu1 %v3580_v1 }
 0x3be   : > { %3140 = vmatpush3.bf16.msra.mxu1 %v3355_v36 }
 0x3bf   : > { %3165 = vmatprep.subr.bf16.mxu1 %v3580_v1 }
 0x44c   : > { %v4005_v51 = vpop.f32.mrb[12].mxu1 }
 0x44d   : > { %v3091_v52 = vpop.f32.mrb[13].mxu1 }
 0x44e   : > { %v4007_v53 = vpop.f32.mrb[14].mxu1 }
 0x44f   : > { %v3092_v54 = vpop.f32.mrb[15].mxu1  ;;  %v1214_v56 = vpop.f32.mrb[8].mxu0 }
 0x450   : > { %v3119_v57 = vpop.f32.mrb[9].mxu0 }
 0x451   : > { %v1217_v58 = vpop.f32.mrb[10].mxu0 }
 0x452   : > { %v3120_v60 = vpop.f32.mrb[11].mxu0 }
 0x48c   : > { %v1149_v62 = vpop.f32.mrb[16].mxu1 }
 0x48d   : > { %1158 = vrot.lane.b32.xlu1 %v1149_v62, %s3583_s26  ;;  %v3111_v63 = vpop.f32.mrb[17].mxu1 }
 0x48e   : > { %v1152_v0 = vpop.f32.mrb[18].mxu1 }
 0x48f   : > { %1162 = vrot.lane.b32.xlu0 %v1152_v0, %s3584_s17  ;;  %v3112_v2 = vpop.f32.mrb[19].mxu1 }
 0x4ff   : > { %v1159_v4 = vpop.permute.xlu1 %1158 }
 0x500   : > { %1164 = vrot.lane.b32.xlu1 %v1159_v4, %s3950_s25 }
 0x501   : > { %v1163_v5 = vpop.permute.xlu0 %1162 }
 0x502   : > { %1166 = vrot.lane.b32.xlu0 %v1163_v5, %s3950_s25 }
 0x572   : > { %v1165_v8 = vpop.permute.xlu1 %1164 }
 0x573   : > { %v1215_v9 = vadd.f32 %v1214_v56, %v1165_v8 }
 0x574   : > { %v1167_v10 = vpop.permute.xlu0 %1166 }
 0x575   : > { %v1221_v11 = vmul.f32 0.17677669, %v1215_v9  ;;  %v1218_v12 = vadd.f32 %v1217_v58, %v1167_v10 }
 0x577   : > { %v1222_v13 = vmul.f32 0.17677669, %v1218_v12  ;;  %v1223_v14 = vadd.f32 %v3958_v20, %v1221_v11 }
 0x579   : > { %v1225_v15 = vsel %vm900_vm1, %v1223_v14, -inf  ;;  %v1224_v16 = vadd.f32 %v3958_v20, %v1222_v13 }
 0x57a   : > { %1226 = vmax.xlane.f32.xlu1 %v1225_v15 }
 0x57b   : > { %v1228_v17 = vsel %vm900_vm1, %v1224_v16, -inf }
 0x57c   : > { %1229 = vmax.xlane.f32.xlu0 %v1228_v17 }
 0x58b   : > { %1248 = vrot.lane.b32.xlu1 %v3943_v6, %s3585_s21 }
 0x592   : > { %1246 = vrot.lane.b32.xlu0 %v3925_v61, %s3585_s21  ;;  %s2661_s21 = sadd.s32 %s2907_s14, %s3759_s18  ;;  %s4428_s18 = scalar_lea.sflag [#allocation3], %s536_s29 }
 0x607   : > { %v1227_v18 = vpop.xlane.xlu1 %1226 }
 0x608   : > { %v1231_v19 = vsub.f32 %v1223_v14, %v1227_v18 }
 0x609   : > { %v1230_v21 = vpop.xlane.xlu0 %1229 }
 0x60a   : > { %v1233_v22 = vmul.f32 1.442695, %v1231_v19  ;;  %v1232_v23 = vsub.f32 %v1224_v16, %v1230_v21 }
 0x60b   : > { %v1249_v26 = vpop.permute.xlu1 %1248 }
 0x60c   : > { %3446 = vpow2.f32 %v1233_v22  ;;  %v1235_v24 = vmul.f32 1.442695, %v1232_v23 }
 0x60d   : > { %v1247_v25 = vpop.permute.xlu0 %1246 }
 0x60e   : > { %3448 = vpow2.f32 %v1235_v24  ;;  %3122 = vmatpush3.bf16.msra.mxu0 %v1247_v25 }
 0x60f   : > { %3123 = vmatprep.subr.bf16.mxu0 %v3580_v1 }
 0x612   : > { %3124 = vmatpush3.bf16.msra.mxu0 %v1249_v26 }
 0x613   : > { %3129 = vmatprep.subr.bf16.mxu0 %v3580_v1 }
 0x616   : > { %v3447_v27 = vpop.eup %3446 }
 0x617   : > { %v1237_v28 = vsel %vm900_vm1, %v3447_v27, 0.0 }
 0x618   : > { %v3449_v29 = vpop.eup %3448  ;;  %1238 = vadd.xlane.f32.xlu1 %v1237_v28 }
 0x619   : > { %v1240_v30 = vsel %vm900_vm1, %v3449_v29, 0.0  ;;  %v1243_v31 = vpack.c.bf16 %v3449_v29, %v3447_v27 }
 0x61a   : > { %1241 = vadd.xlane.f32.xlu0 %v1240_v30 }
 0x61b   : > { %3126 = vmatmul.mubr.msk.bf16.vlgmr.msra.gmra.mrb[12].mxu0 %vm900_vm1, %v1243_v31 }
 0x61c   : > { %1054 = vadd.xlane.f32.xlu1 %v1053_v32  ;;  %3133 = vmatprep.mubr.msk.bf16.mxu0 %vm3581_vm0, %v3580_v1 }
 0x61d   : > { %3130 = vmatpush3.bf16.msra.mxu0 %v3356_v37 }
 0x61e   : > { %3131 = vmatprep.subr.bf16.mxu0 %v3580_v1 }
 0x620   : > { %1057 = vadd.xlane.f32.xlu1 %v1056_v33 }
 0x621   : > { %3132 = vmatpush3.bf16.msra.mxu0 %v3357_v38 }
 0x622   : > { %3145 = vmatprep.subr.bf16.mxu0 %v3580_v1 }
 0x630   : > { %1413 = vrot.lane.b32.xlu0 %v3919_v55, %s3586_s16 }
 0x631   : > { %1471 = vrot.lane.b32.xlu1 %v3921_v59, %s3586_s16 }
 0x634   : > { %1473 = vrot.lane.b32.xlu0 %v3932_v3, %s3586_s16 }
 0x6a5   : > { %v1239_v39 = vpop.xlane.xlu1 %1238 }
 0x6a7   : > { %v1242_v49 = vpop.xlane.xlu0 %1241 }
 0x6a9   : > { %v1055_v43 = vpop.xlane.xlu1 %1054 }
 0x6aa   : > { %3450 = vrcp.f32 %v1055_v43 }
 0x6ab   : > { %v1414_v60 = vpop.permute.xlu0 %1413 }
 0x6ad   : > { %v1058_v45 = vpop.xlane.xlu1 %1057 }
 0x6ae   : > { %3452 = vrcp.f32 %v1058_v45 }
 0x6af   : > { %v1474_v63 = vpop.permute.xlu0 %1473  ;;  %3454 = vrcp.f32 %v1239_v39 }
 0x6b0   : > { %v1479_v0 = vsel %vm900_vm1, %v1474_v63, 0  ;;  %3456 = vrcp.f32 %v1242_v49 }
 0x6b1   : > { %v1472_v57 = vpop.permute.xlu1 %1471 }
 0x6b2   : > { %v1476_v62 = vsel %vm900_vm1, %v1472_v57, 0 }
 0x6b4   : > { %v3451_v47 = vpop.eup %3450 }
 0x6b5   : > { %v1106_v54 = vmul.f32 %v3451_v47, %v4005_v51 }
 0x6b8   : > { %v3453_v52 = vpop.eup %3452 }
 0x6b9   : > { %v1107_v56 = vmul.f32 %v3453_v52, %v4007_v53  ;;  %v3455_v51 = vpop.eup %3454 }
 0x6ba   : > { %v3457_v5 = vpop.eup %3456 }
 0x6bb   : > { %v1108_v58 = vpack.c.bf16 %v1107_v56, %v1106_v54 }
 0x6bd   : > { %3142 = vmatmul.mubr.msk.bf16.vlgmr.msra.gmra.mrb[20].mxu1 %vm900_vm1, %v1108_v58 }
 0x6be   : > { %3166 = vmatpush3.bf16.xpose.msra.mxu1 %v1476_v62  ;;  %3169 = vmatprep.mubr.msk.bf16.mxu1 %vm3581_vm0, %v3580_v1 }
 0x6bf   : > { %3167 = vmatprep.subr.bf16.mxu1 %v3580_v1 }
 0x6c6   : > { %3168 = vmatpush3.bf16.xpose.msra.mxu1 %v1479_v0 }
 0x6c7   : > { %3173 = vmatprep.subr.bf16.mxu1 %v3580_v1 }
 0x6cd   : > { %3170 = vmatmul.mubr.msk.bf16.vlgmr.msra.gmra.mrb[24].mxu1 %vm900_vm1, %v1414_v60 }
 0x6ce   : > { %3177 = vmatprep.mubr.msk.bf16.mxu1 %vm3581_vm0, %v3580_v1 }
 0x6ee   : > { %v1289_v53 = vpop.f32.mrb[12].mxu0 }
 0x6ef   : > { %v1298_v2 = vmul.f32 %v3455_v51, %v1289_v53  ;;  %v3127_v4 = vpop.f32.mrb[13].mxu0 }
 0x6f0   : > { %v1292_v8 = vpop.f32.mrb[14].mxu0 }
 0x6f1   : > { %v1299_v9 = vmul.f32 %v3457_v5, %v1292_v8  ;;  %v3128_v10 = vpop.f32.mrb[15].mxu0  ;;  %v3358_v5 = vld [vmem:[%s4486_s6 + $0x20] sm:$0xff]   ;;  %v3359_v8 = vld [vmem:[%s4486_s6 + $0x28] sm:$0xff]  }
 0x6f3   : > { %v1300_v11 = vpack.c.bf16 %v1299_v9, %v1298_v2 }
 0x6f5   : > { %3134 = vmatmul.mubr.msk.bf16.vlgmr.msra.gmra.mrb[16].mxu0 %vm900_vm1, %v1300_v11 }
 0x6f6   : > { %3146 = vmatpush3.bf16.xpose.msra.mxu0 %v3857_v35  ;;  %3161 = vmatprep.mubr.msk.bf16.mxu0 %vm3581_vm0, %v3580_v1 }
 0x6f7   : > { %3147 = vmatprep.subr.bf16.mxu0 %v3580_v1 }
 0x6fe   : > { %3148 = vmatpush3.bf16.xpose.msra.mxu0 %v3871_v40 }
 0x6ff   : > { %3149 = vmatprep.subr.bf16.mxu0 %v3580_v1 }
 0x706   : > { %3150 = vmatpush3.bf16.xpose.msra.mxu0 %v3874_v41 }
 0x707   : > { %3151 = vmatprep.subr.bf16.mxu0 %v3580_v1 }
 0x70e   : > { %3152 = vmatpush3.bf16.xpose.msra.mxu0 %v3877_v42 }
 0x70f   : > { %3153 = vmatprep.subr.bf16.mxu0 %v3580_v1 }
 0x716   : > { %3154 = vmatpush3.bf16.xpose.msra.mxu0 %v3891_v44 }
 0x717   : > { %3155 = vmatprep.subr.bf16.mxu0 %v3580_v1 }
 0x71e   : > { %3156 = vmatpush3.bf16.xpose.msra.mxu0 %v3899_v46 }
 0x71f   : > { %3157 = vmatprep.subr.bf16.mxu0 %v3580_v1 }
 0x726   : > { %3158 = vmatpush3.bf16.xpose.msra.mxu0 %v3907_v48 }
 0x727   : > { %3159 = vmatprep.subr.bf16.mxu0 %v3580_v1 }
 0x72e   : > { %3160 = vmatpush3.bf16.xpose.msra.mxu0 %v3915_v50 }
 0x72f   : > { %3209 = vmatprep.subr.bf16.mxu0 %v3580_v1 }
 0x735   : > { %3162 = vmatmul.mubr.msk.bf16.vlgmr.msra.gmra.mrb[20].mxu0 %vm900_vm1, %v1414_v60 }
 0x736   : > { %3213 = vmatprep.mubr.msk.bf16.mxu0 %vm3581_vm0, %v3580_v1 }
 0x790   : > { %v1406_v12 = vpop.f32.mrb[20].mxu1 }
 0x791   : > { %v3143_v13 = vpop.f32.mrb[21].mxu1 }
 0x792   : > { %v1409_v14 = vpop.f32.mrb[22].mxu1 }
 0x793   : > { %v3144_v15 = vpop.f32.mrb[23].mxu1 }
 0x7a0   : > { %v1515_v16 = vpop.f32.mrb[24].mxu1 }
 0x7a1   : > { %v3171_v17 = vpop.f32.mrb[25].mxu1 }
 0x7a2   : > { %v1518_v18 = vpop.f32.mrb[26].mxu1 }
 0x7a3   : > { %v3172_v19 = vpop.f32.mrb[27].mxu1 }
 0x7c8   : > { %v1350_v21 = vpop.f32.mrb[16].mxu0 }
 0x7c9   : > { %v4088_v22 = vadd.f32 %v1406_v12, %v1350_v21  ;;  %v3135_v23 = vpop.f32.mrb[17].mxu0 }
 0x7ca   : > { %v1353_v24 = vpop.f32.mrb[18].mxu0 }
 0x7cb   : > { %v4090_v25 = vadd.f32 %v1409_v14, %v1353_v24  ;;  %v3136_v26 = vpop.f32.mrb[19].mxu0 }
 0x808   : > { %v1452_v27 = vpop.f32.mrb[20].mxu0 }
 0x809   : > { %1461 = vrot.lane.b32.xlu0 %v1452_v27, %s3583_s26  ;;  %v3163_v28 = vpop.f32.mrb[21].mxu0 }
 0x80a   : > { %v1455_v29 = vpop.f32.mrb[22].mxu0 }
 0x80b   : > { %1465 = vrot.lane.b32.xlu1 %v1455_v29, %s3584_s17  ;;  %v3164_v30 = vpop.f32.mrb[23].mxu0 }
 0x87b   : > { %v1462_v31 = vpop.permute.xlu0 %1461 }
 0x87c   : > { %1467 = vrot.lane.b32.xlu0 %v1462_v31, %s3950_s25 }
 0x87d   : > { %v1466_v32 = vpop.permute.xlu1 %1465 }
 0x87e   : > { %1469 = vrot.lane.b32.xlu1 %v1466_v32, %s3950_s25 }
 0x8ee   : > { %v1468_v33 = vpop.permute.xlu0 %1467 }
 0x8ef   : > { %v1516_v34 = vadd.f32 %v1515_v16, %v1468_v33 }
 0x8f0   : > { %v1470_v36 = vpop.permute.xlu1 %1469 }
 0x8f1   : > { %v1522_v37 = vmul.f32 0.17677669, %v1516_v34  ;;  %v1519_v38 = vadd.f32 %v1518_v18, %v1470_v36 }
 0x8f3   : > { %v1523_v39 = vmul.f32 0.17677669, %v1519_v38  ;;  %v1524_v43 = vadd.f32 %v3958_v20, %v1522_v37 }
 0x8f5   : > { %v1526_v45 = vsel %vm900_vm1, %v1524_v43, -inf  ;;  %v1525_v47 = vadd.f32 %v3958_v20, %v1523_v39 }
 0x8f6   : > { %1527 = vmax.xlane.f32.xlu0 %v1526_v45 }
 0x8f7   : > { %v1529_v49 = vsel %vm900_vm1, %v1525_v47, -inf }
 0x8f8   : > { %1530 = vmax.xlane.f32.xlu1 %v1529_v49 }
 0x909   : > { %1547 = vrot.lane.b32.xlu1 %v3943_v6, %s3586_s16 }
 0x90c   : > { %1545 = vrot.lane.b32.xlu0 %v3925_v61, %s3586_s16 }
 0x983   : > { %v1528_v52 = vpop.xlane.xlu0 %1527 }
 0x984   : > { %v1532_v54 = vsub.f32 %v1524_v43, %v1528_v52 }
 0x985   : > { %v1531_v56 = vpop.xlane.xlu1 %1530 }
 0x986   : > { %v1534_v57 = vmul.f32 1.442695, %v1532_v54  ;;  %v1533_v58 = vsub.f32 %v1525_v47, %v1531_v56 }
 0x987   : > { %v1546_v60 = vpop.permute.xlu0 %1545 }
 0x988   : > { %3458 = vpow2.f32 %v1534_v57  ;;  %v1536_v62 = vmul.f32 1.442695, %v1533_v58  ;;  %3174 = vmatpush3.bf16.msra.mxu1 %v1546_v60 }
 0x989   : > { %3175 = vmatprep.subr.bf16.mxu1 %v3580_v1  ;;  %v1548_v63 = vpop.permute.xlu1 %1547 }
 0x98a   : > { %3460 = vpow2.f32 %v1536_v62 }
 0x98c   : > { %3176 = vmatpush3.bf16.msra.mxu1 %v1548_v63 }
 0x98d   : > { %3181 = vmatprep.subr.bf16.mxu1 %v3580_v1 }
 0x992   : > { %v3459_v0 = vpop.eup %3458 }
 0x993   : > { %v1538_v51 = vsel %vm900_vm1, %v3459_v0, 0.0 }
 0x994   : > { %v3461_v53 = vpop.eup %3460  ;;  %1539 = vadd.xlane.f32.xlu0 %v1538_v51  ;;  %v3361_v51 = vld [vmem:[%s4486_s6 + $0x38] sm:$0xff]  }
 0x995   : > { %v1541_v2 = vsel %vm900_vm1, %v3461_v53, 0.0  ;;  %v1544_v4 = vpack.c.bf16 %v3461_v53, %v3459_v0  ;;  %v3360_v0 = vld [vmem:[%s4486_s6 + $0x30] sm:$0xff]  }
 0x996   : > { %1542 = vadd.xlane.f32.xlu1 %v1541_v2 }
 0x997   : > { %3178 = vmatmul.mubr.msk.bf16.vlgmr.msra.gmra.mrb[28].mxu1 %vm900_vm1, %v1544_v4 }
 0x998   : > { %3185 = vmatprep.mubr.msk.bf16.mxu1 %vm3581_vm0, %v3580_v1  ;;  %3182 = vmatpush3.bf16.msra.mxu1 %v3358_v5 }
 0x999   : > { %3183 = vmatprep.subr.bf16.mxu1 %v3580_v1 }
 0x99c   : > { %3184 = vmatpush3.bf16.msra.mxu1 %v3359_v8 }
 0x99d   : > { %3189 = vmatprep.subr.bf16.mxu1 %v3580_v1 }
 0x9a7   : > { %1716 = vrot.lane.b32.xlu1 %v3921_v59, %s3587_s23 }
 0x9aa   : > { %1658 = vrot.lane.b32.xlu0 %v3919_v55, %s3587_s23 }
 0x9ae   : > { %1718 = vrot.lane.b32.xlu0 %v3932_v3, %s3587_s23 }
 0xa21   : > { %v1540_v59 = vpop.xlane.xlu0 %1539 }
 0xa22   : > { %3462 = vrcp.f32 %v1540_v59 }
 0xa23   : > { %v1543_v9 = vpop.xlane.xlu1 %1542 }
 0xa24   : > { %3464 = vrcp.f32 %v1543_v9 }
 0xa25   : > { %v1659_v55 = vpop.permute.xlu0 %1658 }
 0xa27   : > { %v1717_v10 = vpop.permute.xlu1 %1716 }
 0xa28   : > { %v1721_v3 = vsel %vm900_vm1, %v1717_v10, 0 }
 0xa29   : > { %3210 = vmatpush3.bf16.xpose.msra.mxu0 %v1721_v3  ;;  %v1719_v11 = vpop.permute.xlu0 %1718 }
 0xa2a   : > { %3211 = vmatprep.subr.bf16.mxu0 %v3580_v1  ;;  %v1724_v12 = vsel %vm900_vm1, %v1719_v11, 0 }
 0xa2c   : > { %v3463_v14 = vpop.eup %3462 }
 0xa2e   : > { %v3465_v16 = vpop.eup %3464 }
 0xa31   : > { %3212 = vmatpush3.bf16.xpose.msra.mxu0 %v1724_v12 }
 0xa32   : > { %3217 = vmatprep.subr.bf16.mxu0 %v3580_v1 }
 0xa38   : > { %3214 = vmatmul.mubr.msk.bf16.vlgmr.msra.gmra.mrb[24].mxu0 %vm900_vm1, %v1659_v55 }
 0xa39   : > { %3221 = vmatprep.mubr.msk.bf16.mxu0 %vm3581_vm0, %v3580_v1 }
 0xa6a   : > { %v1588_v13 = vpop.f32.mrb[28].mxu1 }
 0xa6b   : > { %v3179_v15 = vpop.f32.mrb[29].mxu1  ;;  %v1597_v18 = vmul.f32 %v3463_v14, %v1588_v13 }
 0xa6c   : > { %v1591_v17 = vpop.f32.mrb[30].mxu1 }
 0xa6d   : > { %v1598_v19 = vmul.f32 %v3465_v16, %v1591_v17  ;;  %v3180_v21 = vpop.f32.mrb[31].mxu1  ;;  %v3482_v17 = vld [vmem:[%s3827_s15] sm:$0xff] }
 0xa6f   : > { %v1599_v23 = vpack.c.bf16 %v1598_v19, %v1597_v18  ;;  %v3483_v19 = vld [vmem:[%s3827_s15 + $0x8] sm:$0xff]  ;;  %s4524_s15 = sld [smem:[#allocation16_spill]] }
 0xa71   : > { %3186 = vmatmul.mubr.msk.bf16.vlgmr.msra.gmra.mrb[32].mxu1 %vm900_vm1, %v1599_v23  ;;  %v3362_v23 = vld [vmem:[%s4487_s7] ss:$16 sps:$4 sm:$0xff]  }
 0xa72   : > { %3190 = vmatpush3.bf16.xpose.msra.mxu1 %v3857_v35  ;;  %3205 = vmatprep.mubr.msk.bf16.mxu1 %vm3581_vm0, %v3580_v1 }
 0xa73   : > { %3191 = vmatprep.subr.bf16.mxu1 %v3580_v1 }
 0xa7a   : > { %3192 = vmatpush3.bf16.xpose.msra.mxu1 %v3871_v40 }
 0xa7b   : > { %3193 = vmatprep.subr.bf16.mxu1 %v3580_v1 }
 0xa82   : > { %3194 = vmatpush3.bf16.xpose.msra.mxu1 %v3874_v41 }
 0xa83   : > { %3195 = vmatprep.subr.bf16.mxu1 %v3580_v1 }
 0xa8a   : > { %3196 = vmatpush3.bf16.xpose.msra.mxu1 %v3877_v42 }
 0xa8b   : > { %3197 = vmatprep.subr.bf16.mxu1 %v3580_v1 }
 0xa92   : > { %3198 = vmatpush3.bf16.xpose.msra.mxu1 %v3891_v44 }
 0xa93   : > { %3199 = vmatprep.subr.bf16.mxu1 %v3580_v1 }
 0xa9a   : > { %3200 = vmatpush3.bf16.xpose.msra.mxu1 %v3899_v46 }
 0xa9b   : > { %3201 = vmatprep.subr.bf16.mxu1 %v3580_v1 }
 0xaa2   : > { %3202 = vmatpush3.bf16.xpose.msra.mxu1 %v3907_v48 }
 0xaa3   : > { %3203 = vmatprep.subr.bf16.mxu1 %v3580_v1 }
 0xaaa   : > { %3204 = vmatpush3.bf16.xpose.msra.mxu1 %v3915_v50 }
 0xab1   : > { %3206 = vmatmul.mubr.msk.bf16.vlgmr.msra.gmra.mrb[36].mxu1 %vm900_vm1, %v1659_v55 }
 0xab2   : > { %2236 = vmatprep.mubr.bf16.mxu1 %v3582_v7 }
 0xb0b   : > { %v1760_v35 = vpop.f32.mrb[24].mxu0 }
 0xb0c   : > { %v3215_v40 = vpop.f32.mrb[25].mxu0 }
 0xb0d   : > { %v1763_v41 = vpop.f32.mrb[26].mxu0  ;;  %v3367_v40 = vld [vmem:[%s4487_s7 + $0xc] ss:$16 sps:$4 sm:$0xff]  }
 0xb0e   : > { %v3216_v42 = vpop.f32.mrb[27].mxu0  ;;  %2204 = vmatprep.subr.bf16.mxu1 %v3367_v40  ;;  %v3420_v40 = vld [vmem:[%s4489_s9 + $0x10] sm:$0xff]  }
 0xb0f   : > { %v3373_v42 = vld [vmem:[%s4487_s7 + $0x2c] ss:$16 sps:$4 sm:$0xff]  }
 0xb44   : > { %v1649_v44 = vpop.f32.mrb[32].mxu1 }
 0xb45   : > { %v4153_v46 = vadd.f32 %v1649_v44, %v4088_v22  ;;  %v3187_v24 = vpop.f32.mrb[33].mxu1  ;;  %v3368_v44 = vld [vmem:[%s4487_s7 + $0x20] ss:$16 sps:$4 sm:$0xff]  }
 0xb46   : > { %v1652_v48 = vpop.f32.mrb[34].mxu1 }
 0xb47   : > { %v4156_v26 = vadd.f32 %v1652_v48, %v4090_v25  ;;  %v3188_v50 = vpop.f32.mrb[35].mxu1 }
 0xb84   : > { %v1697_v27 = vpop.f32.mrb[36].mxu1 }
 0xb85   : > { %1706 = vrot.lane.b32.xlu1 %v1697_v27, %s3583_s26  ;;  %v3207_v28 = vpop.f32.mrb[37].mxu1  ;;  %s2908_s26 = sshll.u32 %s2661_s21, 7 }
 0xb86   : > { %v1700_v29 = vpop.f32.mrb[38].mxu1  ;;  %s4424_s20 = scalar_lea.hbm %s4526_s0, %s2908_s26 }
 0xb87   : > { %1710 = vrot.lane.b32.xlu0 %v1700_v29, %s3584_s17  ;;  %v3208_v30 = vpop.f32.mrb[39].mxu1  ;;  %s538_s17 = scalar_lea.vmem [#allocation2], %s2772_s30  ;;  %s3588_s30 = smov [#allocation2]  }
 0xbf7   : > { %v1707_v31 = vpop.permute.xlu1 %1706 }
 0xbf8   : > { %1712 = vrot.lane.b32.xlu1 %v1707_v31, %s3950_s25  ;;  %v3376_v31 = vld [vmem:[%s4487_s7 + $0x44] ss:$16 sps:$4 sm:$0xff]  }
 0xbf9   : > { %v1711_v32 = vpop.permute.xlu0 %1710 }
 0xbfa   : > { %1714 = vrot.lane.b32.xlu0 %v1711_v32, %s3950_s25  ;;  %v3379_v32 = vld [vmem:[%s4487_s7 + $0x4c] ss:$16 sps:$4 sm:$0xff]   ;;  %s2664_s25 = sshll.u32 %s538_s17, 4  ;;  %s4426_s25 = int_to_ptr.vmem [resolvable:$true] %s2664_s25 }
 0xbfb   : > { %s3484_s14 = scalar_lea.vmem %s4426_s25, 256 }
 0xbfc   : > { %p3485_p0 = scmp.ne.s32.totalorder %s4426_s25, %s3484_s14 }
 0xbfe   : > { %p3486_p1 = pnand %p3485_p0, %p3722_p3 }
 0xc00   : > { %p3487_p2 = pneg %p3486_p1 }
 0xc6a   : > { %v1713_v22 = vpop.permute.xlu1 %1712 }
 0xc6b   : > { %v1761_v33 = vadd.f32 %v1760_v35, %v1713_v22  ;;  %v3365_v35 = vld [vmem:[%s4487_s7 + $0x8] ss:$16 sps:$4 sm:$0xff]   ;;  %v3374_v22 = vld [vmem:[%s4487_s7 + $0x40] ss:$16 sps:$4 sm:$0xff]  }
 0xc6c   : > { %v1715_v34 = vpop.permute.xlu0 %1714  ;;  %2205 = vmatpush1.bf16.msra.mxu1 %v3365_v35  ;;  %v3419_v35 = vld [vmem:[%s4489_s9 + $0xd0] sm:$0xff]  }
 0xc6d   : > { %v1767_v36 = vmul.f32 0.17677669, %v1761_v33  ;;  %v1764_v37 = vadd.f32 %v1763_v41, %v1715_v34  ;;  %v3370_v41 = vld [vmem:[%s4487_s7 + $0x24] ss:$16 sps:$4 sm:$0xff]   ;;  %2206 = vmatprep.subr.bf16.mxu1 %v3373_v42  ;;  %v3377_v33 = vld [vmem:[%s4487_s7 + $0x48] ss:$16 sps:$4 sm:$0xff]  }
 0xc6e   : > { %v3382_v34 = vld [vmem:[%s4487_s7 + $0x64] ss:$16 sps:$4 sm:$0xff]   ;;  %v3422_v42 = vld [vmem:[%s4489_s9 + $0x58] sm:$0xff]  }
 0xc6f   : > { %v1768_v25 = vmul.f32 0.17677669, %v1764_v37  ;;  %v1769_v38 = vadd.f32 %v3958_v20, %v1767_v36  ;;  %v3385_v36 = vld [vmem:[%s4487_s7 + $0x6c] ss:$16 sps:$4 sm:$0xff]   ;;  %v3380_v37 = vld [vmem:[%s4487_s7 + $0x60] ss:$16 sps:$4 sm:$0xff]  }
 0xc71   : > { %v1771_v39 = vsel %vm900_vm1, %v1769_v38, -inf  ;;  %v1770_v43 = vadd.f32 %v3958_v20, %v1768_v25  ;;  %v3383_v25 = vld [vmem:[%s4487_s7 + $0x68] ss:$16 sps:$4 sm:$0xff]  }
 0xc72   : > { %1772 = vmax.xlane.f32.xlu1 %v1771_v39  ;;  %v3391_v39 = vld [vmem:[%s4487_s7 + $0x8c] ss:$16 sps:$4 sm:$0xff]  }
 0xc73   : > { %v1774_v45 = vsel %vm900_vm1, %v1770_v43, -inf }
 0xc74   : > { %1775 = vmax.xlane.f32.xlu0 %v1774_v45  ;;  %v3389_v45 = vld [vmem:[%s4487_s7 + $0x88] ss:$16 sps:$4 sm:$0xff]  }
 0xc83   : > { %1792 = vrot.lane.b32.xlu1 %v3943_v6, %s3587_s23 }
 0xc8a   : > { %1790 = vrot.lane.b32.xlu0 %v3925_v61, %s3587_s23  ;;  %s3488_s23 = sshll.u32 %s3588_s30, 4  ;;  %s3489_s23 = int_to_ptr.vmem [resolvable:$false] %s3488_s23 }
 0xc8b   : > { %s3490_s21 = scalar_lea.vmem %s3489_s23, 512  ;;  %p3491_p4 = scmp.lt.s32.totalorder %s4426_s25, %s3489_s23 }
 0xc8c   : > { %p3492_p5 = scmp.lt.s32.totalorder %s3490_s21, %s3484_s14 }
 0xc8e   : > { %p3493_p6 = por %p3492_p5, %p3491_p4 }
 0xc90   : > { %p3494_p7 = pnand %p3493_p6, %p3487_p2 }
 0xcff   : > { %v1773_v47 = vpop.xlane.xlu1 %1772 }
 0xd00   : > { %v1777_v49 = vsub.f32 %v1769_v38, %v1773_v47  ;;  %v3388_v38 = vld [vmem:[%s4487_s7 + $0x84] ss:$16 sps:$4 sm:$0xff]  }
 0xd01   : > { %v1776_v52 = vpop.xlane.xlu0 %1775  ;;  %v3394_v47 = vld [vmem:[%s4487_s7 + $0xa4] ss:$16 sps:$4 sm:$0xff]  }
 0xd02   : > { %v1779_v54 = vmul.f32 1.442695, %v1777_v49  ;;  %v1778_v56 = vsub.f32 %v1770_v43, %v1776_v52  ;;  %v3386_v43 = vld [vmem:[%s4487_s7 + $0x80] ss:$16 sps:$4 sm:$0xff]   ;;  %v3397_v49 = vld [vmem:[%s4487_s7 + $0xac] ss:$16 sps:$4 sm:$0xff]  }
 0xd03   : > { %v1793_v20 = vpop.permute.xlu1 %1792  ;;  %v3392_v52 = vld [vmem:[%s4487_s7 + $0xa0] ss:$16 sps:$4 sm:$0xff]  }
 0xd04   : > { %3466 = vpow2.f32 %v1779_v54  ;;  %v1781_v57 = vmul.f32 1.442695, %v1778_v56  ;;  %v3395_v54 = vld [vmem:[%s4487_s7 + $0xa8] ss:$16 sps:$4 sm:$0xff]   ;;  %v3400_v56 = vld [vmem:[%s4487_s7 + $0xc4] ss:$16 sps:$4 sm:$0xff]  }
 0xd05   : > { %v1791_v58 = vpop.permute.xlu0 %1790 }
 0xd06   : > { %3468 = vpow2.f32 %v1781_v57  ;;  %3218 = vmatpush3.bf16.msra.mxu0 %v1791_v58  ;;  %v3403_v57 = vld [vmem:[%s4487_s7 + $0xcc] ss:$16 sps:$4 sm:$0xff]   ;;  %v3398_v58 = vld [vmem:[%s4487_s7 + $0xc0] ss:$16 sps:$4 sm:$0xff]  }
 0xd07   : > { %3219 = vmatprep.subr.bf16.mxu0 %v3580_v1 }
 0xd0a   : > { %3220 = vmatpush3.bf16.msra.mxu0 %v1793_v20  ;;  %v3401_v20 = vld [vmem:[%s4487_s7 + $0xc8] ss:$16 sps:$4 sm:$0xff]  }
 0xd0b   : > { %3225 = vmatprep.subr.bf16.mxu0 %v3580_v1 }
 0xd0e   : > { %v3467_v6 = vpop.eup %3466 }
 0xd0f   : > { %v1783_v60 = vsel %vm900_vm1, %v3467_v6, 0.0 }
 0xd10   : > { %v3469_v61 = vpop.eup %3468  ;;  %1784 = vadd.xlane.f32.xlu1 %v1783_v60  ;;  %v3404_v60 = vld [vmem:[%s4487_s7 + $0xe0] ss:$16 sps:$4 sm:$0xff]  }
 0xd11   : > { %v1786_v62 = vsel %vm900_vm1, %v3469_v61, 0.0  ;;  %v1789_v63 = vpack.c.bf16 %v3469_v61, %v3467_v6  ;;  %v3406_v6 = vld [vmem:[%s4487_s7 + $0xe4] ss:$16 sps:$4 sm:$0xff]   ;;  %v3407_v61 = vld [vmem:[%s4487_s7 + $0xe8] ss:$16 sps:$4 sm:$0xff]  }
 0xd12   : > { %1787 = vadd.xlane.f32.xlu0 %v1786_v62  ;;  %v3409_v62 = vld [vmem:[%s4487_s7 + $0xec] ss:$16 sps:$4 sm:$0xff]  }
 0xd13   : > { %3222 = vmatmul.mubr.msk.bf16.vlgmr.msra.gmra.mrb[28].mxu0 %vm900_vm1, %v1789_v63  ;;  %v3410_v63 = vld [vmem:[%s4489_s9 + $0x40] sm:$0xff]  }
 0xd14   : > { %3229 = vmatprep.mubr.msk.bf16.mxu0 %vm3581_vm0, %v3580_v1  ;;  %3226 = vmatpush3.bf16.msra.mxu0 %v3360_v0  ;;  %v3411_v0 = vld [vmem:[%s4489_s9 + $0xc0] sm:$0xff]  }
 0xd15   : > { %3227 = vmatprep.subr.bf16.mxu0 %v3580_v1 }
 0xd18   : > { %3228 = vmatpush3.bf16.msra.mxu0 %v3361_v51 }
 0xd9d   : > { %v1785_v53 = vpop.xlane.xlu1 %1784 }
 0xd9e   : > { %3470 = vrcp.f32 %v1785_v53 }
 0xd9f   : > { %v1788_v2 = vpop.xlane.xlu0 %1787 }
 0xda0   : > { %3472 = vrcp.f32 %v1788_v2 }
 0xda8   : > { %v3471_v5 = vpop.eup %3470 }
 0xdaa   : > { %v3473_v59 = vpop.eup %3472 }
 0xde6   : > { %v1833_v4 = vpop.f32.mrb[28].mxu0 }
 0xde7   : > { %v3223_v8 = vpop.f32.mrb[29].mxu0  ;;  %v1842_v55 = vmul.f32 %v3471_v5, %v1833_v4 }
 0xde8   : > { %v1836_v9 = vpop.f32.mrb[30].mxu0 }
 0xde9   : > { %v1843_v10 = vmul.f32 %v3473_v59, %v1836_v9  ;;  %v3224_v3 = vpop.f32.mrb[31].mxu0  ;;  %v2836_v9 = vld [vmem:[%s4491_s11] ss:$0 sm:$0xff] }
 0xdeb   : > { %v1844_v1 = vpack.c.bf16 %v1843_v10, %v1842_v55 }
 0xded   : > { %3230 = vmatmul.mubr.msk.bf16.vlgmr.msra.gmra.mrb[32].mxu0 %vm900_vm1, %v1844_v1 }
 0xdee   : > { %2193 = vmatprep.mubr.bf16.mxu0 %v3582_v7  ;;  %v3364_v7 = vld [vmem:[%s4487_s7 + $0x4] ss:$16 sps:$4 sm:$0xff]  }
 0xdef   : > { %2161 = vmatprep.subr.bf16.mxu0 %v3364_v7  ;;  %v3418_v7 = vld [vmem:[%s4489_s9 + $0x50] sm:$0xff]  }
 0xdf0   : > { %2162 = vmatpush1.bf16.msra.mxu0 %v3362_v23  ;;  %v3417_v23 = vld [vmem:[%s4489_s9 + $0x88] sm:$0xff]  }
 0xdf1   : > { %2163 = vmatprep.subr.bf16.mxu0 %v3370_v41  ;;  %v3421_v41 = vld [vmem:[%s4489_s9 + $0x90] sm:$0xff]  }
 0xdf4   : > { %2164 = vmatpush1.bf16.msra.mxu0 %v3368_v44  ;;  %v3423_v44 = vld [vmem:[%s4489_s9 + $0xd8] sm:$0xff]  }
 0xdf5   : > { %2165 = vmatprep.subr.bf16.mxu0 %v3376_v31  ;;  %v3433_v31 = vld [vmem:[%s4489_s9 + $0xa8] sm:$0xff]  }
 0xdf8   : > { %2166 = vmatpush1.bf16.msra.mxu0 %v3374_v22  ;;  %v3435_v22 = vld [vmem:[%s4489_s9 + $0xf0] sm:$0xff]  }
 0xdf9   : > { %2167 = vmatprep.subr.bf16.mxu0 %v3382_v34  ;;  %v3437_v34 = vld [vmem:[%s4489_s9 + $0xb0] sm:$0xff]  }
 0xdfc   : > { %2168 = vmatpush1.bf16.msra.mxu0 %v3380_v37  ;;  %v3439_v37 = vld [vmem:[%s4489_s9 + $0xf8] sm:$0xff]  }
 0xdfd   : > { %2169 = vmatprep.subr.bf16.mxu0 %v3388_v38  ;;  %v3441_v38 = vld [vmem:[%s4489_s9 + $0xb8] sm:$0xff]  }
 0xe00   : > { %2170 = vmatpush1.bf16.msra.mxu0 %v3386_v43 }
 0xe01   : > { %2171 = vmatprep.subr.bf16.mxu0 %v3394_v47 }
 0xe04   : > { %2172 = vmatpush1.bf16.msra.mxu0 %v3392_v52 }
 0xe05   : > { %2173 = vmatprep.subr.bf16.mxu0 %v3400_v56 }
 0xe08   : > { %2174 = vmatpush1.bf16.msra.mxu0 %v3398_v58 }
 0xe09   : > { %2175 = vmatprep.subr.bf16.mxu0 %v3406_v6 }
 0xe0c   : > { %2176 = vmatpush1.bf16.msra.mxu0 %v3404_v60 }
 0xe0d   : > { %2993 = vmatprep.subr.bf16.mxu0 %v3410_v63 }
 0xec0   : > { %v1894_v11 = vpop.f32.mrb[32].mxu0 }
 0xec1   : > { %v1901_v12 = vadd.f32 %v1894_v11, %v4153_v46  ;;  %v3231_v13 = vpop.f32.mrb[33].mxu0  ;;  %v3371_v46 = vld [vmem:[%s4487_s7 + $0x28] ss:$16 sps:$4 sm:$0xff]   ;;  %v2837_v11 = vld [vmem:[%s4492_s12] ss:$0 sm:$0xff] }
 0xec2   : > { %v1897_v14 = vpop.f32.mrb[34].mxu0  ;;  %2207 = vmatpush1.bf16.msra.mxu1 %v3371_v46  ;;  %v3424_v46 = vld [vmem:[%s4489_s9 + $0x18] sm:$0xff]  }
 0xec3   : > { %v1902_v15 = vadd.f32 %v1897_v14, %v4156_v26  ;;  %v3232_v16 = vpop.f32.mrb[35].mxu0  ;;  %v1903_v18 = vadd.f32 %v3482_v17, %v1901_v12  ;;  %2208 = vmatprep.subr.bf16.mxu1 %v3379_v32  ;;  %v3434_v32 = vld [vmem:[%s4489_s9 + $0x70] sm:$0xff]  }
 0xec4   : > { %v3413_v16 = vld [vmem:[%s4489_s9 + $0x80] sm:$0xff]  }
 0xec5   : > { %1907 = vadd.xlane.f32.xlu0 %v1903_v18  ;;  %v1904_v21 = vadd.f32 %v3483_v19, %v1902_v15  ;;  %v3412_v15 = vld [vmem:[%s4489_s9] sm:$0xff]   ;;  %v3415_v19 = vld [vmem:[%s4489_s9 + $0xc8] sm:$0xff]  }
 0xec6   : > { %2209 = vmatpush1.bf16.msra.mxu1 %v3377_v33  ;;  %v3436_v33 = vld [vmem:[%s4489_s9 + $0x30] sm:$0xff]  }
 0xec7   : > { %1909 = vadd.xlane.f32.xlu1 %v1904_v21  ;;  %2210 = vmatprep.subr.bf16.mxu1 %v3385_v36  ;;  %v3438_v36 = vld [vmem:[%s4489_s9 + $0x78] sm:$0xff]  }
 0xeca   : > { %2211 = vmatpush1.bf16.msra.mxu1 %v3383_v25  ;;  %v3440_v25 = vld [vmem:[%s4489_s9 + $0x38] sm:$0xff]  }
 0xecb   : > { %2212 = vmatprep.subr.bf16.mxu1 %v3391_v39  ;;  %v1981_v39 = vlaneseq }
 0xecd   : > { %v1982_v43 = vshrl.u32 %v1981_v39, 7 }
 0xece   : > { %2213 = vmatpush1.bf16.msra.mxu1 %v3389_v45 }
 0xecf   : > { %2214 = vmatprep.subr.bf16.mxu1 %v3397_v49  ;;  %v1983_v45 = vsub.s32 0, %v1982_v43  ;;  %v1991_v47 = vsub.s32 2, %v1982_v43  ;;  %v1979_v49 = vld [vmem:[%s4488_s8] sm:$0xf]  ;;  %v1987_v52 = vsub.s32 1, %v1982_v43 }
 0xed1   : > { %v1984_v56 = vrot.slane %v1979_v49, %v1983_v45  ;;  %v1988_v58 = vrot.slane %v1979_v49, %v1987_v52 }
 0xed2   : > { %2215 = vmatpush1.bf16.msra.mxu1 %v3395_v54  ;;  %v1995_v54 = vsub.s32 3, %v1982_v43 }
 0xed3   : > { %2216 = vmatprep.subr.bf16.mxu1 %v3403_v57  ;;  %v1992_v57 = vrot.slane %v1979_v49, %v1991_v47 }
 0xed6   : > { %2217 = vmatpush1.bf16.msra.mxu1 %v3401_v20  ;;  %v1996_v20 = vrot.slane %v1979_v49, %v1995_v54 }
 0xed7   : > { %2218 = vmatprep.subr.bf16.mxu1 %v3409_v62 }
 0xeda   : > { %2219 = vmatpush1.bf16.msra.mxu1 %v3407_v61 }
 0xedb   : > { %3015 = vmatprep.subr.bf16.mxu1 %v3411_v0 }
 0xf52   : > { %v1908_v24 = vpop.xlane.xlu0 %1907 }
 0xf53   : > { %v1912_v48 = vmul.f32 0.0078125, %v1908_v24  ;;  %v3425_v24 = vld [vmem:[%s4489_s9 + $0x98] sm:$0xff]  }
 0xf54   : > { %v1910_v26 = vpop.xlane.xlu1 %1909 }
 0xf55   : > { %v4214_v50 = vsub.f32 %v1903_v18, %v1912_v48  ;;  %v1913_v27 = vmul.f32 0.0078125, %v1910_v26  ;;  %v3414_v18 = vld [vmem:[%s4489_s9 + $0x48] sm:$0xff]   ;;  %v3426_v48 = vld [vmem:[%s4489_s9 + $0x60] sm:$0xff]  }
 0xf56   : > { %v3427_v26 = vld [vmem:[%s4489_s9 + $0xe0] sm:$0xff]  }
 0xf57   : > { %v4216_v28 = vsub.f32 %v1904_v21, %v1913_v27  ;;  %v1916_v29 = vmul.f32 %v4214_v50, %v4214_v50  ;;  %v3416_v21 = vld [vmem:[%s4489_s9 + $0x8] sm:$0xff]   ;;  %v3429_v27 = vld [vmem:[%s4489_s9 + $0xa0] sm:$0xff]  }
 0xf59   : > { %1918 = vadd.xlane.f32.xlu0 %v1916_v29  ;;  %v1917_v30 = vmul.f32 %v4216_v28, %v4216_v28  ;;  %v3431_v29 = vld [vmem:[%s4489_s9 + $0xe8] sm:$0xff]  }
 0xf5b   : > { %1920 = vadd.xlane.f32.xlu1 %v1917_v30  ;;  %v3432_v30 = vld [vmem:[%s4489_s9 + $0x28] sm:$0xff]  }
 0xfe6   : > { %v1919_v51 = vpop.xlane.xlu0 %1918 }
 0xfe7   : > { %v1922_v53 = vmul.f32 0.0078125, %v1919_v51 }
 0xfe8   : > { %v1921_v2 = vpop.xlane.xlu1 %1920 }
 0xfe9   : > { %v1924_v4 = vadd.f32 1e-05, %v1922_v53  ;;  %v1923_v5 = vmul.f32 0.0078125, %v1921_v2 }
 0xfeb   : > { %3474 = vrsqrt.f32 %v1924_v4  ;;  %v1925_v8 = vadd.f32 1e-05, %v1923_v5 }
 0xfed   : > { %3476 = vrsqrt.f32 %v1925_v8 }
 0xff5   : > { %v3475_v59 = vpop.eup %3474 }
 0xff6   : > { %v1928_v55 = vmul.f32 %v3475_v59, %v4214_v50  ;;  %v3428_v50 = vld [vmem:[%s4489_s9 + $0x20] sm:$0xff]  }
 0xff7   : > { %v3477_v10 = vpop.eup %3476 }
 0xff8   : > { %v1929_v3 = vmul.f32 %v3477_v10, %v4216_v28  ;;  %v1936_v1 = vmul.f32 %v2836_v9, %v1928_v55  ;;  %v3430_v28 = vld [vmem:[%s4489_s9 + $0x68] sm:$0xff]  }
 0xffa   : > { %v1937_v12 = vmul.f32 %v2836_v9, %v1929_v3  ;;  %v4308_v13 = vadd.f32 %v2837_v11, %v1936_v1 }
 0xffc   : > { %v4310_v14 = vadd.f32 %v2837_v11, %v1937_v12 }
 0xffe   : > { %v1946_v17 = vpack.c.bf16 %v4310_v14, %v4308_v13 }
0x1000   : > { %2194 = vmatmul.mubr.bf16.vlgmr.msra.gmra.mrb[36].mxu0 %v1946_v17  ;;  %2237 = vmatmul.mubr.bf16.vlgmr.msra.gmra.mrb[40].mxu1 %v1946_v17 }
0x1001   : > { %2994 = vmatpush3.bf16.msra.mxu0 %v3412_v15  ;;  %3016 = vmatpush3.bf16.msra.mxu1 %v3413_v16 }
0x1002   : > { %2995 = vmatprep.subr.bf16.mxu0 %v3414_v18  ;;  %3017 = vmatprep.subr.bf16.mxu1 %v3415_v19 }
0x1005   : > { %2996 = vmatpush3.bf16.msra.mxu0 %v3416_v21  ;;  %3018 = vmatpush3.bf16.msra.mxu1 %v3417_v23 }
0x1006   : > { %2997 = vmatprep.subr.bf16.mxu0 %v3418_v7  ;;  %3019 = vmatprep.subr.bf16.mxu1 %v3419_v35 }
0x1009   : > { %2998 = vmatpush3.bf16.msra.mxu0 %v3420_v40  ;;  %3020 = vmatpush3.bf16.msra.mxu1 %v3421_v41  ;;  %v2870_v41 = vld [vmem:[%s4490_s10] ss:$0 sm:$0xff] }
0x100a   : > { %2999 = vmatprep.subr.bf16.mxu0 %v3422_v42  ;;  %3021 = vmatprep.subr.bf16.mxu1 %v3423_v44 }
0x100d   : > { %3000 = vmatpush3.bf16.msra.mxu0 %v3424_v46  ;;  %3022 = vmatpush3.bf16.msra.mxu1 %v3425_v24 }
0x100e   : > { %3001 = vmatprep.subr.bf16.mxu0 %v3426_v48  ;;  %3023 = vmatprep.subr.bf16.mxu1 %v3427_v26 }
0x1011   : > { %3002 = vmatpush3.bf16.msra.mxu0 %v3428_v50  ;;  %3024 = vmatpush3.bf16.msra.mxu1 %v3429_v27 }
0x1012   : > { %3003 = vmatprep.subr.bf16.mxu0 %v3430_v28  ;;  %3025 = vmatprep.subr.bf16.mxu1 %v3431_v29 }
0x1015   : > { %3004 = vmatpush3.bf16.msra.mxu0 %v3432_v30  ;;  %3026 = vmatpush3.bf16.msra.mxu1 %v3433_v31 }
0x1016   : > { %3005 = vmatprep.subr.bf16.mxu0 %v3434_v32  ;;  %3027 = vmatprep.subr.bf16.mxu1 %v3435_v22 }
0x1019   : > { %3006 = vmatpush3.bf16.msra.mxu0 %v3436_v33  ;;  %3028 = vmatpush3.bf16.msra.mxu1 %v3437_v34 }
0x101a   : > { %3007 = vmatprep.subr.bf16.mxu0 %v3438_v36  ;;  %3029 = vmatprep.subr.bf16.mxu1 %v3439_v37 }
0x101d   : > { %3008 = vmatpush3.bf16.msra.mxu0 %v3440_v25  ;;  %3030 = vmatpush3.bf16.msra.mxu1 %v3441_v38 }
0x10d3   : > { %v2195_v6 = vpop.f32.mrb[36].mxu0  ;;  %v2238_v60 = vpop.f32.mrb[40].mxu1 }
0x10d4   : > { %v2196_v61 = vadd.f32 %v2195_v6, %v1984_v56  ;;  %v2239_v62 = vadd.f32 %v2238_v60, %v1992_v57  ;;  %v2197_v63 = vpop.f32.mrb[37].mxu0  ;;  %v2240_v0 = vpop.f32.mrb[41].mxu1  ;;  %v2904_v60 = vld [vmem:[%s4524_s15] ss:$0 sm:$0xff] }
0x10d5   : > { %v2198_v51 = vadd.f32 %v2197_v63, %v1988_v58  ;;  %v2241_v53 = vadd.f32 %v2240_v0, %v1996_v20  ;;  %v2199_v2 = vpop.f32.mrb[38].mxu0  ;;  %v2242_v4 = vpop.f32.mrb[42].mxu1 }
0x10d6   : > { %v2200_v5 = vadd.f32 %v2199_v2, %v1984_v56  ;;  %v2243_v8 = vadd.f32 %v2242_v4, %v1992_v57  ;;  %v2201_v59 = vpop.f32.mrb[39].mxu0  ;;  %v2244_v9 = vpop.f32.mrb[43].mxu1  ;;  %v2247_v3 = vmax.f32 %v2196_v61, 0.0  ;;  %v2249_v1 = vmax.f32 %v2239_v62, 0.0 }
0x10d7   : > { %v2202_v55 = vadd.f32 %v2201_v59, %v1988_v58  ;;  %v2245_v10 = vadd.f32 %v2244_v9, %v1996_v20  ;;  %v2248_v15 = vmax.f32 %v2198_v51, 0.0  ;;  %v2250_v16 = vmax.f32 %v2241_v53, 0.0  ;;  %v2903_v58 = vld [vmem:[%s4493_s13] ss:$0 sm:$0xff] }
0x10d8   : > { %v2251_v11 = vmax.f32 %v2200_v5, 0.0  ;;  %v2253_v12 = vmax.f32 %v2243_v8, 0.0 }
0x10d9   : > { %v2252_v17 = vmax.f32 %v2202_v55, 0.0  ;;  %v2254_v18 = vmax.f32 %v2245_v10, 0.0 }
0x10da   : > { %v2255_v19 = vpack.c.bf16 %v2251_v11, %v2247_v3  ;;  %v2257_v21 = vpack.c.bf16 %v2253_v12, %v2249_v1 }
0x10db   : > { %v2256_v23 = vpack.c.bf16 %v2252_v17, %v2248_v15  ;;  %v2258_v7 = vpack.c.bf16 %v2254_v18, %v2250_v16 }
0x10dd   : > { %2554 = vmatprep.mubr.bf16.mxu0 %v2256_v23  ;;  %2595 = vmatprep.mubr.bf16.mxu1 %v2258_v7 }
0x10de   : > { %2555 = vmatmul.mubr.bf16.vlgmr.msra.gmra.mrb[40].mxu0 %v2255_v19  ;;  %2596 = vmatmul.mubr.bf16.vlgmr.msra.gmra.mrb[44].mxu1 %v2257_v21 }
0x11b1   : > { %v3009_v35 = vpop.f32.mrb[40].mxu0  ;;  %v3031_v40 = vpop.f32.mrb[44].mxu1 }
0x11b2   : > { %v3010_v42 = vpop.f32.mrb[41].mxu0  ;;  %v3032_v44 = vpop.f32.mrb[45].mxu1 }
0x11b3   : > { %v3011_v46 = vadd.f32 %v3010_v42, %v3009_v35  ;;  %v3033_v24 = vadd.f32 %v3032_v44, %v3031_v40  ;;  %v3012_v48 = vpop.f32.mrb[42].mxu0  ;;  %v3034_v26 = vpop.f32.mrb[46].mxu1 }
0x11b4   : > { %v3013_v50 = vpop.f32.mrb[43].mxu0  ;;  %v3035_v27 = vpop.f32.mrb[47].mxu1 }
0x11b5   : > { %v2557_v28 = vadd.f32 %v3011_v46, %v2870_v41  ;;  %v3014_v29 = vadd.f32 %v3013_v50, %v3012_v48  ;;  %v3036_v30 = vadd.f32 %v3035_v27, %v3034_v26 }
0x11b7   : > { %v2598_v31 = vadd.f32 %v3033_v24, %v2557_v28  ;;  %v2560_v32 = vadd.f32 %v3014_v29, %v2870_v41 }
0x11b9   : > { %v2601_v22 = vadd.f32 %v3036_v30, %v2560_v32  ;;  %v2604_v33 = vadd.f32 %v2598_v31, %v4308_v13 }
0x11bb   : > { %2608 = vadd.xlane.f32.xlu0 %v2604_v33  ;;  %v2605_v34 = vadd.f32 %v2601_v22, %v4310_v14 }
0x11bd   : > { %2610 = vadd.xlane.f32.xlu1 %v2605_v34 }
0x1248   : > { %v2609_v36 = vpop.xlane.xlu0 %2608 }
0x1249   : > { %v2612_v37 = vmul.f32 0.0078125, %v2609_v36 }
0x124a   : > { %v2611_v25 = vpop.xlane.xlu1 %2610 }
0x124b   : > { %v2614_v38 = vsub.f32 %v2604_v33, %v2612_v37  ;;  %v2613_v39 = vmul.f32 0.0078125, %v2611_v25 }
0x124d   : > { %v2615_v43 = vsub.f32 %v2605_v34, %v2613_v39  ;;  %v2616_v45 = vmul.f32 %v2614_v38, %v2614_v38 }
0x124f   : > { %2618 = vadd.xlane.f32.xlu0 %v2616_v45  ;;  %v2617_v47 = vmul.f32 %v2615_v43, %v2615_v43 }
0x1251   : > { %2620 = vadd.xlane.f32.xlu1 %v2617_v47 }
0x12dc   : > { %v2619_v49 = vpop.xlane.xlu0 %2618 }
0x12dd   : > { %v2622_v52 = vmul.f32 0.0078125, %v2619_v49 }
0x12de   : > { %v2621_v13 = vpop.xlane.xlu1 %2620 }
0x12df   : > { %v2624_v54 = vadd.f32 1e-05, %v2622_v52  ;;  %v2623_v56 = vmul.f32 0.0078125, %v2621_v13 }
0x12e1   : > { %3478 = vrsqrt.f32 %v2624_v54  ;;  %v2625_v14 = vadd.f32 1e-05, %v2623_v56 }
0x12e3   : > { %3480 = vrsqrt.f32 %v2625_v14 }
0x12eb   : > { %v3479_v57 = vpop.eup %3478 }
0x12ec   : > { %v2628_v20 = vmul.f32 %v3479_v57, %v2614_v38 }
0x12ed   : > { %v3481_v6 = vpop.eup %3480 }
0x12ee   : > { %v2636_v61 = vmul.f32 %v2903_v58, %v2628_v20  ;;  %v2629_v62 = vmul.f32 %v3481_v6, %v2615_v43 }
0x12f0   : > { %v2637_v63 = vmul.f32 %v2903_v58, %v2629_v62  ;;  %v2644_v0 = vadd.f32 %v2904_v60, %v2636_v61 }
0x12f2   : > { %v2645_v51 = vadd.f32 %v2904_v60, %v2637_v63  ;;  %2646 = vst [vmem:[%s538_s17] sm:$0xff] %v2644_v0 }
0x12f4   : > { %2647 = vst [vmem:[%s538_s17 + $0x8] sm:$0xff] %v2645_v51 }
0x12f5   : > { %3497 = shalt.err (!%p3494_p7)
}
0x12f6   : > { %s3498_s29 = scalar_lea.hbm %s4424_s20, 256  ;;  %s3502_s15 = scalar_lea.hbm %s4526_s0, 1024 }
0x12f7   : > { %p3499_p9 = scmp.ne.s32.totalorder %s4424_s20, %s3498_s29  ;;  %p3503_p12 = scmp.lt.u32.totalorder %s4424_s20, %s4526_s0 }
0x12f8   : > { %p3504_p13 = scmp.lt.u32.totalorder %s3502_s15, %s3498_s29  ;;  %p3506_p1 = scmp.lt.u32.totalorder %s3498_s29, %s4424_s20 }
0x12f9   : > { %p3500_p10 = pnand %p3499_p9, %p3722_p3 }
0x12fa   : > { %p3505_p0 = por %p3504_p13, %p3503_p12 }
0x12fb   : > { %p3501_p11 = pneg %p3500_p10 }
0x12fc   : > { %p3507_p2 = por %p3506_p1, %p3505_p0 }
0x12fe   : > { %p3508_p4 = pnand %p3507_p2, %p3501_p11 }
0x1300   : > { %3511 = shalt.err (!%p3508_p4)
}
0x1301   : > { %s3589_s22 = smov 128   ;;  %s3590_s28 = smov 8  }
0x1302   : > { %3233 = dma.vmem_to_hbm [thread:$0]  (%p3722_p3), %s4426_s25, 256, %s4424_s20, %s4428_s18, %s3589_s22, %s3589_s22, %s3590_s28  }
0x1303 PF: > { %s4527_s14 = sld [smem:[#allocation9_spill]]  ;;  %s4528_s30 = sld [smem:[#allocation5_spill]] }
0x1309   : > { %p3239_p5 = scmp.ge.s32.totalorder %s4527_s14, 2  ;;  %s2679_s21 = sand.u32 1, %s4528_s30  }
0x130a   : > { %s2680_s29 = scalar_lea.sflag [#allocation3], %s2679_s21 }
0x130b   : > { %p3236_p6 = pnand %p3239_p5, %p3731_p8 }
0x130d   : > { %3545 = dma.done.wait (!%p3236_p6), %s2680_s29, 256  }
0x130e   : > { %3547 = vsyncadd (!%p3236_p6), %s2680_s29, 4294967040  ;;  %s28_s25 = sadd.s32 1, %s4527_s14   ;;  %s4530_s27 = sld [smem:[#allocation6_spill]] }
0x130f   : > { %p25_p7 = scmp.ge.s32.totalorder %s28_s25, 6   ;;  %s4531_s20 = sld [smem:[#allocation14_spill]] }
0x1310   : > { %s4532_s21 = sld [smem:[#allocation7_spill]]  ;;  %s4533_s22 = sld [smem:[#allocation8_spill]] }
0x1311   : > { %s4534_s23 = sld [smem:[#allocation10_spill]]  ;;  %s4535_s24 = sld [smem:[#allocation12_spill]] }
0x1312   : > { %s4536_s18 = smov %s3554_s19  ;;  %27 = sbr.rel (!%p25_p7) target bundleno = 9 (0x9), region = 121 }
0x1314   : > { %s4537_s19 = smov %s4530_s27 }
0x1319   :  { %2685 = vsyncpa [#allocation3], 1 }
0x131a   :  { %2687 = vsyncpa [#allocation3 + $0x1], 1 }

// kernel: encoder_forward.2
= control target key start
LH: loop header
LB: loop body
LE: loop exit
PB: predicated region body
PF: predicated region fallthrough
CT: control target
= control target key end

     0   :  { %s3579_s18 = smov 0   ;;  %s3581_s19 = smov 0   ;;  %s4310_s0 = inlined_call_operand.vmem [shape: f32[2,32,128], index: 0, kind: input, shape index: {}, may-alias: {0,1}]   ;;  %s4311_s1 = inlined_call_operand.vmem [shape: f32[2,32,128], index: 1, kind: input, shape index: {}, may-alias: {0,1}]   ;;  %s4312_s2 = inlined_call_operand.vmem [shape: f32[2,1,32], index: 2, kind: input, shape index: {}]   ;;  %s4313_s3 = inlined_call_operand.vmem [shape: bf16[128,32], index: 3, kind: input, shape index: {}]   ;;  %s4314_s4 = inlined_call_operand.vmem [shape: bf16[128,128], index: 4, kind: input, shape index: {}]   ;;  %s4315_s5 = inlined_call_operand.vmem [shape: bf16[128,256], index: 5, kind: input, shape index: {}]   ;;  %s4316_s6 = inlined_call_operand.vmem [shape: bf16[128,128], index: 6, kind: input, shape index: {}]   ;;  %s4317_s7 = inlined_call_operand.vmem [shape: bf16[128,512], index: 7, kind: input, shape index: {}]   ;;  %s4318_s8 = inlined_call_operand.vmem [shape: f32[1,512], index: 8, kind: input, shape index: {}]   ;;  %s4319_s9 = inlined_call_operand.vmem [shape: bf16[512,128], index: 9, kind: input, shape index: {}]   ;;  %s4320_s10 = inlined_call_operand.vmem [shape: f32[1,128], index: 10, kind: input, shape index: {}]   ;;  %s4321_s11 = inlined_call_operand.vmem [shape: f32[1,128], index: 11, kind: input, shape index: {}]   ;;  %s4322_s12 = inlined_call_operand.vmem [shape: f32[1,128], index: 12, kind: input, shape index: {}]   ;;  %s4323_s13 = inlined_call_operand.vmem [shape: f32[1,128], index: 13, kind: input, shape index: {}]   ;;  %s4324_s14 = inlined_call_operand.vmem [shape: f32[1,128], index: 14, kind: input, shape index: {}]   ;;  %s4325_s15 = inlined_call_operand.vmem [shape: f32[2,32,128], index: 15, kind: output, shape index: {}]  }
   0x1   :  { %4330 = sst [smem:[#allocation7_spill]] %s4310_s0  ;;  %s3583_s20 = smov 0  }
   0x2   :  { %s3585_s21 = smov 0   ;;  %s3587_s22 = smov 0  }
   0x3 LB: > { %4331 = sst [smem:[#allocation2_spill]] %s3481_s20  ;;  %s34_s23 = sadd.s32 1, %s3481_s20  ;;  %s3489_s22 = sphi %s3587_s22, %s25_s22   ;;  %s3485_s21 = sphi %s3585_s21, %s4342_s21   ;;  %s3481_s20 = sphi %s3583_s20, %s4341_s20   ;;  %s3477_s19 = sphi %s3581_s19, %s4340_s19   ;;  %s3473_s18 = sphi %s3579_s18, %s4339_s18  }
   0x4   : > { %4332 = sst [smem:[#allocation3_spill]] %s3485_s21  ;;  %s37_s24 = sadd.s32 1, %s3485_s21 }
   0x5   : > { %4333 = sst [smem:[#allocation4_spill]] %s3489_s22  ;;  %p35_p0 = scmp.ge.s32.totalorder %s34_s23, 2 }
   0x6   : > { %p2773_p1 = scmp.ge.s32.totalorder %s3489_s22, 1  ;;  %p476_p2 = scmp.lt.s32.totalorder %s3489_s22, 5 }
   0x7   : > { %s4344_s23 = smov (%p35_p0, %s34_s23), 0  ;;  %s4346_s24 = smov (!%p35_p0, %s37_s24), %s3485_s21 }
   0x8   : > { %4334 = sst [smem:[#allocation5_spill]] %s4344_s23  ;;  %p477_p3 = pnand %p2773_p1, %p476_p2 }
   0x9   : > { %p39_p4 = scmp.ge.s32.totalorder %s4346_s24, 2  ;;  %v3281_v0 = vld [vmem:[%s4314_s4] sm:$0xff] (!%p477_p3)   ;;  %v3491_v1 = vmov (!%p477_p3), 0.0   ;;  %vm3492_vm0 = vmmov (!%p477_p3), 0   ;;  %v3285_v4 = vld [vmem:[%s4314_s4 + $0x8] sm:$0xff] (!%p477_p3)   ;;  %s2774_s25 = sshll.u32 (!%p477_p3), %s3473_s18, 1 }
   0xa   : > { %480 = sbr.rel (%p477_p3) target bundleno = 4834 (0x12e2), region = 80  ;;  %3037 = vmatprep.subr.bf16.mxu0 (!%p477_p3), %v3491_v1  ;;  %v3282_v2 = vld [vmem:[%s4315_s5 + $0x4] ss:$8 sps:$4 sm:$0xff] (!%p477_p3)   ;;  %v3284_v3 = vld [vmem:[%s4315_s5] ss:$8 sps:$4 sm:$0xff] (!%p477_p3)   ;;  %3053 = vmatprep.mubr.msk.bf16.mxu0 (!%p477_p3), %vm3492_vm0, %v3491_v1  ;;  %p541_p5 = scmp.lt.s32.totalorder (!%p477_p3), %s3477_s19, 1 }
   0xb   : > { %s4348_s24 = smov (%p39_p4, %s4346_s24), 0  ;;  %3038 = vmatpush3.bf16.msra.mxu0 (!%p477_p3), %v3281_v0  ;;  %779 = vmatprep.subr.bf16.mxu1 (!%p477_p3), %v3282_v2  ;;  %v3286_v5 = vld [vmem:[%s4315_s5 + $0x14] ss:$8 sps:$4 sm:$0xff] (!%p477_p3)   ;;  %v3288_v6 = vld [vmem:[%s4315_s5 + $0x10] ss:$8 sps:$4 sm:$0xff] (!%p477_p3)   ;;  %v3493_v7 = vmov (!%p477_p3), 0  }
   0xc   : > { %4335 = sst [smem:[#allocation6_spill]] %s4348_s24  ;;  %3039 = vmatprep.subr.bf16.mxu0 (!%p477_p3), %v3491_v1  ;;  %780 = vmatpush1.bf16.msra.mxu1 (!%p477_p3), %v3284_v3  ;;  %v3289_v8 = vld [vmem:[%s4314_s4 + $0x10] sm:$0xff] (!%p477_p3)   ;;  %v3290_v9 = vld [vmem:[%s4315_s5 + $0x24] ss:$8 sps:$4 sm:$0xff] (!%p477_p3)   ;;  %p543_p6 = scmp.lt.s32.totalorder (!%p477_p3), %s2774_s25, 3  ;;  %v3293_v12 = vld [vmem:[%s4314_s4 + $0x18] sm:$0xff] (!%p477_p3)  }
   0xd   : > { %811 = vmatprep.mubr.bf16.mxu1 (!%p477_p3), %v3493_v7  ;;  %781 = vmatprep.subr.bf16.mxu1 (!%p477_p3), %v3286_v5  ;;  %v3292_v10 = vld [vmem:[%s4315_s5 + $0x20] ss:$8 sps:$4 sm:$0xff] (!%p477_p3)   ;;  %v3294_v11 = vld [vmem:[%s4315_s5 + $0x34] ss:$8 sps:$4 sm:$0xff] (!%p477_p3)   ;;  %v3296_v13 = vld [vmem:[%s4315_s5 + $0x30] ss:$8 sps:$4 sm:$0xff] (!%p477_p3)  }
   0xe   : > { %v3298_v14 = vld [vmem:[%s4315_s5 + $0x44] ss:$8 sps:$4 sm:$0xff] (!%p477_p3)   ;;  %v3300_v16 = vld [vmem:[%s4315_s5 + $0x40] ss:$8 sps:$4 sm:$0xff] (!%p477_p3)   ;;  %v3302_v17 = vld [vmem:[%s4315_s5 + $0x54] ss:$8 sps:$4 sm:$0xff] (!%p477_p3)  }
   0xf   : > { %3040 = vmatpush3.bf16.msra.mxu0 (!%p477_p3), %v3285_v4  ;;  %v3297_v15 = vld [vmem:[%s4314_s4 + $0x20] sm:$0xff] (!%p477_p3)   ;;  %v3301_v18 = vld [vmem:[%s4314_s4 + $0x28] sm:$0xff] (!%p477_p3)   ;;  %v3304_v19 = vld [vmem:[%s4315_s5 + $0x50] ss:$8 sps:$4 sm:$0xff] (!%p477_p3)   ;;  %s4336_s0 = sld [smem:[#allocation7_spill]] (!%p477_p3)  ;;  %vm910_vm1 = vcmask (!%p477_p3), 261120  }
  0x10   : > { %3041 = vmatprep.subr.bf16.mxu0 (!%p477_p3), %v3491_v1  ;;  %782 = vmatpush1.bf16.msra.mxu1 (!%p477_p3), %v3288_v6  ;;  %v3306_v20 = vld [vmem:[%s4315_s5 + $0x64] ss:$8 sps:$4 sm:$0xff] (!%p477_p3)   ;;  %v3305_v21 = vld [vmem:[%s4314_s4 + $0x30] sm:$0xff] (!%p477_p3)   ;;  %v3308_v22 = vld [vmem:[%s4315_s5 + $0x60] ss:$8 sps:$4 sm:$0xff] (!%p477_p3)   ;;  %s3495_s21 = smov (!%p477_p3), 360  }
  0x11   : > { %s4350_s19 = smov (!%p541_p5, %s3477_s19), 1  ;;  %783 = vmatprep.subr.bf16.mxu1 %v3290_v9  ;;  %s4352_s25 = smov (!%p543_p6, %s2774_s25), 3  ;;  %v3309_v23 = vld [vmem:[%s4314_s4 + $0x38] sm:$0xff]   ;;  %v3313_v31 = vld [vmem:[%s4313_s3] sm:$0xff]   ;;  %v3314_v36 = vld [vmem:[%s4313_s3 + $0x8] sm:$0xff]  }
  0x12   : > { %s2775_s28 = sshll.u32 %s4350_s19, 2  ;;  %v3310_v24 = vld [vmem:[%s4315_s5 + $0x74] ss:$8 sps:$4 sm:$0xff]   ;;  %v3312_v26 = vld [vmem:[%s4315_s5 + $0x70] ss:$8 sps:$4 sm:$0xff]   ;;  %v3729_v35 = vsel %vm910_vm1, %v3313_v31, 0  ;;  %s557_s27 = scalar_lea.vmem %s4312_s2, %s4350_s19 }
  0x13   : > { %3042 = vmatpush3.bf16.msra.mxu0 %v3289_v8  ;;  %s3674_s16 = sadd.s32 %s2775_s28, %s4352_s25  ;;  %s2911_s25 = sshll.u32 %s4350_s19, 5  ;;  %v3315_v37 = vld [vmem:[%s4313_s3 + $0x10] sm:$0xff]   ;;  %v3316_v38 = vld [vmem:[%s4313_s3 + $0x18] sm:$0xff]   ;;  %v3743_v40 = vsel %vm910_vm1, %v3314_v36, 0  ;;  %v3317_v43 = vld [vmem:[%s4313_s3 + $0x20] sm:$0xff]  }
  0x14   : > { %3043 = vmatprep.subr.bf16.mxu0 %v3491_v1  ;;  %784 = vmatpush1.bf16.msra.mxu1 %v3292_v10  ;;  %s4328_s29 = sshll.u32 %s3674_s16, 3  ;;  %v3746_v41 = vsel %vm910_vm1, %v3315_v37, 0  ;;  %v3749_v42 = vsel %vm910_vm1, %v3316_v38, 0  ;;  %v3763_v44 = vsel %vm910_vm1, %v3317_v43, 0  ;;  %v3318_v45 = vld [vmem:[%s4313_s3 + $0x28] sm:$0xff]   ;;  %v3319_v47 = vld [vmem:[%s4313_s3 + $0x30] sm:$0xff]  }
  0x15   : > { %785 = vmatprep.subr.bf16.mxu1 %v3294_v11  ;;  %s3699_s20 = scalar_lea.vmem %s4336_s0, %s4328_s29  ;;  %s554_s29 = scalar_lea.vmem %s4311_s1, %s2911_s25  ;;  %v3771_v46 = vsel %vm910_vm1, %v3318_v45, 0  ;;  %v3779_v48 = vsel %vm910_vm1, %v3319_v47, 0  ;;  %v3320_v49 = vld [vmem:[%s4313_s3 + $0x38] sm:$0xff]  }
  0x16   : > { %v569_v25 = vld [vmem:[%s3699_s20] sm:$0xff]  ;;  %v570_v27 = vld [vmem:[%s3699_s20 + $0x8] sm:$0xff]  ;;  %v573_v33 = vld [vmem:[%s554_s29 + $0x10] sm:$0xff]  ;;  %v3787_v50 = vsel %vm910_vm1, %v3320_v49, 0  ;;  %s3494_s25 = smov 352   ;;  %s2815_s28 = sshll.u32 %s3473_s18, 4 }
  0x17   : > { %3044 = vmatpush3.bf16.msra.mxu0 %v3293_v12  ;;  %v571_v28 = vld [vmem:[%s554_s29] sm:$0xff]  ;;  %v572_v29 = vld [vmem:[%s554_s29 + $0x8] sm:$0xff]  ;;  %v575_v30 = vpack.c.bf16 %v570_v27, %v569_v25  ;;  %v574_v34 = vld [vmem:[%s554_s29 + $0x18] sm:$0xff]  ;;  %s3822_s17 = sand.u32 127, %s2815_s28   ;;  %s3496_s18 = smov 96  }
  0x18   : > { %3045 = vmatprep.subr.bf16.mxu0 %v3491_v1  ;;  %786 = vmatpush1.bf16.msra.mxu1 %v3296_v13  ;;  %v681_v32 = vpack.c.bf16 %v572_v29, %v571_v28  ;;  %v682_v39 = vpack.c.bf16 %v574_v34, %v573_v33  ;;  %s3497_s24 = smov 64  }
  0x19   : > { %787 = vmatprep.subr.bf16.mxu1 %v3298_v14 }
  0x1b   : > { %3046 = vmatpush3.bf16.msra.mxu0 %v3297_v15 }
  0x1c   : > { %3047 = vmatprep.subr.bf16.mxu0 %v3491_v1  ;;  %788 = vmatpush1.bf16.msra.mxu1 %v3300_v16 }
  0x1d   : > { %789 = vmatprep.subr.bf16.mxu1 %v3302_v17 }
  0x1f   : > { %3048 = vmatpush3.bf16.msra.mxu0 %v3301_v18 }
  0x20   : > { %3049 = vmatprep.subr.bf16.mxu0 %v3491_v1  ;;  %790 = vmatpush1.bf16.msra.mxu1 %v3304_v19 }
  0x21   : > { %791 = vmatprep.subr.bf16.mxu1 %v3306_v20  ;;  %v3830_v20 = vld [vmem:[%s557_s27] ss:$0 sm:$0xff]  ;;  %s3498_s27 = smov 32  }
  0x23   : > { %3050 = vmatpush3.bf16.msra.mxu0 %v3305_v21 }
  0x24   : > { %3051 = vmatprep.subr.bf16.mxu0 %v3491_v1  ;;  %792 = vmatpush1.bf16.msra.mxu1 %v3308_v22 }
  0x25   : > { %793 = vmatprep.subr.bf16.mxu1 %v3310_v24 }
  0x27   : > { %3052 = vmatpush3.bf16.msra.mxu0 %v3309_v23 }
  0x28   : > { %3057 = vmatprep.subr.bf16.mxu0 %v3491_v1  ;;  %794 = vmatpush1.bf16.msra.mxu1 %v3312_v26 }
  0x29   : > { %3077 = vmatprep.subr.bf16.mxu1 %v3491_v1 }
  0x2a   : > { %3054 = vmatmul.mubr.bf16.vlgmr.msra.gmra.mrb[0].mxu0 %v575_v30 }
  0x2b   : > { %3073 = vmatprep.mubr.msk.bf16.mxu0 %vm3492_vm0, %v3491_v1  ;;  %812 = vmatmul.mubr.bf16.vlgmr.msra.gmra.mrb[0].mxu1 %v681_v32 }
  0x2c   : > { %821 = vmatprep.mubr.bf16.mxu1 %v3493_v7 }
  0x30   : > { %3058 = vmatpush3.bf16.xpose.msra.mxu0 %v3729_v35 }
  0x31   : > { %3059 = vmatprep.subr.bf16.mxu0 %v3491_v1 }
  0x33   : > { %822 = vmatmul.mubr.bf16.gmra.mrb[4].mxu1 %v682_v39 }
  0x34   : > { %3081 = vmatprep.mubr.msk.bf16.mxu1 %vm3492_vm0, %v3491_v1 }
  0x38   : > { %3060 = vmatpush3.bf16.xpose.msra.mxu0 %v3743_v40 }
  0x39   : > { %3061 = vmatprep.subr.bf16.mxu0 %v3491_v1 }
  0x40   : > { %3062 = vmatpush3.bf16.xpose.msra.mxu0 %v3746_v41 }
  0x41   : > { %3063 = vmatprep.subr.bf16.mxu0 %v3491_v1 }
  0x48   : > { %3064 = vmatpush3.bf16.xpose.msra.mxu0 %v3749_v42 }
  0x49   : > { %3065 = vmatprep.subr.bf16.mxu0 %v3491_v1 }
  0x50   : > { %3066 = vmatpush3.bf16.xpose.msra.mxu0 %v3763_v44 }
  0x51   : > { %3067 = vmatprep.subr.bf16.mxu0 %v3491_v1 }
  0x58   : > { %3068 = vmatpush3.bf16.xpose.msra.mxu0 %v3771_v46 }
  0x59   : > { %3069 = vmatprep.subr.bf16.mxu0 %v3491_v1 }
  0x60   : > { %3070 = vmatpush3.bf16.xpose.msra.mxu0 %v3779_v48 }
  0x61   : > { %3071 = vmatprep.subr.bf16.mxu0 %v3491_v1 }
  0x68   : > { %3072 = vmatpush3.bf16.xpose.msra.mxu0 %v3787_v50 }
  0x69   : > { %3113 = vmatprep.subr.bf16.mxu0 %v3491_v1 }
  0xfd   : > { %v674_v51 = vpop.f32.mrb[0].mxu0 }
  0xfe   : > { %v3055_v52 = vpop.f32.mrb[1].mxu0  ;;  %v813_v53 = vpop.f32.mrb[0].mxu1 }
  0xff   : > { %v677_v54 = vpop.f32.mrb[2].mxu0  ;;  %v815_v56 = vpop.f32.mrb[1].mxu1 }
 0x100   : > { %v3791_v55 = vpack.c.bf16 %v677_v54, %v674_v51  ;;  %v3056_v57 = vpop.f32.mrb[3].mxu0  ;;  %v817_v58 = vpop.f32.mrb[2].mxu1 }
 0x101   : > { %v3793_v59 = vpack.c.bf16 %v817_v58, %v813_v53  ;;  %v819_v60 = vpop.f32.mrb[3].mxu1 }
 0x102   : > { %3074 = vmatmul.mubr.msk.bf16.vlgmr.msra.gmra.mrb[4].mxu0 %vm910_vm1, %v3791_v55  ;;  %v3797_v61 = vpack.c.bf16 %v819_v60, %v815_v56 }
 0x103   : > { %3117 = vmatprep.mubr.msk.bf16.mxu0 %vm3492_vm0, %v3491_v1  ;;  %v995_v62 = vsel %vm910_vm1, %v3793_v59, 0 }
 0x104   : > { %3078 = vmatpush3.bf16.xpose.msra.mxu1 %v995_v62 }
 0x105   : > { %3079 = vmatprep.subr.bf16.mxu1 %v3491_v1 }
 0x106   : > { %v823_v63 = vpop.f32.mrb[4].mxu1 }
 0x107   : > { %v825_v0 = vpop.f32.mrb[5].mxu1 }
 0x108   : > { %v827_v2 = vpop.f32.mrb[6].mxu1 }
 0x109   : > { %v3804_v3 = vpack.c.bf16 %v827_v2, %v823_v63  ;;  %v829_v5 = vpop.f32.mrb[7].mxu1 }
 0x10a   : > { %v3815_v6 = vpack.c.bf16 %v829_v5, %v825_v0 }
 0x10b   : > { %v998_v4 = vsel %vm910_vm1, %v3804_v3, 0 }
 0x10c   : > { %3080 = vmatpush3.bf16.xpose.msra.mxu1 %v998_v4 }
 0x10d   : > { %3085 = vmatprep.subr.bf16.mxu1 %v3491_v1 }
 0x113   : > { %3082 = vmatmul.mubr.msk.bf16.vlgmr.msra.gmra.mrb[8].mxu1 %vm910_vm1, %v3791_v55 }
 0x114   : > { %3086 = vmatpush3.bf16.msra.mxu1 %v3797_v61  ;;  %3089 = vmatprep.mubr.msk.bf16.mxu1 %vm3492_vm0, %v3491_v1 }
 0x115   : > { %3087 = vmatprep.subr.bf16.mxu1 %v3491_v1 }
 0x118   : > { %3088 = vmatpush3.bf16.msra.mxu1 %v3815_v6 }
 0x119   : > { %3093 = vmatprep.subr.bf16.mxu1 %v3491_v1 }
 0x1d5   : > { %v972_v8 = vpop.f32.mrb[4].mxu0 }
 0x1d6   : > { %981 = vrot.lane.b32.xlu0 %v972_v8, %s3494_s25  ;;  %v3075_v9 = vpop.f32.mrb[5].mxu0 }
 0x1d7   : > { %v975_v10 = vpop.f32.mrb[6].mxu0 }
 0x1d8   : > { %v3076_v11 = vpop.f32.mrb[7].mxu0 }
 0x1da   : > { %985 = vrot.lane.b32.xlu0 %v975_v10, %s3495_s21 }
 0x1e6   : > { %v1034_v12 = vpop.f32.mrb[8].mxu1 }
 0x1e7   : > { %v3083_v13 = vpop.f32.mrb[9].mxu1 }
 0x1e8   : > { %v1037_v14 = vpop.f32.mrb[10].mxu1 }
 0x1e9   : > { %v3084_v15 = vpop.f32.mrb[11].mxu1 }
 0x248   : > { %v982_v16 = vpop.permute.xlu0 %981 }
 0x249   : > { %990 = vrot.lane.b32.xlu1 %v982_v16, %s3822_s17 }
 0x24c   : > { %v986_v17 = vpop.permute.xlu0 %985 }
 0x24d   : > { %992 = vrot.lane.b32.xlu1 %v986_v17, %s3822_s17 }
 0x2bb   : > { %v991_v18 = vpop.permute.xlu1 %990 }
 0x2bc   : > { %v1035_v19 = vadd.f32 %v1034_v12, %v991_v18 }
 0x2be   : > { %v1041_v21 = vmul.f32 0.17677669, %v1035_v19 }
 0x2bf   : > { %v993_v22 = vpop.permute.xlu1 %992 }
 0x2c0   : > { %v1038_v23 = vadd.f32 %v1037_v14, %v993_v22  ;;  %v1049_v24 = vadd.f32 %v3830_v20, %v1041_v21 }
 0x2c2   : > { %v1042_v25 = vmul.f32 0.17677669, %v1038_v23  ;;  %v1051_v26 = vsel %vm910_vm1, %v1049_v24, -inf }
 0x2c3   : > { %1052 = vmax.xlane.f32.xlu0 %v1051_v26 }
 0x2c4   : > { %v1050_v27 = vadd.f32 %v3830_v20, %v1042_v25 }
 0x2c6   : > { %v1054_v28 = vsel %vm910_vm1, %v1050_v27, -inf }
 0x2c7   : > { %1055 = vmax.xlane.f32.xlu1 %v1054_v28 }
 0x2d8   : > { %1180 = vrot.lane.b32.xlu1 %v3793_v59, %s3496_s18 }
 0x2d9   : > { %1120 = vrot.lane.b32.xlu0 %v3791_v55, %s3496_s18 }
 0x2dd   : > { %1182 = vrot.lane.b32.xlu0 %v3804_v3, %s3496_s18 }
 0x350   : > { %v1053_v29 = vpop.xlane.xlu0 %1052 }
 0x351   : > { %v1057_v30 = vsub.f32 %v1049_v24, %v1053_v29 }
 0x353   : > { %v1059_v31 = vmul.f32 1.442695, %v1057_v30 }
 0x354   : > { %v1056_v32 = vpop.xlane.xlu1 %1055  ;;  %v1121_v36 = vpop.permute.xlu0 %1120 }
 0x355   : > { %v1058_v33 = vsub.f32 %v1050_v27, %v1056_v32  ;;  %3409 = vpow2.f32 %v1059_v31 }
 0x357   : > { %v1061_v34 = vmul.f32 1.442695, %v1058_v33 }
 0x358   : > { %v1181_v37 = vpop.permute.xlu1 %1180  ;;  %v1183_v39 = vpop.permute.xlu0 %1182 }
 0x359   : > { %3411 = vpow2.f32 %v1061_v34  ;;  %v1185_v38 = vsel %vm910_vm1, %v1181_v37, 0  ;;  %v1188_v43 = vsel %vm910_vm1, %v1183_v39, 0  ;;  %v3321_v34 = vld [vmem:[%s4316_s6] sm:$0xff]   ;;  %v3323_v37 = vld [vmem:[%s4316_s6 + $0x10] sm:$0xff]  }
 0x35a   : > { %3114 = vmatpush3.bf16.xpose.msra.mxu0 %v1185_v38  ;;  %v3324_v38 = vld [vmem:[%s4316_s6 + $0x18] sm:$0xff]  }
 0x35b   : > { %3115 = vmatprep.subr.bf16.mxu0 %v3491_v1 }
 0x35f   : > { %v3845_v45 = vpop.eup %3409 }
 0x360   : > { %v1063_v32 = vsel %vm910_vm1, %v3845_v45, 0.0 }
 0x362   : > { %3116 = vmatpush3.bf16.xpose.msra.mxu0 %v1188_v43 }
 0x363   : > { %v3847_v47 = vpop.eup %3411  ;;  %3121 = vmatprep.subr.bf16.mxu0 %v3491_v1 }
 0x364   : > { %v1069_v49 = vpack.c.bf16 %v3847_v47, %v3845_v45  ;;  %v1066_v33 = vsel %vm910_vm1, %v3847_v47, 0.0 }
 0x366   : > { %3090 = vmatmul.mubr.msk.bf16.vlgmr.msra.gmra.mrb[12].mxu1 %vm910_vm1, %v1069_v49 }
 0x367   : > { %3094 = vmatpush3.bf16.xpose.msra.mxu1 %v3729_v35  ;;  %3109 = vmatprep.mubr.msk.bf16.mxu1 %vm3492_vm0, %v3491_v1 }
 0x368   : > { %3095 = vmatprep.subr.bf16.mxu1 %v3491_v1 }
 0x369   : > { %3118 = vmatmul.mubr.msk.bf16.vlgmr.msra.gmra.mrb[8].mxu0 %vm910_vm1, %v1121_v36 }
 0x36a   : > { %3125 = vmatprep.mubr.msk.bf16.mxu0 %vm3492_vm0, %v3491_v1 }
 0x36f   : > { %3096 = vmatpush3.bf16.xpose.msra.mxu1 %v3743_v40 }
 0x370   : > { %3097 = vmatprep.subr.bf16.mxu1 %v3491_v1 }
 0x377   : > { %3098 = vmatpush3.bf16.xpose.msra.mxu1 %v3746_v41 }
 0x378   : > { %3099 = vmatprep.subr.bf16.mxu1 %v3491_v1 }
 0x37f   : > { %3100 = vmatpush3.bf16.xpose.msra.mxu1 %v3749_v42 }
 0x380   : > { %3101 = vmatprep.subr.bf16.mxu1 %v3491_v1 }
 0x387   : > { %3102 = vmatpush3.bf16.xpose.msra.mxu1 %v3763_v44 }
 0x388   : > { %3103 = vmatprep.subr.bf16.mxu1 %v3491_v1 }
 0x38f   : > { %3104 = vmatpush3.bf16.xpose.msra.mxu1 %v3771_v46 }
 0x390   : > { %3105 = vmatprep.subr.bf16.mxu1 %v3491_v1 }
 0x397   : > { %3106 = vmatpush3.bf16.xpose.msra.mxu1 %v3779_v48 }
 0x398   : > { %3107 = vmatprep.subr.bf16.mxu1 %v3491_v1 }
 0x39f   : > { %3108 = vmatpush3.bf16.xpose.msra.mxu1 %v3787_v50 }
 0x3a0   : > { %3137 = vmatprep.subr.bf16.mxu1 %v3491_v1 }
 0x3a6   : > { %3110 = vmatmul.mubr.msk.bf16.vlgmr.msra.gmra.mrb[16].mxu1 %vm910_vm1, %v1121_v36  ;;  %v3322_v36 = vld [vmem:[%s4316_s6 + $0x8] sm:$0xff]  }
 0x3a7   : > { %3141 = vmatprep.mubr.msk.bf16.mxu1 %vm3492_vm0, %v3491_v1  ;;  %3138 = vmatpush3.bf16.msra.mxu1 %v3321_v34 }
 0x3a8   : > { %3139 = vmatprep.subr.bf16.mxu1 %v3491_v1 }
 0x3ab   : > { %3140 = vmatpush3.bf16.msra.mxu1 %v3322_v36 }
 0x3ac   : > { %3165 = vmatprep.subr.bf16.mxu1 %v3491_v1 }
 0x439   : > { %v3877_v51 = vpop.f32.mrb[12].mxu1 }
 0x43a   : > { %v3091_v52 = vpop.f32.mrb[13].mxu1 }
 0x43b   : > { %v3879_v53 = vpop.f32.mrb[14].mxu1 }
 0x43c   : > { %v3092_v54 = vpop.f32.mrb[15].mxu1  ;;  %v1224_v56 = vpop.f32.mrb[8].mxu0 }
 0x43d   : > { %v3119_v57 = vpop.f32.mrb[9].mxu0 }
 0x43e   : > { %v1227_v58 = vpop.f32.mrb[10].mxu0 }
 0x43f   : > { %v3120_v60 = vpop.f32.mrb[11].mxu0 }
 0x479   : > { %v1159_v62 = vpop.f32.mrb[16].mxu1 }
 0x47a   : > { %1168 = vrot.lane.b32.xlu1 %v1159_v62, %s3494_s25  ;;  %v3111_v63 = vpop.f32.mrb[17].mxu1 }
 0x47b   : > { %v1162_v0 = vpop.f32.mrb[18].mxu1 }
 0x47c   : > { %1172 = vrot.lane.b32.xlu0 %v1162_v0, %s3495_s21  ;;  %v3112_v2 = vpop.f32.mrb[19].mxu1 }
 0x4ec   : > { %v1169_v4 = vpop.permute.xlu1 %1168 }
 0x4ed   : > { %1174 = vrot.lane.b32.xlu1 %v1169_v4, %s3822_s17 }
 0x4ee   : > { %v1173_v5 = vpop.permute.xlu0 %1172 }
 0x4ef   : > { %1176 = vrot.lane.b32.xlu0 %v1173_v5, %s3822_s17 }
 0x55f   : > { %v1175_v8 = vpop.permute.xlu1 %1174 }
 0x560   : > { %v1225_v9 = vadd.f32 %v1224_v56, %v1175_v8 }
 0x561   : > { %v1177_v10 = vpop.permute.xlu0 %1176 }
 0x562   : > { %v1231_v11 = vmul.f32 0.17677669, %v1225_v9  ;;  %v1228_v12 = vadd.f32 %v1227_v58, %v1177_v10 }
 0x564   : > { %v1232_v13 = vmul.f32 0.17677669, %v1228_v12  ;;  %v1233_v14 = vadd.f32 %v3830_v20, %v1231_v11 }
 0x566   : > { %v1235_v15 = vsel %vm910_vm1, %v1233_v14, -inf  ;;  %v1234_v16 = vadd.f32 %v3830_v20, %v1232_v13 }
 0x567   : > { %1236 = vmax.xlane.f32.xlu1 %v1235_v15 }
 0x568   : > { %v1238_v17 = vsel %vm910_vm1, %v1234_v16, -inf }
 0x569   : > { %1239 = vmax.xlane.f32.xlu0 %v1238_v17 }
 0x578   : > { %1258 = vrot.lane.b32.xlu1 %v3815_v6, %s3496_s18 }
 0x57f   : > { %1256 = vrot.lane.b32.xlu0 %v3797_v61, %s3496_s18 }
 0x5f4   : > { %v1237_v18 = vpop.xlane.xlu1 %1236 }
 0x5f5   : > { %v1241_v19 = vsub.f32 %v1233_v14, %v1237_v18 }
 0x5f6   : > { %v1240_v21 = vpop.xlane.xlu0 %1239 }
 0x5f7   : > { %v1243_v22 = vmul.f32 1.442695, %v1241_v19  ;;  %v1242_v23 = vsub.f32 %v1234_v16, %v1240_v21 }
 0x5f8   : > { %v1259_v26 = vpop.permute.xlu1 %1258 }
 0x5f9   : > { %3413 = vpow2.f32 %v1243_v22  ;;  %v1245_v24 = vmul.f32 1.442695, %v1242_v23 }
 0x5fa   : > { %v1257_v25 = vpop.permute.xlu0 %1256 }
 0x5fb   : > { %3415 = vpow2.f32 %v1245_v24  ;;  %3122 = vmatpush3.bf16.msra.mxu0 %v1257_v25 }
 0x5fc   : > { %3123 = vmatprep.subr.bf16.mxu0 %v3491_v1 }
 0x5ff   : > { %3124 = vmatpush3.bf16.msra.mxu0 %v1259_v26 }
 0x600   : > { %3129 = vmatprep.subr.bf16.mxu0 %v3491_v1 }
 0x603   : > { %v3414_v27 = vpop.eup %3413 }
 0x604   : > { %v1247_v28 = vsel %vm910_vm1, %v3414_v27, 0.0 }
 0x605   : > { %v3416_v29 = vpop.eup %3415  ;;  %1248 = vadd.xlane.f32.xlu1 %v1247_v28 }
 0x606   : > { %v1250_v30 = vsel %vm910_vm1, %v3416_v29, 0.0  ;;  %v1253_v31 = vpack.c.bf16 %v3416_v29, %v3414_v27 }
 0x607   : > { %1251 = vadd.xlane.f32.xlu0 %v1250_v30 }
 0x608   : > { %3126 = vmatmul.mubr.msk.bf16.vlgmr.msra.gmra.mrb[12].mxu0 %vm910_vm1, %v1253_v31 }
 0x609   : > { %1064 = vadd.xlane.f32.xlu1 %v1063_v32  ;;  %3133 = vmatprep.mubr.msk.bf16.mxu0 %vm3492_vm0, %v3491_v1 }
 0x60a   : > { %3130 = vmatpush3.bf16.msra.mxu0 %v3323_v37 }
 0x60b   : > { %3131 = vmatprep.subr.bf16.mxu0 %v3491_v1 }
 0x60d   : > { %1067 = vadd.xlane.f32.xlu1 %v1066_v33 }
 0x60e   : > { %3132 = vmatpush3.bf16.msra.mxu0 %v3324_v38 }
 0x60f   : > { %3145 = vmatprep.subr.bf16.mxu0 %v3491_v1 }
 0x61d   : > { %1423 = vrot.lane.b32.xlu0 %v3791_v55, %s3497_s24 }
 0x61e   : > { %1481 = vrot.lane.b32.xlu1 %v3793_v59, %s3497_s24 }
 0x621   : > { %1483 = vrot.lane.b32.xlu0 %v3804_v3, %s3497_s24 }
 0x692   : > { %v1249_v39 = vpop.xlane.xlu1 %1248 }
 0x694   : > { %v1252_v49 = vpop.xlane.xlu0 %1251 }
 0x696   : > { %v1065_v43 = vpop.xlane.xlu1 %1064 }
 0x697   : > { %3417 = vrcp.f32 %v1065_v43 }
 0x698   : > { %v1424_v60 = vpop.permute.xlu0 %1423 }
 0x69a   : > { %v1068_v45 = vpop.xlane.xlu1 %1067 }
 0x69b   : > { %3419 = vrcp.f32 %v1068_v45 }
 0x69c   : > { %v1484_v63 = vpop.permute.xlu0 %1483  ;;  %3421 = vrcp.f32 %v1249_v39 }
 0x69d   : > { %v1489_v0 = vsel %vm910_vm1, %v1484_v63, 0  ;;  %3423 = vrcp.f32 %v1252_v49 }
 0x69e   : > { %v1482_v57 = vpop.permute.xlu1 %1481 }
 0x69f   : > { %v1486_v62 = vsel %vm910_vm1, %v1482_v57, 0 }
 0x6a1   : > { %v3418_v47 = vpop.eup %3417 }
 0x6a2   : > { %v1116_v54 = vmul.f32 %v3418_v47, %v3877_v51 }
 0x6a5   : > { %v3420_v52 = vpop.eup %3419 }
 0x6a6   : > { %v1117_v56 = vmul.f32 %v3420_v52, %v3879_v53  ;;  %v3422_v51 = vpop.eup %3421 }
 0x6a7   : > { %v3424_v5 = vpop.eup %3423 }
 0x6a8   : > { %v1118_v58 = vpack.c.bf16 %v1117_v56, %v1116_v54 }
 0x6aa   : > { %3142 = vmatmul.mubr.msk.bf16.vlgmr.msra.gmra.mrb[20].mxu1 %vm910_vm1, %v1118_v58 }
 0x6ab   : > { %3166 = vmatpush3.bf16.xpose.msra.mxu1 %v1486_v62  ;;  %3169 = vmatprep.mubr.msk.bf16.mxu1 %vm3492_vm0, %v3491_v1 }
 0x6ac   : > { %3167 = vmatprep.subr.bf16.mxu1 %v3491_v1 }
 0x6b3   : > { %3168 = vmatpush3.bf16.xpose.msra.mxu1 %v1489_v0 }
 0x6b4   : > { %3173 = vmatprep.subr.bf16.mxu1 %v3491_v1 }
 0x6ba   : > { %3170 = vmatmul.mubr.msk.bf16.vlgmr.msra.gmra.mrb[24].mxu1 %vm910_vm1, %v1424_v60 }
 0x6bb   : > { %3177 = vmatprep.mubr.msk.bf16.mxu1 %vm3492_vm0, %v3491_v1 }
 0x6db   : > { %v1299_v53 = vpop.f32.mrb[12].mxu0 }
 0x6dc   : > { %v1308_v2 = vmul.f32 %v3422_v51, %v1299_v53  ;;  %v3127_v4 = vpop.f32.mrb[13].mxu0 }
 0x6dd   : > { %v1302_v8 = vpop.f32.mrb[14].mxu0 }
 0x6de   : > { %v1309_v9 = vmul.f32 %v3424_v5, %v1302_v8  ;;  %v3128_v10 = vpop.f32.mrb[15].mxu0  ;;  %v3325_v5 = vld [vmem:[%s4316_s6 + $0x20] sm:$0xff]   ;;  %v3326_v8 = vld [vmem:[%s4316_s6 + $0x28] sm:$0xff]  }
 0x6e0   : > { %v1310_v11 = vpack.c.bf16 %v1309_v9, %v1308_v2 }
 0x6e2   : > { %3134 = vmatmul.mubr.msk.bf16.vlgmr.msra.gmra.mrb[16].mxu0 %vm910_vm1, %v1310_v11 }
 0x6e3   : > { %3146 = vmatpush3.bf16.xpose.msra.mxu0 %v3729_v35  ;;  %3161 = vmatprep.mubr.msk.bf16.mxu0 %vm3492_vm0, %v3491_v1 }
 0x6e4   : > { %3147 = vmatprep.subr.bf16.mxu0 %v3491_v1 }
 0x6eb   : > { %3148 = vmatpush3.bf16.xpose.msra.mxu0 %v3743_v40 }
 0x6ec   : > { %3149 = vmatprep.subr.bf16.mxu0 %v3491_v1 }
 0x6f3   : > { %3150 = vmatpush3.bf16.xpose.msra.mxu0 %v3746_v41 }
 0x6f4   : > { %3151 = vmatprep.subr.bf16.mxu0 %v3491_v1 }
 0x6fb   : > { %3152 = vmatpush3.bf16.xpose.msra.mxu0 %v3749_v42 }
 0x6fc   : > { %3153 = vmatprep.subr.bf16.mxu0 %v3491_v1 }
 0x703   : > { %3154 = vmatpush3.bf16.xpose.msra.mxu0 %v3763_v44 }
 0x704   : > { %3155 = vmatprep.subr.bf16.mxu0 %v3491_v1 }
 0x70b   : > { %3156 = vmatpush3.bf16.xpose.msra.mxu0 %v3771_v46 }
 0x70c   : > { %3157 = vmatprep.subr.bf16.mxu0 %v3491_v1 }
 0x713   : > { %3158 = vmatpush3.bf16.xpose.msra.mxu0 %v3779_v48 }
 0x714   : > { %3159 = vmatprep.subr.bf16.mxu0 %v3491_v1 }
 0x71b   : > { %3160 = vmatpush3.bf16.xpose.msra.mxu0 %v3787_v50 }
 0x71c   : > { %3209 = vmatprep.subr.bf16.mxu0 %v3491_v1 }
 0x722   : > { %3162 = vmatmul.mubr.msk.bf16.vlgmr.msra.gmra.mrb[20].mxu0 %vm910_vm1, %v1424_v60 }
 0x723   : > { %3213 = vmatprep.mubr.msk.bf16.mxu0 %vm3492_vm0, %v3491_v1 }
 0x77d   : > { %v1416_v12 = vpop.f32.mrb[20].mxu1 }
 0x77e   : > { %v3143_v13 = vpop.f32.mrb[21].mxu1 }
 0x77f   : > { %v1419_v14 = vpop.f32.mrb[22].mxu1 }
 0x780   : > { %v3144_v15 = vpop.f32.mrb[23].mxu1 }
 0x78d   : > { %v1525_v16 = vpop.f32.mrb[24].mxu1 }
 0x78e   : > { %v3171_v17 = vpop.f32.mrb[25].mxu1 }
 0x78f   : > { %v1528_v18 = vpop.f32.mrb[26].mxu1 }
 0x790   : > { %v3172_v19 = vpop.f32.mrb[27].mxu1 }
 0x7b5   : > { %v1360_v21 = vpop.f32.mrb[16].mxu0 }
 0x7b6   : > { %v3960_v22 = vadd.f32 %v1416_v12, %v1360_v21  ;;  %v3135_v23 = vpop.f32.mrb[17].mxu0 }
 0x7b7   : > { %v1363_v24 = vpop.f32.mrb[18].mxu0 }
 0x7b8   : > { %v3962_v25 = vadd.f32 %v1419_v14, %v1363_v24  ;;  %v3136_v26 = vpop.f32.mrb[19].mxu0 }
 0x7f5   : > { %v1462_v27 = vpop.f32.mrb[20].mxu0 }
 0x7f6   : > { %1471 = vrot.lane.b32.xlu0 %v1462_v27, %s3494_s25  ;;  %v3163_v28 = vpop.f32.mrb[21].mxu0 }
 0x7f7   : > { %v1465_v29 = vpop.f32.mrb[22].mxu0 }
 0x7f8   : > { %1475 = vrot.lane.b32.xlu1 %v1465_v29, %s3495_s21  ;;  %v3164_v30 = vpop.f32.mrb[23].mxu0 }
 0x868   : > { %v1472_v31 = vpop.permute.xlu0 %1471 }
 0x869   : > { %1477 = vrot.lane.b32.xlu0 %v1472_v31, %s3822_s17 }
 0x86a   : > { %v1476_v32 = vpop.permute.xlu1 %1475 }
 0x86b   : > { %1479 = vrot.lane.b32.xlu1 %v1476_v32, %s3822_s17 }
 0x8db   : > { %v1478_v33 = vpop.permute.xlu0 %1477 }
 0x8dc   : > { %v1526_v34 = vadd.f32 %v1525_v16, %v1478_v33 }
 0x8dd   : > { %v1480_v36 = vpop.permute.xlu1 %1479 }
 0x8de   : > { %v1532_v37 = vmul.f32 0.17677669, %v1526_v34  ;;  %v1529_v38 = vadd.f32 %v1528_v18, %v1480_v36 }
 0x8e0   : > { %v1533_v39 = vmul.f32 0.17677669, %v1529_v38  ;;  %v1534_v43 = vadd.f32 %v3830_v20, %v1532_v37 }
 0x8e2   : > { %v1536_v45 = vsel %vm910_vm1, %v1534_v43, -inf  ;;  %v1535_v47 = vadd.f32 %v3830_v20, %v1533_v39 }
 0x8e3   : > { %1537 = vmax.xlane.f32.xlu0 %v1536_v45 }
 0x8e4   : > { %v1539_v49 = vsel %vm910_vm1, %v1535_v47, -inf }
 0x8e5   : > { %1540 = vmax.xlane.f32.xlu1 %v1539_v49 }
 0x8f6   : > { %1557 = vrot.lane.b32.xlu1 %v3815_v6, %s3497_s24 }
 0x8f9   : > { %1555 = vrot.lane.b32.xlu0 %v3797_v61, %s3497_s24 }
 0x970   : > { %v1538_v52 = vpop.xlane.xlu0 %1537 }
 0x971   : > { %v1542_v54 = vsub.f32 %v1534_v43, %v1538_v52 }
 0x972   : > { %v1541_v56 = vpop.xlane.xlu1 %1540 }
 0x973   : > { %v1544_v57 = vmul.f32 1.442695, %v1542_v54  ;;  %v1543_v58 = vsub.f32 %v1535_v47, %v1541_v56 }
 0x974   : > { %v1556_v60 = vpop.permute.xlu0 %1555 }
 0x975   : > { %3425 = vpow2.f32 %v1544_v57  ;;  %v1546_v62 = vmul.f32 1.442695, %v1543_v58  ;;  %3174 = vmatpush3.bf16.msra.mxu1 %v1556_v60 }
 0x976   : > { %3175 = vmatprep.subr.bf16.mxu1 %v3491_v1  ;;  %v1558_v63 = vpop.permute.xlu1 %1557 }
 0x977   : > { %3427 = vpow2.f32 %v1546_v62 }
 0x979   : > { %3176 = vmatpush3.bf16.msra.mxu1 %v1558_v63 }
 0x97a   : > { %3181 = vmatprep.subr.bf16.mxu1 %v3491_v1 }
 0x97f   : > { %v3426_v0 = vpop.eup %3425 }
 0x980   : > { %v1548_v51 = vsel %vm910_vm1, %v3426_v0, 0.0 }
 0x981   : > { %v3428_v53 = vpop.eup %3427  ;;  %1549 = vadd.xlane.f32.xlu0 %v1548_v51  ;;  %v3328_v51 = vld [vmem:[%s4316_s6 + $0x38] sm:$0xff]  }
 0x982   : > { %v1551_v2 = vsel %vm910_vm1, %v3428_v53, 0.0  ;;  %v1554_v4 = vpack.c.bf16 %v3428_v53, %v3426_v0  ;;  %v3327_v0 = vld [vmem:[%s4316_s6 + $0x30] sm:$0xff]  }
 0x983   : > { %1552 = vadd.xlane.f32.xlu1 %v1551_v2 }
 0x984   : > { %3178 = vmatmul.mubr.msk.bf16.vlgmr.msra.gmra.mrb[28].mxu1 %vm910_vm1, %v1554_v4 }
 0x985   : > { %3185 = vmatprep.mubr.msk.bf16.mxu1 %vm3492_vm0, %v3491_v1  ;;  %3182 = vmatpush3.bf16.msra.mxu1 %v3325_v5 }
 0x986   : > { %3183 = vmatprep.subr.bf16.mxu1 %v3491_v1 }
 0x989   : > { %3184 = vmatpush3.bf16.msra.mxu1 %v3326_v8 }
 0x98a   : > { %3189 = vmatprep.subr.bf16.mxu1 %v3491_v1 }
 0x994   : > { %1726 = vrot.lane.b32.xlu1 %v3793_v59, %s3498_s27 }
 0x997   : > { %1668 = vrot.lane.b32.xlu0 %v3791_v55, %s3498_s27 }
 0x99b   : > { %1728 = vrot.lane.b32.xlu0 %v3804_v3, %s3498_s27 }
 0xa0e   : > { %v1550_v59 = vpop.xlane.xlu0 %1549 }
 0xa0f   : > { %3429 = vrcp.f32 %v1550_v59 }
 0xa10   : > { %v1553_v9 = vpop.xlane.xlu1 %1552 }
 0xa11   : > { %3431 = vrcp.f32 %v1553_v9 }
 0xa12   : > { %v1669_v55 = vpop.permute.xlu0 %1668 }
 0xa14   : > { %v1727_v10 = vpop.permute.xlu1 %1726 }
 0xa15   : > { %v1731_v3 = vsel %vm910_vm1, %v1727_v10, 0 }
 0xa16   : > { %3210 = vmatpush3.bf16.xpose.msra.mxu0 %v1731_v3  ;;  %v1729_v11 = vpop.permute.xlu0 %1728 }
 0xa17   : > { %3211 = vmatprep.subr.bf16.mxu0 %v3491_v1  ;;  %v1734_v12 = vsel %vm910_vm1, %v1729_v11, 0 }
 0xa19   : > { %v3430_v14 = vpop.eup %3429 }
 0xa1b   : > { %v3432_v16 = vpop.eup %3431 }
 0xa1e   : > { %3212 = vmatpush3.bf16.xpose.msra.mxu0 %v1734_v12 }
 0xa1f   : > { %3217 = vmatprep.subr.bf16.mxu0 %v3491_v1 }
 0xa25   : > { %3214 = vmatmul.mubr.msk.bf16.vlgmr.msra.gmra.mrb[24].mxu0 %vm910_vm1, %v1669_v55 }
 0xa26   : > { %3221 = vmatprep.mubr.msk.bf16.mxu0 %vm3492_vm0, %v3491_v1 }
 0xa57   : > { %v1598_v13 = vpop.f32.mrb[28].mxu1 }
 0xa58   : > { %v3179_v15 = vpop.f32.mrb[29].mxu1  ;;  %v1607_v18 = vmul.f32 %v3430_v14, %v1598_v13 }
 0xa59   : > { %v1601_v17 = vpop.f32.mrb[30].mxu1 }
 0xa5a   : > { %v1608_v19 = vmul.f32 %v3432_v16, %v1601_v17  ;;  %v3180_v21 = vpop.f32.mrb[31].mxu1  ;;  %v3449_v17 = vld [vmem:[%s3699_s20] sm:$0xff] }
 0xa5c   : > { %v1609_v23 = vpack.c.bf16 %v1608_v19, %v1607_v18  ;;  %v3450_v19 = vld [vmem:[%s3699_s20 + $0x8] sm:$0xff] }
 0xa5e   : > { %3186 = vmatmul.mubr.msk.bf16.vlgmr.msra.gmra.mrb[32].mxu1 %vm910_vm1, %v1609_v23  ;;  %v3329_v23 = vld [vmem:[%s4317_s7] ss:$16 sps:$4 sm:$0xff]  }
 0xa5f   : > { %3190 = vmatpush3.bf16.xpose.msra.mxu1 %v3729_v35  ;;  %3205 = vmatprep.mubr.msk.bf16.mxu1 %vm3492_vm0, %v3491_v1 }
 0xa60   : > { %3191 = vmatprep.subr.bf16.mxu1 %v3491_v1 }
 0xa67   : > { %3192 = vmatpush3.bf16.xpose.msra.mxu1 %v3743_v40 }
 0xa68   : > { %3193 = vmatprep.subr.bf16.mxu1 %v3491_v1 }
 0xa6f   : > { %3194 = vmatpush3.bf16.xpose.msra.mxu1 %v3746_v41 }
 0xa70   : > { %3195 = vmatprep.subr.bf16.mxu1 %v3491_v1 }
 0xa77   : > { %3196 = vmatpush3.bf16.xpose.msra.mxu1 %v3749_v42 }
 0xa78   : > { %3197 = vmatprep.subr.bf16.mxu1 %v3491_v1 }
 0xa7f   : > { %3198 = vmatpush3.bf16.xpose.msra.mxu1 %v3763_v44 }
 0xa80   : > { %3199 = vmatprep.subr.bf16.mxu1 %v3491_v1 }
 0xa87   : > { %3200 = vmatpush3.bf16.xpose.msra.mxu1 %v3771_v46 }
 0xa88   : > { %3201 = vmatprep.subr.bf16.mxu1 %v3491_v1 }
 0xa8f   : > { %3202 = vmatpush3.bf16.xpose.msra.mxu1 %v3779_v48 }
 0xa90   : > { %3203 = vmatprep.subr.bf16.mxu1 %v3491_v1 }
 0xa97   : > { %3204 = vmatpush3.bf16.xpose.msra.mxu1 %v3787_v50 }
 0xa9e   : > { %3206 = vmatmul.mubr.msk.bf16.vlgmr.msra.gmra.mrb[36].mxu1 %vm910_vm1, %v1669_v55 }
 0xa9f   : > { %2246 = vmatprep.mubr.bf16.mxu1 %v3493_v7 }
 0xaf8   : > { %v1770_v35 = vpop.f32.mrb[24].mxu0 }
 0xaf9   : > { %v3215_v40 = vpop.f32.mrb[25].mxu0 }
 0xafa   : > { %v1773_v41 = vpop.f32.mrb[26].mxu0  ;;  %v3334_v40 = vld [vmem:[%s4317_s7 + $0xc] ss:$16 sps:$4 sm:$0xff]  }
 0xafb   : > { %v3216_v42 = vpop.f32.mrb[27].mxu0  ;;  %2214 = vmatprep.subr.bf16.mxu1 %v3334_v40  ;;  %v3387_v40 = vld [vmem:[%s4319_s9 + $0x10] sm:$0xff]  }
 0xafc   : > { %v3340_v42 = vld [vmem:[%s4317_s7 + $0x2c] ss:$16 sps:$4 sm:$0xff]  }
 0xb31   : > { %v1659_v44 = vpop.f32.mrb[32].mxu1 }
 0xb32   : > { %v4025_v46 = vadd.f32 %v1659_v44, %v3960_v22  ;;  %v3187_v24 = vpop.f32.mrb[33].mxu1  ;;  %v3335_v44 = vld [vmem:[%s4317_s7 + $0x20] ss:$16 sps:$4 sm:$0xff]  }
 0xb33   : > { %v1662_v48 = vpop.f32.mrb[34].mxu1 }
 0xb34   : > { %v4028_v26 = vadd.f32 %v1662_v48, %v3962_v25  ;;  %v3188_v50 = vpop.f32.mrb[35].mxu1 }
 0xb71   : > { %v1707_v27 = vpop.f32.mrb[36].mxu1 }
 0xb72   : > { %1716 = vrot.lane.b32.xlu1 %v1707_v27, %s3494_s25  ;;  %v3207_v28 = vpop.f32.mrb[37].mxu1 }
 0xb73   : > { %v1710_v29 = vpop.f32.mrb[38].mxu1 }
 0xb74   : > { %1720 = vrot.lane.b32.xlu0 %v1710_v29, %s3495_s21  ;;  %v3208_v30 = vpop.f32.mrb[39].mxu1 }
 0xbe4   : > { %v1717_v31 = vpop.permute.xlu1 %1716 }
 0xbe5   : > { %1722 = vrot.lane.b32.xlu1 %v1717_v31, %s3822_s17  ;;  %v3343_v31 = vld [vmem:[%s4317_s7 + $0x44] ss:$16 sps:$4 sm:$0xff]  }
 0xbe6   : > { %v1721_v32 = vpop.permute.xlu0 %1720 }
 0xbe7   : > { %1724 = vrot.lane.b32.xlu0 %v1721_v32, %s3822_s17  ;;  %v3346_v32 = vld [vmem:[%s4317_s7 + $0x4c] ss:$16 sps:$4 sm:$0xff]  }
 0xc57   : > { %v1723_v22 = vpop.permute.xlu1 %1722 }
 0xc58   : > { %v1771_v33 = vadd.f32 %v1770_v35, %v1723_v22  ;;  %v3332_v35 = vld [vmem:[%s4317_s7 + $0x8] ss:$16 sps:$4 sm:$0xff]   ;;  %v3341_v22 = vld [vmem:[%s4317_s7 + $0x40] ss:$16 sps:$4 sm:$0xff]  }
 0xc59   : > { %v1725_v34 = vpop.permute.xlu0 %1724  ;;  %2215 = vmatpush1.bf16.msra.mxu1 %v3332_v35  ;;  %v3386_v35 = vld [vmem:[%s4319_s9 + $0xd0] sm:$0xff]  }
 0xc5a   : > { %v1777_v36 = vmul.f32 0.17677669, %v1771_v33  ;;  %v1774_v37 = vadd.f32 %v1773_v41, %v1725_v34  ;;  %v3337_v41 = vld [vmem:[%s4317_s7 + $0x24] ss:$16 sps:$4 sm:$0xff]   ;;  %2216 = vmatprep.subr.bf16.mxu1 %v3340_v42  ;;  %v3344_v33 = vld [vmem:[%s4317_s7 + $0x48] ss:$16 sps:$4 sm:$0xff]  }
 0xc5b   : > { %v3349_v34 = vld [vmem:[%s4317_s7 + $0x64] ss:$16 sps:$4 sm:$0xff]   ;;  %v3389_v42 = vld [vmem:[%s4319_s9 + $0x58] sm:$0xff]  }
 0xc5c   : > { %v1778_v25 = vmul.f32 0.17677669, %v1774_v37  ;;  %v1779_v38 = vadd.f32 %v3830_v20, %v1777_v36  ;;  %v3352_v36 = vld [vmem:[%s4317_s7 + $0x6c] ss:$16 sps:$4 sm:$0xff]   ;;  %v3347_v37 = vld [vmem:[%s4317_s7 + $0x60] ss:$16 sps:$4 sm:$0xff]  }
 0xc5e   : > { %v1781_v39 = vsel %vm910_vm1, %v1779_v38, -inf  ;;  %v1780_v43 = vadd.f32 %v3830_v20, %v1778_v25  ;;  %v3350_v25 = vld [vmem:[%s4317_s7 + $0x68] ss:$16 sps:$4 sm:$0xff]  }
 0xc5f   : > { %1782 = vmax.xlane.f32.xlu1 %v1781_v39  ;;  %v3358_v39 = vld [vmem:[%s4317_s7 + $0x8c] ss:$16 sps:$4 sm:$0xff]  }
 0xc60   : > { %v1784_v45 = vsel %vm910_vm1, %v1780_v43, -inf }
 0xc61   : > { %1785 = vmax.xlane.f32.xlu0 %v1784_v45  ;;  %v3356_v45 = vld [vmem:[%s4317_s7 + $0x88] ss:$16 sps:$4 sm:$0xff]  }
 0xc70   : > { %1802 = vrot.lane.b32.xlu1 %v3815_v6, %s3498_s27 }
 0xc77   : > { %1800 = vrot.lane.b32.xlu0 %v3797_v61, %s3498_s27  ;;  %s4337_s27 = sshll.u32 %s3674_s16, 3 }
 0xc78   : > { %s566_s23 = scalar_lea.vmem %s4325_s15, %s4337_s27 }
 0xcec   : > { %v1783_v47 = vpop.xlane.xlu1 %1782 }
 0xced   : > { %v1787_v49 = vsub.f32 %v1779_v38, %v1783_v47  ;;  %v3355_v38 = vld [vmem:[%s4317_s7 + $0x84] ss:$16 sps:$4 sm:$0xff]  }
 0xcee   : > { %v1786_v52 = vpop.xlane.xlu0 %1785  ;;  %v3361_v47 = vld [vmem:[%s4317_s7 + $0xa4] ss:$16 sps:$4 sm:$0xff]  }
 0xcef   : > { %v1789_v54 = vmul.f32 1.442695, %v1787_v49  ;;  %v1788_v56 = vsub.f32 %v1780_v43, %v1786_v52  ;;  %v3353_v43 = vld [vmem:[%s4317_s7 + $0x80] ss:$16 sps:$4 sm:$0xff]   ;;  %v3364_v49 = vld [vmem:[%s4317_s7 + $0xac] ss:$16 sps:$4 sm:$0xff]  }
 0xcf0   : > { %v1803_v20 = vpop.permute.xlu1 %1802  ;;  %v3359_v52 = vld [vmem:[%s4317_s7 + $0xa0] ss:$16 sps:$4 sm:$0xff]  }
 0xcf1   : > { %3433 = vpow2.f32 %v1789_v54  ;;  %v1791_v57 = vmul.f32 1.442695, %v1788_v56  ;;  %v3362_v54 = vld [vmem:[%s4317_s7 + $0xa8] ss:$16 sps:$4 sm:$0xff]   ;;  %v3367_v56 = vld [vmem:[%s4317_s7 + $0xc4] ss:$16 sps:$4 sm:$0xff]  }
 0xcf2   : > { %v1801_v58 = vpop.permute.xlu0 %1800 }
 0xcf3   : > { %3435 = vpow2.f32 %v1791_v57  ;;  %3218 = vmatpush3.bf16.msra.mxu0 %v1801_v58  ;;  %v3370_v57 = vld [vmem:[%s4317_s7 + $0xcc] ss:$16 sps:$4 sm:$0xff]   ;;  %v3365_v58 = vld [vmem:[%s4317_s7 + $0xc0] ss:$16 sps:$4 sm:$0xff]  }
 0xcf4   : > { %3219 = vmatprep.subr.bf16.mxu0 %v3491_v1 }
 0xcf7   : > { %3220 = vmatpush3.bf16.msra.mxu0 %v1803_v20  ;;  %v3368_v20 = vld [vmem:[%s4317_s7 + $0xc8] ss:$16 sps:$4 sm:$0xff]  }
 0xcf8   : > { %3225 = vmatprep.subr.bf16.mxu0 %v3491_v1 }
 0xcfb   : > { %v3434_v6 = vpop.eup %3433 }
 0xcfc   : > { %v1793_v60 = vsel %vm910_vm1, %v3434_v6, 0.0 }
 0xcfd   : > { %v3436_v61 = vpop.eup %3435  ;;  %1794 = vadd.xlane.f32.xlu1 %v1793_v60  ;;  %v3371_v60 = vld [vmem:[%s4317_s7 + $0xe0] ss:$16 sps:$4 sm:$0xff]  }
 0xcfe   : > { %v1796_v62 = vsel %vm910_vm1, %v3436_v61, 0.0  ;;  %v1799_v63 = vpack.c.bf16 %v3436_v61, %v3434_v6  ;;  %v3373_v6 = vld [vmem:[%s4317_s7 + $0xe4] ss:$16 sps:$4 sm:$0xff]   ;;  %v3374_v61 = vld [vmem:[%s4317_s7 + $0xe8] ss:$16 sps:$4 sm:$0xff]  }
 0xcff   : > { %1797 = vadd.xlane.f32.xlu0 %v1796_v62  ;;  %v3376_v62 = vld [vmem:[%s4317_s7 + $0xec] ss:$16 sps:$4 sm:$0xff]  }
 0xd00   : > { %3222 = vmatmul.mubr.msk.bf16.vlgmr.msra.gmra.mrb[28].mxu0 %vm910_vm1, %v1799_v63  ;;  %v3377_v63 = vld [vmem:[%s4319_s9 + $0x40] sm:$0xff]  }
 0xd01   : > { %3229 = vmatprep.mubr.msk.bf16.mxu0 %vm3492_vm0, %v3491_v1  ;;  %3226 = vmatpush3.bf16.msra.mxu0 %v3327_v0  ;;  %v3378_v0 = vld [vmem:[%s4319_s9 + $0xc0] sm:$0xff]  }
 0xd02   : > { %3227 = vmatprep.subr.bf16.mxu0 %v3491_v1 }
 0xd05   : > { %3228 = vmatpush3.bf16.msra.mxu0 %v3328_v51 }
 0xd8a   : > { %v1795_v53 = vpop.xlane.xlu1 %1794 }
 0xd8b   : > { %3437 = vrcp.f32 %v1795_v53 }
 0xd8c   : > { %v1798_v2 = vpop.xlane.xlu0 %1797 }
 0xd8d   : > { %3439 = vrcp.f32 %v1798_v2 }
 0xd95   : > { %v3438_v5 = vpop.eup %3437 }
 0xd97   : > { %v3440_v59 = vpop.eup %3439 }
 0xdd3   : > { %v1843_v4 = vpop.f32.mrb[28].mxu0 }
 0xdd4   : > { %v3223_v8 = vpop.f32.mrb[29].mxu0  ;;  %v1852_v55 = vmul.f32 %v3438_v5, %v1843_v4 }
 0xdd5   : > { %v1846_v9 = vpop.f32.mrb[30].mxu0 }
 0xdd6   : > { %v1853_v10 = vmul.f32 %v3440_v59, %v1846_v9  ;;  %v3224_v3 = vpop.f32.mrb[31].mxu0  ;;  %v2840_v9 = vld [vmem:[%s4321_s11] ss:$0 sm:$0xff] }
 0xdd8   : > { %v1854_v1 = vpack.c.bf16 %v1853_v10, %v1852_v55 }
 0xdda   : > { %3230 = vmatmul.mubr.msk.bf16.vlgmr.msra.gmra.mrb[32].mxu0 %vm910_vm1, %v1854_v1 }
 0xddb   : > { %2203 = vmatprep.mubr.bf16.mxu0 %v3493_v7  ;;  %v3331_v7 = vld [vmem:[%s4317_s7 + $0x4] ss:$16 sps:$4 sm:$0xff]  }
 0xddc   : > { %2171 = vmatprep.subr.bf16.mxu0 %v3331_v7  ;;  %v3385_v7 = vld [vmem:[%s4319_s9 + $0x50] sm:$0xff]  }
 0xddd   : > { %2172 = vmatpush1.bf16.msra.mxu0 %v3329_v23  ;;  %v3384_v23 = vld [vmem:[%s4319_s9 + $0x88] sm:$0xff]  }
 0xdde   : > { %2173 = vmatprep.subr.bf16.mxu0 %v3337_v41  ;;  %v3388_v41 = vld [vmem:[%s4319_s9 + $0x90] sm:$0xff]  }
 0xde1   : > { %2174 = vmatpush1.bf16.msra.mxu0 %v3335_v44  ;;  %v3390_v44 = vld [vmem:[%s4319_s9 + $0xd8] sm:$0xff]  }
 0xde2   : > { %2175 = vmatprep.subr.bf16.mxu0 %v3343_v31  ;;  %v3400_v31 = vld [vmem:[%s4319_s9 + $0xa8] sm:$0xff]  }
 0xde5   : > { %2176 = vmatpush1.bf16.msra.mxu0 %v3341_v22  ;;  %v3402_v22 = vld [vmem:[%s4319_s9 + $0xf0] sm:$0xff]  }
 0xde6   : > { %2177 = vmatprep.subr.bf16.mxu0 %v3349_v34  ;;  %v3404_v34 = vld [vmem:[%s4319_s9 + $0xb0] sm:$0xff]  }
 0xde9   : > { %2178 = vmatpush1.bf16.msra.mxu0 %v3347_v37  ;;  %v3406_v37 = vld [vmem:[%s4319_s9 + $0xf8] sm:$0xff]  }
 0xdea   : > { %2179 = vmatprep.subr.bf16.mxu0 %v3355_v38  ;;  %v3408_v38 = vld [vmem:[%s4319_s9 + $0xb8] sm:$0xff]  }
 0xded   : > { %2180 = vmatpush1.bf16.msra.mxu0 %v3353_v43 }
 0xdee   : > { %2181 = vmatprep.subr.bf16.mxu0 %v3361_v47 }
 0xdf1   : > { %2182 = vmatpush1.bf16.msra.mxu0 %v3359_v52 }
 0xdf2   : > { %2183 = vmatprep.subr.bf16.mxu0 %v3367_v56 }
 0xdf5   : > { %2184 = vmatpush1.bf16.msra.mxu0 %v3365_v58 }
 0xdf6   : > { %2185 = vmatprep.subr.bf16.mxu0 %v3373_v6 }
 0xdf9   : > { %2186 = vmatpush1.bf16.msra.mxu0 %v3371_v60 }
 0xdfa   : > { %2993 = vmatprep.subr.bf16.mxu0 %v3377_v63 }
 0xead   : > { %v1904_v11 = vpop.f32.mrb[32].mxu0 }
 0xeae   : > { %v1911_v12 = vadd.f32 %v1904_v11, %v4025_v46  ;;  %v3231_v13 = vpop.f32.mrb[33].mxu0  ;;  %v3338_v46 = vld [vmem:[%s4317_s7 + $0x28] ss:$16 sps:$4 sm:$0xff]   ;;  %v2841_v11 = vld [vmem:[%s4322_s12] ss:$0 sm:$0xff] }
 0xeaf   : > { %v1907_v14 = vpop.f32.mrb[34].mxu0  ;;  %2217 = vmatpush1.bf16.msra.mxu1 %v3338_v46  ;;  %v3391_v46 = vld [vmem:[%s4319_s9 + $0x18] sm:$0xff]  }
 0xeb0   : > { %v1912_v15 = vadd.f32 %v1907_v14, %v4028_v26  ;;  %v3232_v16 = vpop.f32.mrb[35].mxu0  ;;  %v1913_v18 = vadd.f32 %v3449_v17, %v1911_v12  ;;  %2218 = vmatprep.subr.bf16.mxu1 %v3346_v32  ;;  %v3401_v32 = vld [vmem:[%s4319_s9 + $0x70] sm:$0xff]  }
 0xeb1   : > { %v3380_v16 = vld [vmem:[%s4319_s9 + $0x80] sm:$0xff]  }
 0xeb2   : > { %1917 = vadd.xlane.f32.xlu0 %v1913_v18  ;;  %v1914_v21 = vadd.f32 %v3450_v19, %v1912_v15  ;;  %v3379_v15 = vld [vmem:[%s4319_s9] sm:$0xff]   ;;  %v3382_v19 = vld [vmem:[%s4319_s9 + $0xc8] sm:$0xff]  }
 0xeb3   : > { %2219 = vmatpush1.bf16.msra.mxu1 %v3344_v33  ;;  %v3403_v33 = vld [vmem:[%s4319_s9 + $0x30] sm:$0xff]  }
 0xeb4   : > { %1919 = vadd.xlane.f32.xlu1 %v1914_v21  ;;  %2220 = vmatprep.subr.bf16.mxu1 %v3352_v36  ;;  %v3405_v36 = vld [vmem:[%s4319_s9 + $0x78] sm:$0xff]  }
 0xeb7   : > { %2221 = vmatpush1.bf16.msra.mxu1 %v3350_v25  ;;  %v3407_v25 = vld [vmem:[%s4319_s9 + $0x38] sm:$0xff]  }
 0xeb8   : > { %2222 = vmatprep.subr.bf16.mxu1 %v3358_v39  ;;  %v1991_v39 = vlaneseq }
 0xeba   : > { %v1992_v43 = vshrl.u32 %v1991_v39, 7 }
 0xebb   : > { %2223 = vmatpush1.bf16.msra.mxu1 %v3356_v45 }
 0xebc   : > { %2224 = vmatprep.subr.bf16.mxu1 %v3364_v49  ;;  %v1993_v45 = vsub.s32 0, %v1992_v43  ;;  %v2001_v47 = vsub.s32 2, %v1992_v43  ;;  %v1989_v49 = vld [vmem:[%s4318_s8] sm:$0xf]  ;;  %v1997_v52 = vsub.s32 1, %v1992_v43 }
 0xebe   : > { %v1994_v56 = vrot.slane %v1989_v49, %v1993_v45  ;;  %v1998_v58 = vrot.slane %v1989_v49, %v1997_v52 }
 0xebf   : > { %2225 = vmatpush1.bf16.msra.mxu1 %v3362_v54  ;;  %v2005_v54 = vsub.s32 3, %v1992_v43 }
 0xec0   : > { %2226 = vmatprep.subr.bf16.mxu1 %v3370_v57  ;;  %v2002_v57 = vrot.slane %v1989_v49, %v2001_v47 }
 0xec3   : > { %2227 = vmatpush1.bf16.msra.mxu1 %v3368_v20  ;;  %v2006_v20 = vrot.slane %v1989_v49, %v2005_v54 }
 0xec4   : > { %2228 = vmatprep.subr.bf16.mxu1 %v3376_v62 }
 0xec7   : > { %2229 = vmatpush1.bf16.msra.mxu1 %v3374_v61 }
 0xec8   : > { %3015 = vmatprep.subr.bf16.mxu1 %v3378_v0 }
 0xf3f   : > { %v1918_v24 = vpop.xlane.xlu0 %1917 }
 0xf40   : > { %v1922_v48 = vmul.f32 0.0078125, %v1918_v24  ;;  %v3392_v24 = vld [vmem:[%s4319_s9 + $0x98] sm:$0xff]  }
 0xf41   : > { %v1920_v26 = vpop.xlane.xlu1 %1919 }
 0xf42   : > { %v4086_v50 = vsub.f32 %v1913_v18, %v1922_v48  ;;  %v1923_v27 = vmul.f32 0.0078125, %v1920_v26  ;;  %v3381_v18 = vld [vmem:[%s4319_s9 + $0x48] sm:$0xff]   ;;  %v3393_v48 = vld [vmem:[%s4319_s9 + $0x60] sm:$0xff]  }
 0xf43   : > { %v3394_v26 = vld [vmem:[%s4319_s9 + $0xe0] sm:$0xff]  }
 0xf44   : > { %v4088_v28 = vsub.f32 %v1914_v21, %v1923_v27  ;;  %v1926_v29 = vmul.f32 %v4086_v50, %v4086_v50  ;;  %v3383_v21 = vld [vmem:[%s4319_s9 + $0x8] sm:$0xff]   ;;  %v3396_v27 = vld [vmem:[%s4319_s9 + $0xa0] sm:$0xff]  }
 0xf46   : > { %1928 = vadd.xlane.f32.xlu0 %v1926_v29  ;;  %v1927_v30 = vmul.f32 %v4088_v28, %v4088_v28  ;;  %v3398_v29 = vld [vmem:[%s4319_s9 + $0xe8] sm:$0xff]  }
 0xf48   : > { %1930 = vadd.xlane.f32.xlu1 %v1927_v30  ;;  %v3399_v30 = vld [vmem:[%s4319_s9 + $0x28] sm:$0xff]  }
 0xfd3   : > { %v1929_v51 = vpop.xlane.xlu0 %1928 }
 0xfd4   : > { %v1932_v53 = vmul.f32 0.0078125, %v1929_v51 }
 0xfd5   : > { %v1931_v2 = vpop.xlane.xlu1 %1930 }
 0xfd6   : > { %v1934_v4 = vadd.f32 1e-05, %v1932_v53  ;;  %v1933_v5 = vmul.f32 0.0078125, %v1931_v2 }
 0xfd8   : > { %3441 = vrsqrt.f32 %v1934_v4  ;;  %v1935_v8 = vadd.f32 1e-05, %v1933_v5 }
 0xfda   : > { %3443 = vrsqrt.f32 %v1935_v8 }
 0xfe2   : > { %v3442_v59 = vpop.eup %3441 }
 0xfe3   : > { %v1938_v55 = vmul.f32 %v3442_v59, %v4086_v50  ;;  %v3395_v50 = vld [vmem:[%s4319_s9 + $0x20] sm:$0xff]  }
 0xfe4   : > { %v3444_v10 = vpop.eup %3443 }
 0xfe5   : > { %v1939_v3 = vmul.f32 %v3444_v10, %v4088_v28  ;;  %v1946_v1 = vmul.f32 %v2840_v9, %v1938_v55  ;;  %v3397_v28 = vld [vmem:[%s4319_s9 + $0x68] sm:$0xff]  }
 0xfe7   : > { %v1947_v12 = vmul.f32 %v2840_v9, %v1939_v3  ;;  %v4180_v13 = vadd.f32 %v2841_v11, %v1946_v1 }
 0xfe9   : > { %v4182_v14 = vadd.f32 %v2841_v11, %v1947_v12 }
 0xfeb   : > { %v1956_v17 = vpack.c.bf16 %v4182_v14, %v4180_v13 }
 0xfed   : > { %2204 = vmatmul.mubr.bf16.vlgmr.msra.gmra.mrb[36].mxu0 %v1956_v17  ;;  %2247 = vmatmul.mubr.bf16.vlgmr.msra.gmra.mrb[40].mxu1 %v1956_v17 }
 0xfee   : > { %2994 = vmatpush3.bf16.msra.mxu0 %v3379_v15  ;;  %3016 = vmatpush3.bf16.msra.mxu1 %v3380_v16 }
 0xfef   : > { %2995 = vmatprep.subr.bf16.mxu0 %v3381_v18  ;;  %3017 = vmatprep.subr.bf16.mxu1 %v3382_v19 }
 0xff2   : > { %2996 = vmatpush3.bf16.msra.mxu0 %v3383_v21  ;;  %3018 = vmatpush3.bf16.msra.mxu1 %v3384_v23 }
 0xff3   : > { %2997 = vmatprep.subr.bf16.mxu0 %v3385_v7  ;;  %3019 = vmatprep.subr.bf16.mxu1 %v3386_v35 }
 0xff6   : > { %2998 = vmatpush3.bf16.msra.mxu0 %v3387_v40  ;;  %3020 = vmatpush3.bf16.msra.mxu1 %v3388_v41  ;;  %v2874_v41 = vld [vmem:[%s4320_s10] ss:$0 sm:$0xff] }
 0xff7   : > { %2999 = vmatprep.subr.bf16.mxu0 %v3389_v42  ;;  %3021 = vmatprep.subr.bf16.mxu1 %v3390_v44 }
 0xffa   : > { %3000 = vmatpush3.bf16.msra.mxu0 %v3391_v46  ;;  %3022 = vmatpush3.bf16.msra.mxu1 %v3392_v24 }
 0xffb   : > { %3001 = vmatprep.subr.bf16.mxu0 %v3393_v48  ;;  %3023 = vmatprep.subr.bf16.mxu1 %v3394_v26 }
 0xffe   : > { %3002 = vmatpush3.bf16.msra.mxu0 %v3395_v50  ;;  %3024 = vmatpush3.bf16.msra.mxu1 %v3396_v27 }
 0xfff   : > { %3003 = vmatprep.subr.bf16.mxu0 %v3397_v28  ;;  %3025 = vmatprep.subr.bf16.mxu1 %v3398_v29 }
0x1002   : > { %3004 = vmatpush3.bf16.msra.mxu0 %v3399_v30  ;;  %3026 = vmatpush3.bf16.msra.mxu1 %v3400_v31 }
0x1003   : > { %3005 = vmatprep.subr.bf16.mxu0 %v3401_v32  ;;  %3027 = vmatprep.subr.bf16.mxu1 %v3402_v22 }
0x1006   : > { %3006 = vmatpush3.bf16.msra.mxu0 %v3403_v33  ;;  %3028 = vmatpush3.bf16.msra.mxu1 %v3404_v34 }
0x1007   : > { %3007 = vmatprep.subr.bf16.mxu0 %v3405_v36  ;;  %3029 = vmatprep.subr.bf16.mxu1 %v3406_v37 }
0x100a   : > { %3008 = vmatpush3.bf16.msra.mxu0 %v3407_v25  ;;  %3030 = vmatpush3.bf16.msra.mxu1 %v3408_v38 }
0x10c0   : > { %v2205_v6 = vpop.f32.mrb[36].mxu0  ;;  %v2248_v60 = vpop.f32.mrb[40].mxu1 }
0x10c1   : > { %v2206_v61 = vadd.f32 %v2205_v6, %v1994_v56  ;;  %v2249_v62 = vadd.f32 %v2248_v60, %v2002_v57  ;;  %v2207_v63 = vpop.f32.mrb[37].mxu0  ;;  %v2250_v0 = vpop.f32.mrb[41].mxu1  ;;  %v2908_v60 = vld [vmem:[%s4324_s14] ss:$0 sm:$0xff] }
0x10c2   : > { %v2208_v51 = vadd.f32 %v2207_v63, %v1998_v58  ;;  %v2251_v53 = vadd.f32 %v2250_v0, %v2006_v20  ;;  %v2209_v2 = vpop.f32.mrb[38].mxu0  ;;  %v2252_v4 = vpop.f32.mrb[42].mxu1 }
0x10c3   : > { %v2210_v5 = vadd.f32 %v2209_v2, %v1994_v56  ;;  %v2253_v8 = vadd.f32 %v2252_v4, %v2002_v57  ;;  %v2211_v59 = vpop.f32.mrb[39].mxu0  ;;  %v2254_v9 = vpop.f32.mrb[43].mxu1  ;;  %v2257_v3 = vmax.f32 %v2206_v61, 0.0  ;;  %v2259_v1 = vmax.f32 %v2249_v62, 0.0 }
0x10c4   : > { %v2212_v55 = vadd.f32 %v2211_v59, %v1998_v58  ;;  %v2255_v10 = vadd.f32 %v2254_v9, %v2006_v20  ;;  %v2258_v15 = vmax.f32 %v2208_v51, 0.0  ;;  %v2260_v16 = vmax.f32 %v2251_v53, 0.0  ;;  %v2907_v58 = vld [vmem:[%s4323_s13] ss:$0 sm:$0xff] }
0x10c5   : > { %v2261_v11 = vmax.f32 %v2210_v5, 0.0  ;;  %v2263_v12 = vmax.f32 %v2253_v8, 0.0 }
0x10c6   : > { %v2262_v17 = vmax.f32 %v2212_v55, 0.0  ;;  %v2264_v18 = vmax.f32 %v2255_v10, 0.0 }
0x10c7   : > { %v2265_v19 = vpack.c.bf16 %v2261_v11, %v2257_v3  ;;  %v2267_v21 = vpack.c.bf16 %v2263_v12, %v2259_v1 }
0x10c8   : > { %v2266_v23 = vpack.c.bf16 %v2262_v17, %v2258_v15  ;;  %v2268_v7 = vpack.c.bf16 %v2264_v18, %v2260_v16 }
0x10ca   : > { %2564 = vmatprep.mubr.bf16.mxu0 %v2266_v23  ;;  %2605 = vmatprep.mubr.bf16.mxu1 %v2268_v7 }
0x10cb   : > { %2565 = vmatmul.mubr.bf16.vlgmr.msra.gmra.mrb[40].mxu0 %v2265_v19  ;;  %2606 = vmatmul.mubr.bf16.vlgmr.msra.gmra.mrb[44].mxu1 %v2267_v21 }
0x119e   : > { %v3009_v35 = vpop.f32.mrb[40].mxu0  ;;  %v3031_v40 = vpop.f32.mrb[44].mxu1 }
0x119f   : > { %v3010_v42 = vpop.f32.mrb[41].mxu0  ;;  %v3032_v44 = vpop.f32.mrb[45].mxu1 }
0x11a0   : > { %v3011_v46 = vadd.f32 %v3010_v42, %v3009_v35  ;;  %v3033_v24 = vadd.f32 %v3032_v44, %v3031_v40  ;;  %v3012_v48 = vpop.f32.mrb[42].mxu0  ;;  %v3034_v26 = vpop.f32.mrb[46].mxu1 }
0x11a1   : > { %v3013_v50 = vpop.f32.mrb[43].mxu0  ;;  %v3035_v27 = vpop.f32.mrb[47].mxu1 }
0x11a2   : > { %v2567_v28 = vadd.f32 %v3011_v46, %v2874_v41  ;;  %v3014_v29 = vadd.f32 %v3013_v50, %v3012_v48  ;;  %v3036_v30 = vadd.f32 %v3035_v27, %v3034_v26 }
0x11a4   : > { %v2608_v31 = vadd.f32 %v3033_v24, %v2567_v28  ;;  %v2570_v32 = vadd.f32 %v3014_v29, %v2874_v41 }
0x11a6   : > { %v2611_v22 = vadd.f32 %v3036_v30, %v2570_v32  ;;  %v2614_v33 = vadd.f32 %v2608_v31, %v4180_v13 }
0x11a8   : > { %2618 = vadd.xlane.f32.xlu0 %v2614_v33  ;;  %v2615_v34 = vadd.f32 %v2611_v22, %v4182_v14 }
0x11aa   : > { %2620 = vadd.xlane.f32.xlu1 %v2615_v34 }
0x1235   : > { %v2619_v36 = vpop.xlane.xlu0 %2618 }
0x1236   : > { %v2622_v37 = vmul.f32 0.0078125, %v2619_v36 }
0x1237   : > { %v2621_v25 = vpop.xlane.xlu1 %2620 }
0x1238   : > { %v2624_v38 = vsub.f32 %v2614_v33, %v2622_v37  ;;  %v2623_v39 = vmul.f32 0.0078125, %v2621_v25 }
0x123a   : > { %v2625_v43 = vsub.f32 %v2615_v34, %v2623_v39  ;;  %v2626_v45 = vmul.f32 %v2624_v38, %v2624_v38 }
0x123c   : > { %2628 = vadd.xlane.f32.xlu0 %v2626_v45  ;;  %v2627_v47 = vmul.f32 %v2625_v43, %v2625_v43 }
0x123e   : > { %2630 = vadd.xlane.f32.xlu1 %v2627_v47 }
0x12c9   : > { %v2629_v49 = vpop.xlane.xlu0 %2628 }
0x12ca   : > { %v2632_v52 = vmul.f32 0.0078125, %v2629_v49 }
0x12cb   : > { %v2631_v54 = vpop.xlane.xlu1 %2630 }
0x12cc   : > { %v2634_v56 = vadd.f32 1e-05, %v2632_v52  ;;  %v2633_v13 = vmul.f32 0.0078125, %v2631_v54 }
0x12ce   : > { %3445 = vrsqrt.f32 %v2634_v56  ;;  %v2635_v57 = vadd.f32 1e-05, %v2633_v13 }
0x12d0   : > { %3447 = vrsqrt.f32 %v2635_v57 }
0x12d8   : > { %v3446_v14 = vpop.eup %3445 }
0x12d9   : > { %v2638_v20 = vmul.f32 %v3446_v14, %v2624_v38 }
0x12da   : > { %v3448_v6 = vpop.eup %3447 }
0x12db   : > { %v2646_v61 = vmul.f32 %v2907_v58, %v2638_v20  ;;  %v2639_v62 = vmul.f32 %v3448_v6, %v2625_v43 }
0x12dd   : > { %v2654_v63 = vadd.f32 %v2908_v60, %v2646_v61  ;;  %v2647_v0 = vmul.f32 %v2907_v58, %v2639_v62 }
0x12df   : > { %2656 = vst [vmem:[%s566_s23] sm:$0xff] %v2654_v63  ;;  %v2655_v51 = vadd.f32 %v2908_v60, %v2647_v0 }
0x12e1   : > { %2657 = vst [vmem:[%s566_s23 + $0x8] sm:$0xff] %v2655_v51 }
0x12e2 PF: > { %s4338_s20 = sld [smem:[#allocation4_spill]]  ;;  %s4339_s18 = sld [smem:[#allocation2_spill]] }
0x12e3   : > { %s4340_s19 = sld [smem:[#allocation3_spill]]  ;;  %s4342_s21 = sld [smem:[#allocation6_spill]] }
0x12e8   : > { %s25_s22 = sadd.s32 1, %s4338_s20   ;;  %s4341_s20 = sld [smem:[#allocation5_spill]] }
0x12e9   : > { %p22_p7 = scmp.ge.s32.totalorder %s25_s22, 6  }
0x12eb   :  { %24 = sbr.rel (!%p22_p7) target bundleno = 3 (0x3), region = 116 }

</bundles_post_ra>
